<compile_context>
chip_gen: v6e
topology: v6e:2x2x1
jax: 0.10.0
libtpu: 0.0.40
codegen_flags: <defaults>
</compile_context>

<pallas_src>
import functools

import jax
import jax.numpy as jnp
from jax import lax
from jax.experimental import pallas as pl
from jax.experimental.pallas import tpu as pltpu

_PAD_BIG = 1e30  # padding value that sorts after every real distance (< 1e30)


# ---------------------------------------------------------------------------
# In-kernel helpers (all operate along axis 0 = sublanes, rays on lanes).
# ---------------------------------------------------------------------------
def _wrap_shift_rows(x, d):
    """y[i] = x[(i + d) mod n] along axis 0 (static slices + one concat)."""
    n = x.shape[0]
    d %= n
    if d == 0:
        return x
    return jnp.concatenate([x[d:, :], x[:d, :]], axis=0)


def _inclusive_cumsum_rows(x):
    """Inclusive prefix sum along axis 0 (Hillis-Steele, zero-filled shifts)."""
    n = x.shape[0]
    d = 1
    while d < n:
        shifted = jnp.concatenate(
            [jnp.zeros((d,) + x.shape[1:], x.dtype), x[:n - d, :]], axis=0)
        x = x + shifted
        d *= 2
    return x


def _compare_exchange(x, iota, j, asc_mask=None):
    """One bitonic compare-exchange stage: partner of row i is row i ^ j."""
    n = x.shape[0]
    partner_lo = (iota & j) == 0                       # partner sits at i + j
    up = _wrap_shift_rows(x, j)                        # up[i] = x[i + j]
    dn = _wrap_shift_rows(x, n - j)                    # dn[i] = x[i - j]
    partner = jnp.where(partner_lo, up, dn)
    if asc_mask is None:                               # plain ascending merge
        take_min = partner_lo
    else:                                              # XNOR with block direction
        take_min = partner_lo == asc_mask
    return jnp.where(take_min, jnp.minimum(x, partner), jnp.maximum(x, partner))


def _bitonic_sort_rows(x, *, ascending=True):
    """Bitonic sort along axis 0; x.shape[0] must be a power of two."""
    n = x.shape[0]
    iota = lax.broadcasted_iota(jnp.int32, x.shape, 0)
    k = 2
    while k <= n:
        asc = (iota & k) == 0                          # block direction (bit k)
        if not ascending:
            asc = jnp.logical_not(asc)
        j = k // 2
        while j >= 1:
            x = _compare_exchange(x, iota, j, asc)
            j //= 2
        k *= 2
    return x


def _bitonic_merge_rows(x):
    """Ascending merge of a bitonic (rising-then-falling) sequence, axis 0."""
    n = x.shape[0]
    iota = lax.broadcasted_iota(jnp.int32, x.shape, 0)
    j = n // 2
    while j >= 1:
        x = _compare_exchange(x, iota, j)
        j //= 2
    return x


# ---------------------------------------------------------------------------
# Kernel
# ---------------------------------------------------------------------------
def _importance_kernel(rays_ref, dists_ref, w_ref, u_ref, pts_out_ref, d_out_ref):
    S, TR = dists_ref.shape
    N = u_ref.shape[0]
    M = S + N
    Np = 1 << (N - 1).bit_length()            # pow2 row count for the new-sample sort
    Mp = 1 << (S + Np - 1).bit_length()       # pow2 row count for the final merge
    f32 = jnp.float32

    dists = dists_ref[...]                    # (S, TR)  pre-sorted coarse distances
    w = w_ref[...]                            # (S, TR)
    u = u_ref[...]                            # (N, TR)  u in [0, 1]

    row = lax.broadcasted_iota(jnp.int32, (S, TR), 0)

    # ---- CDF over the interior weights, on an aligned (S, TR) grid ----------
    # g[i] = w[i] + 1e-5 for 1 <= i <= S-2, else 0;  cdf[i] = sum_{j<i} pdf[j].
    g = jnp.where(jnp.logical_and(row >= 1, row <= S - 2), w + 1e-5, 0.0)
    total = jnp.sum(g, axis=0, keepdims=True)                          # (1, TR)
    cdf = _inclusive_cumsum_rows(g) * pl.reciprocal(total, approx=False)
    cdf = jnp.where(row == S - 1, 2.0, cdf)   # pad row sentinel: above any u

    # ---- bins (midpoints) and pre-shifted "next" copies ----------------------
    bins = 0.5 * (dists + jnp.concatenate([dists[1:, :], dists[S - 1:, :]], axis=0))
    cdf_up = jnp.concatenate([cdf[1:, :], jnp.full((1, TR), 2.0, f32)], axis=0)
    bins_up = jnp.concatenate([bins[1:, :], bins[S - 1:, :]], axis=0)

    # Per-bin interpolation slope, computed once (matches the reference's
    # "denom < 1e-5 -> 1" rule; the clamped last bin gets slope exactly 0).
    denom = cdf_up - cdf
    denom = jnp.where(denom < 1e-5, 1.0, denom)
    slope = (bins_up - bins) * pl.reciprocal(denom, approx=False)
    slope = jnp.where(row >= S - 2, 0.0, slope)

    # ---- inverse-CDF sampling: 1 transition mask + 1 reduction per sample ----
    new_rows = []
    for n in range(N):
        un = jnp.broadcast_to(u[n:n + 1, :], (S, TR))
        m = jnp.logical_and(cdf <= un, cdf_up > un)    # one-hot on the "below" bin
        val = bins + (un - cdf) * slope
        new_rows.append(jnp.sum(jnp.where(m, val, 0.0), axis=0, keepdims=True))
    new_block = jnp.concatenate(new_rows, axis=0)      # (N, TR), in registers

    # ---- sort: coarse dists already ascending -> sort only the new samples
    # (descending), then one bitonic merge of [dists_asc ; pads ; new_desc]. ---
    if Np > N:
        new_block = jnp.concatenate(
            [new_block, jnp.full((Np - N, TR), _PAD_BIG, f32)], axis=0)
    new_desc = _bitonic_sort_rows(new_block, ascending=False)

    parts = [dists]
    if Mp > S + Np:
        parts.append(jnp.full((Mp - S - Np, TR), _PAD_BIG, f32))
    parts.append(new_desc)
    d_sorted = _bitonic_merge_rows(jnp.concatenate(parts, axis=0))[:M, :]

    # ---- single lane-dense full-block stores ---------------------------------
    d_out_ref[...] = d_sorted
    for c in range(3):  # sampled_pts = origin + dir * dist, one coord per slab
        pts_out_ref[c, :, :] = (rays_ref[3 + c:4 + c, :]
                                + rays_ref[c:c + 1, :] * d_sorted)


# ---------------------------------------------------------------------------
# Wrappers
# ---------------------------------------------------------------------------
@functools.partial(jax.jit, static_argnames=("tile_r",))
def _importance_pallas(rays, dists, weights, u, *, tile_r=None):
    """rays (R,6), dists (R,S), weights (R,S,1), u (R,N) -> pts (R,S+N,3), dists (R,S+N)."""
    R, S = dists.shape
    N = u.shape[-1]
    M = S + N

    rays = rays.astype(jnp.float32)
    dists = dists.astype(jnp.float32)
    weights = weights.astype(jnp.float32)
    u = u.astype(jnp.float32)

    R128 = ((R + 127) // 128) * 128
    if tile_r is None:
        # Largest multiple-of-128 tile up to 1024 lanes that keeps >= 2 grid steps.
        tile_r = max(128, min(1024, (R128 // 2) // 128 * 128))
    Rp = ((R + tile_r - 1) // tile_r) * tile_r
    pad = Rp - R

    # Transpose once, pad after transposing (lane padding only).
    rays_t = jnp.transpose(rays[:, :6], (1, 0))        # (6, R)
    dists_t = jnp.transpose(dists, (1, 0))             # (S, R)
    w_t = jnp.transpose(weights[..., 0], (1, 0))       # (S, R)
    u_t = jnp.transpose(u, (1, 0))                     # (N, R)
    if pad:
        padw = ((0, 0), (0, pad))
        rays_t = jnp.pad(rays_t, padw)
        dists_t = jnp.pad(dists_t, padw)
        w_t = jnp.pad(w_t, padw)
        u_t = jnp.pad(u_t, padw)

    grid = (Rp // tile_r,)
    pts_o, d_o = pl.pallas_call(
        _importance_kernel,
        out_shape=(jax.ShapeDtypeStruct((3, M, Rp), jnp.float32),
                   jax.ShapeDtypeStruct((M, Rp), jnp.float32)),
        grid_spec=pltpu.PrefetchScalarGridSpec(
            num_scalar_prefetch=0,
            grid=grid,
            in_specs=[
                pl.BlockSpec((6, tile_r), lambda i: (0, i)),        # rays (dirs + origins)
                pl.BlockSpec((S, tile_r), lambda i: (0, i)),        # dists
                pl.BlockSpec((S, tile_r), lambda i: (0, i)),        # weights
                pl.BlockSpec((N, tile_r), lambda i: (0, i)),        # u
            ],
            out_specs=[
                pl.BlockSpec((3, M, tile_r), lambda i: (0, 0, i)),  # sampled points
                pl.BlockSpec((M, tile_r), lambda i: (0, i)),        # sorted dists
            ],
        ),
        compiler_params=pltpu.CompilerParams(
            dimension_semantics=("parallel",),
            vmem_limit_bytes=32 * 1024 * 1024,
        ),
    )(rays_t, dists_t, w_t, u_t)

    # TODO(synk): these output transposes could be fused into the downstream
    # fine-MLP input reshape if the consumer accepted the (M, R) layouts.
    sampled_pts = jnp.transpose(pts_o, (2, 1, 0))[:R]  # (R, M, 3)
    d_all = jnp.transpose(d_o, (1, 0))[:R]             # (R, M)
    return sampled_pts, d_all


def importance_sample(rays, dists, weights, num_importance, perturb, *,
                      key=None, tile_r=None):
    """Forward of ImportanceSampler (torch.sort/searchsorted semantics preserved)."""
    R = dists.shape[0]
    N = int(num_importance)
    # TODO(synk): `sample_pdf` is not defined in the provided module; this assumes
    # the standard NeRF formulation (perturb != 0 -> uniform random u, else linspace),
    # with u drawn via jax.random in the wrapper (torch RNG cannot be replicated).
    if perturb:
        if key is None:
            key = jax.random.PRNGKey(0)
        u = jax.random.uniform(key, (R, N), jnp.float32)
    else:
        u = jnp.broadcast_to(jnp.linspace(0.0, 1.0, N, dtype=jnp.float32), (R, N))
    # `.detach()` on new_dists only affects gradients; forward values are identical.
    return _importance_pallas(rays, dists, weights, u, tile_r=tile_r)


# ---------------------------------------------------------------------------
# Pure-JAX transcription of the PyTorch forward (for validation).
# ---------------------------------------------------------------------------
def importance_sample_ref(rays, dists, weights, u):
    dirs = rays[..., :3][..., None, :]                 # (R, 1, 3)
    pts = rays[..., 3:6][..., None, :]                 # (R, 1, 3)
    bins = 0.5 * (dists[..., 1:] + dists[..., :-1])    # (R, S-1)
    w = weights[..., 0][..., 1:-1] + 1e-5              # (R, S-2)
    pdf = w / jnp.sum(w, axis=-1, keepdims=True)
    cdf = jnp.concatenate(
        [jnp.zeros_like(pdf[..., :1]), jnp.cumsum(pdf, axis=-1)], axis=-1)
    inds = jnp.sum((cdf[..., None, :] <= u[..., :, None]).astype(jnp.int32), axis=-1)
    below = jnp.maximum(0, inds - 1)
    above = jnp.minimum(cdf.shape[-1] - 1, inds)
    cdf_b = jnp.take_along_axis(cdf, below, axis=-1)
    cdf_a = jnp.take_along_axis(cdf, above, axis=-1)
    bin_b = jnp.take_along_axis(bins, below, axis=-1)
    bin_a = jnp.take_along_axis(bins, above, axis=-1)
    denom = jnp.where(cdf_a - cdf_b < 1e-5, 1.0, cdf_a - cdf_b)
    t = (u - cdf_b) / denom
    new_d = bin_b + t * (bin_a - bin_b)
    d_all = jnp.sort(jnp.concatenate([dists, new_d], axis=-1), axis=-1)
    sampled_pts = pts + dirs * d_all[..., None]
    return sampled_pts, d_all


if __name__ == "__main__":
    key = jax.random.PRNGKey(0)
    k1, k2, k3, k4 = jax.random.split(key, 4)

    R, S, N_IMP = 512, 16, 16
    rays = jax.random.normal(k1, (R, 6), jnp.float32)
    dists = jnp.sort(jax.random.uniform(k2, (R, S), jnp.float32,
                                        minval=2.0, maxval=6.0), axis=-1)
    weights = jax.random.uniform(k3, (R, S, 1), jnp.float32,
                                 minval=0.1, maxval=1.0)

    # Deterministic path (perturb = 0): u = linspace(0, 1, N).
    pts_det, d_det = importance_sample(rays, dists, weights, N_IMP, perturb=0)
    pts_det = jax.block_until_ready(pts_det)
    d_det = jax.block_until_ready(d_det)
    u_det = jnp.broadcast_to(jnp.linspace(0.0, 1.0, N_IMP, dtype=jnp.float32),
                             (R, N_IMP))
    pts_ref, d_ref = importance_sample_ref(rays, dists, weights, u_det)
    assert pts_det.shape == (R, S + N_IMP, 3) and d_det.shape == (R, S + N_IMP)
    assert jnp.allclose(d_det, d_ref, atol=1e-4, rtol=1e-4)
    assert jnp.allclose(pts_det, pts_ref, atol=1e-4, rtol=1e-4)

    # Perturbed path: random u shared between kernel and reference.
    u_rand = jax.random.uniform(k4, (R, N_IMP), jnp.float32)
    pts_p, d_p = _importance_pallas(rays, dists, weights, u_rand)
    pts_p = jax.block_until_ready(pts_p)
    d_p = jax.block_until_ready(d_p)
    pts_pr, d_pr = importance_sample_ref(rays, dists, weights, u_rand)
    assert jnp.allclose(d_p, d_pr, atol=1e-4, rtol=1e-4)
    assert jnp.allclose(pts_p, pts_pr, atol=1e-4, rtol=1e-4)

    print("KERNEL_OK")
</pallas_src>

<mosaic_0001>
module attributes {stable_mosaic.version = 11 : i64} {
  func.func @_importance_kernel(%arg0: i32, %arg1: memref<6x256xf32, #tpu.memory_space<vmem>>, %arg2: memref<16x256xf32, #tpu.memory_space<vmem>>, %arg3: memref<16x256xf32, #tpu.memory_space<vmem>>, %arg4: memref<16x256xf32, #tpu.memory_space<vmem>>, %arg5: memref<3x32x256xf32, #tpu.memory_space<vmem>>, %arg6: memref<32x256xf32, #tpu.memory_space<vmem>>) attributes {dimension_semantics = [#tpu.dimension_semantics<parallel>], iteration_bounds = array<i64: 2>, scalar_prefetch = 0 : i64, scratch_operands = 0 : i64, tpu.core_type = #tpu.core_type<tc>, window_params = [{transform_indices = @transform_0, window_bounds = array<i64: 6, 256>}, {transform_indices = @transform_1, window_bounds = array<i64: 16, 256>}, {transform_indices = @transform_2, window_bounds = array<i64: 16, 256>}, {transform_indices = @transform_3, window_bounds = array<i64: 16, 256>}, {transform_indices = @transform_4, window_bounds = array<i64: 3, 32, 256>}, {transform_indices = @transform_5, window_bounds = array<i64: 32, 256>}]} {
    %c0 = arith.constant 0 : index
    %c0_0 = arith.constant 0 : index
    %0 = vector.load %arg2[%c0, %c0_0] : memref<16x256xf32, #tpu.memory_space<vmem>>, vector<16x256xf32>
    %c0_1 = arith.constant 0 : index
    %c0_2 = arith.constant 0 : index
    %1 = vector.load %arg3[%c0_1, %c0_2] : memref<16x256xf32, #tpu.memory_space<vmem>>, vector<16x256xf32>
    %c0_3 = arith.constant 0 : index
    %c0_4 = arith.constant 0 : index
    %2 = vector.load %arg4[%c0_3, %c0_4] : memref<16x256xf32, #tpu.memory_space<vmem>>, vector<16x256xf32>
    %3 = tpu.iota {dimensions = array<i32: 0>} : vector<16x256xi32>
    %c1_i32 = arith.constant 1 : i32
    %4 = vector.broadcast %c1_i32 : i32 to vector<16x256xi32>
    %5 = arith.cmpi sge, %3, %4 : vector<16x256xi32>
    %c14_i32 = arith.constant 14 : i32
    %6 = vector.broadcast %c14_i32 : i32 to vector<16x256xi32>
    %7 = arith.cmpi sle, %3, %6 : vector<16x256xi32>
    %8 = arith.andi %5, %7 : vector<16x256xi1>
    %cst = arith.constant 9.99999974E-6 : f32
    %9 = vector.broadcast %cst : f32 to vector<16x256xf32>
    %10 = arith.addf %1, %9 : vector<16x256xf32>
    %cst_5 = arith.constant 0.000000e+00 : f32
    %11 = vector.broadcast %cst_5 : f32 to vector<16x256xf32>
    %12 = arith.select %8, %10, %11 : vector<16x256xi1>, vector<16x256xf32>
    %cst_6 = arith.constant dense<0.000000e+00> : vector<256xf32>
    %13 = vector.multi_reduction <add>, %12, %cst_6 [0] : vector<16x256xf32> to vector<256xf32>
    %14 = vector.shape_cast %13 : vector<256xf32> to vector<1x256xf32>
    %cst_7 = arith.constant 0.000000e+00 : f32
    %15 = vector.broadcast %cst_7 : f32 to vector<1x256xf32>
    %16 = vector.extract_strided_slice %12 {offsets = [0, 0], sizes = [15, 256], strides = [1, 1]} : vector<16x256xf32> to vector<15x256xf32>
    %17 = tpu.concatenate %15, %16 in 0 : vector<1x256xf32>, vector<15x256xf32> -> vector<16x256xf32>
    %18 = arith.addf %12, %17 : vector<16x256xf32>
    %cst_8 = arith.constant 0.000000e+00 : f32
    %19 = vector.broadcast %cst_8 : f32 to vector<2x256xf32>
    %20 = vector.extract_strided_slice %18 {offsets = [0, 0], sizes = [14, 256], strides = [1, 1]} : vector<16x256xf32> to vector<14x256xf32>
    %21 = tpu.concatenate %19, %20 in 0 : vector<2x256xf32>, vector<14x256xf32> -> vector<16x256xf32>
    %22 = arith.addf %18, %21 : vector<16x256xf32>
    %cst_9 = arith.constant 0.000000e+00 : f32
    %23 = vector.broadcast %cst_9 : f32 to vector<4x256xf32>
    %24 = vector.extract_strided_slice %22 {offsets = [0, 0], sizes = [12, 256], strides = [1, 1]} : vector<16x256xf32> to vector<12x256xf32>
    %25 = tpu.concatenate %23, %24 in 0 : vector<4x256xf32>, vector<12x256xf32> -> vector<16x256xf32>
    %26 = arith.addf %22, %25 : vector<16x256xf32>
    %cst_10 = arith.constant 0.000000e+00 : f32
    %27 = vector.broadcast %cst_10 : f32 to vector<8x256xf32>
    %28 = vector.extract_strided_slice %26 {offsets = [0, 0], sizes = [8, 256], strides = [1, 1]} : vector<16x256xf32> to vector<8x256xf32>
    %29 = tpu.concatenate %27, %28 in 0 : vector<8x256xf32>, vector<8x256xf32> -> vector<16x256xf32>
    %30 = arith.addf %26, %29 : vector<16x256xf32>
    %31 = tpu.reciprocal %14 : vector<1x256xf32> -> vector<1x256xf32>
    %32 = vector.broadcast %31 : vector<1x256xf32> to vector<16x256xf32>
    %33 = arith.mulf %30, %32 : vector<16x256xf32>
    %c15_i32 = arith.constant 15 : i32
    %34 = vector.broadcast %c15_i32 : i32 to vector<16x256xi32>
    %35 = arith.cmpi eq, %3, %34 : vector<16x256xi32>
    %cst_11 = arith.constant 2.000000e+00 : f32
    %36 = vector.broadcast %cst_11 : f32 to vector<16x256xf32>
    %37 = arith.select %35, %36, %33 : vector<16x256xi1>, vector<16x256xf32>
    %38 = vector.extract_strided_slice %0 {offsets = [1, 0], sizes = [15, 256], strides = [1, 1]} : vector<16x256xf32> to vector<15x256xf32>
    %39 = vector.extract_strided_slice %0 {offsets = [15, 0], sizes = [1, 256], strides = [1, 1]} : vector<16x256xf32> to vector<1x256xf32>
    %40 = tpu.concatenate %38, %39 in 0 : vector<15x256xf32>, vector<1x256xf32> -> vector<16x256xf32>
    %41 = arith.addf %0, %40 : vector<16x256xf32>
    %cst_12 = arith.constant 5.000000e-01 : f32
    %42 = vector.broadcast %cst_12 : f32 to vector<16x256xf32>
    %43 = arith.mulf %42, %41 : vector<16x256xf32>
    %44 = vector.extract_strided_slice %37 {offsets = [1, 0], sizes = [15, 256], strides = [1, 1]} : vector<16x256xf32> to vector<15x256xf32>
    %cst_13 = arith.constant 2.000000e+00 : f32
    %45 = vector.broadcast %cst_13 : f32 to vector<1x256xf32>
    %46 = tpu.concatenate %44, %45 in 0 : vector<15x256xf32>, vector<1x256xf32> -> vector<16x256xf32>
    %47 = vector.extract_strided_slice %43 {offsets = [1, 0], sizes = [15, 256], strides = [1, 1]} : vector<16x256xf32> to vector<15x256xf32>
    %48 = vector.extract_strided_slice %43 {offsets = [15, 0], sizes = [1, 256], strides = [1, 1]} : vector<16x256xf32> to vector<1x256xf32>
    %49 = tpu.concatenate %47, %48 in 0 : vector<15x256xf32>, vector<1x256xf32> -> vector<16x256xf32>
    %50 = arith.subf %46, %37 : vector<16x256xf32>
    %cst_14 = arith.constant 9.99999974E-6 : f32
    %51 = vector.broadcast %cst_14 : f32 to vector<16x256xf32>
    %52 = arith.cmpf olt, %50, %51 : vector<16x256xf32>
    %cst_15 = arith.constant 1.000000e+00 : f32
    %53 = vector.broadcast %cst_15 : f32 to vector<16x256xf32>
    %54 = arith.select %52, %53, %50 : vector<16x256xi1>, vector<16x256xf32>
    %55 = arith.subf %49, %43 : vector<16x256xf32>
    %56 = tpu.reciprocal %54 : vector<16x256xf32> -> vector<16x256xf32>
    %57 = arith.mulf %55, %56 : vector<16x256xf32>
    %c14_i32_16 = arith.constant 14 : i32
    %58 = vector.broadcast %c14_i32_16 : i32 to vector<16x256xi32>
    %59 = arith.cmpi sge, %3, %58 : vector<16x256xi32>
    %cst_17 = arith.constant 0.000000e+00 : f32
    %60 = vector.broadcast %cst_17 : f32 to vector<16x256xf32>
    %61 = arith.select %59, %60, %57 : vector<16x256xi1>, vector<16x256xf32>
    %62 = vector.extract_strided_slice %2 {offsets = [0, 0], sizes = [1, 256], strides = [1, 1]} : vector<16x256xf32> to vector<1x256xf32>
    %63 = vector.shape_cast %62 : vector<1x256xf32> to vector<1x256xf32>
    %64 = vector.broadcast %63 : vector<1x256xf32> to vector<16x256xf32>
    %65 = arith.cmpf ole, %37, %64 : vector<16x256xf32>
    %66 = arith.cmpf ogt, %46, %64 : vector<16x256xf32>
    %67 = arith.andi %65, %66 : vector<16x256xi1>
    %68 = arith.subf %64, %37 : vector<16x256xf32>
    %69 = arith.mulf %68, %61 : vector<16x256xf32>
    %70 = arith.addf %43, %69 : vector<16x256xf32>
    %cst_18 = arith.constant 0.000000e+00 : f32
    %71 = vector.broadcast %cst_18 : f32 to vector<16x256xf32>
    %72 = arith.select %67, %70, %71 : vector<16x256xi1>, vector<16x256xf32>
    %cst_19 = arith.constant dense<0.000000e+00> : vector<256xf32>
    %73 = vector.multi_reduction <add>, %72, %cst_19 [0] : vector<16x256xf32> to vector<256xf32>
    %74 = vector.shape_cast %73 : vector<256xf32> to vector<1x256xf32>
    %75 = vector.extract_strided_slice %2 {offsets = [1, 0], sizes = [1, 256], strides = [1, 1]} : vector<16x256xf32> to vector<1x256xf32>
    %76 = vector.shape_cast %75 : vector<1x256xf32> to vector<1x256xf32>
    %77 = vector.broadcast %76 : vector<1x256xf32> to vector<16x256xf32>
    %78 = arith.cmpf ole, %37, %77 : vector<16x256xf32>
    %79 = arith.cmpf ogt, %46, %77 : vector<16x256xf32>
    %80 = arith.andi %78, %79 : vector<16x256xi1>
    %81 = arith.subf %77, %37 : vector<16x256xf32>
    %82 = arith.mulf %81, %61 : vector<16x256xf32>
    %83 = arith.addf %43, %82 : vector<16x256xf32>
    %cst_20 = arith.constant 0.000000e+00 : f32
    %84 = vector.broadcast %cst_20 : f32 to vector<16x256xf32>
    %85 = arith.select %80, %83, %84 : vector<16x256xi1>, vector<16x256xf32>
    %cst_21 = arith.constant dense<0.000000e+00> : vector<256xf32>
    %86 = vector.multi_reduction <add>, %85, %cst_21 [0] : vector<16x256xf32> to vector<256xf32>
    %87 = vector.shape_cast %86 : vector<256xf32> to vector<1x256xf32>
    %88 = vector.extract_strided_slice %2 {offsets = [2, 0], sizes = [1, 256], strides = [1, 1]} : vector<16x256xf32> to vector<1x256xf32>
    %89 = vector.shape_cast %88 : vector<1x256xf32> to vector<1x256xf32>
    %90 = vector.broadcast %89 : vector<1x256xf32> to vector<16x256xf32>
    %91 = arith.cmpf ole, %37, %90 : vector<16x256xf32>
    %92 = arith.cmpf ogt, %46, %90 : vector<16x256xf32>
    %93 = arith.andi %91, %92 : vector<16x256xi1>
    %94 = arith.subf %90, %37 : vector<16x256xf32>
    %95 = arith.mulf %94, %61 : vector<16x256xf32>
    %96 = arith.addf %43, %95 : vector<16x256xf32>
    %cst_22 = arith.constant 0.000000e+00 : f32
    %97 = vector.broadcast %cst_22 : f32 to vector<16x256xf32>
    %98 = arith.select %93, %96, %97 : vector<16x256xi1>, vector<16x256xf32>
    %cst_23 = arith.constant dense<0.000000e+00> : vector<256xf32>
    %99 = vector.multi_reduction <add>, %98, %cst_23 [0] : vector<16x256xf32> to vector<256xf32>
    %100 = vector.shape_cast %99 : vector<256xf32> to vector<1x256xf32>
    %101 = vector.extract_strided_slice %2 {offsets = [3, 0], sizes = [1, 256], strides = [1, 1]} : vector<16x256xf32> to vector<1x256xf32>
    %102 = vector.shape_cast %101 : vector<1x256xf32> to vector<1x256xf32>
    %103 = vector.broadcast %102 : vector<1x256xf32> to vector<16x256xf32>
    %104 = arith.cmpf ole, %37, %103 : vector<16x256xf32>
    %105 = arith.cmpf ogt, %46, %103 : vector<16x256xf32>
    %106 = arith.andi %104, %105 : vector<16x256xi1>
    %107 = arith.subf %103, %37 : vector<16x256xf32>
    %108 = arith.mulf %107, %61 : vector<16x256xf32>
    %109 = arith.addf %43, %108 : vector<16x256xf32>
    %cst_24 = arith.constant 0.000000e+00 : f32
    %110 = vector.broadcast %cst_24 : f32 to vector<16x256xf32>
    %111 = arith.select %106, %109, %110 : vector<16x256xi1>, vector<16x256xf32>
    %cst_25 = arith.constant dense<0.000000e+00> : vector<256xf32>
    %112 = vector.multi_reduction <add>, %111, %cst_25 [0] : vector<16x256xf32> to vector<256xf32>
    %113 = vector.shape_cast %112 : vector<256xf32> to vector<1x256xf32>
    %114 = vector.extract_strided_slice %2 {offsets = [4, 0], sizes = [1, 256], strides = [1, 1]} : vector<16x256xf32> to vector<1x256xf32>
    %115 = vector.shape_cast %114 : vector<1x256xf32> to vector<1x256xf32>
    %116 = vector.broadcast %115 : vector<1x256xf32> to vector<16x256xf32>
    %117 = arith.cmpf ole, %37, %116 : vector<16x256xf32>
    %118 = arith.cmpf ogt, %46, %116 : vector<16x256xf32>
    %119 = arith.andi %117, %118 : vector<16x256xi1>
    %120 = arith.subf %116, %37 : vector<16x256xf32>
    %121 = arith.mulf %120, %61 : vector<16x256xf32>
    %122 = arith.addf %43, %121 : vector<16x256xf32>
    %cst_26 = arith.constant 0.000000e+00 : f32
    %123 = vector.broadcast %cst_26 : f32 to vector<16x256xf32>
    %124 = arith.select %119, %122, %123 : vector<16x256xi1>, vector<16x256xf32>
    %cst_27 = arith.constant dense<0.000000e+00> : vector<256xf32>
    %125 = vector.multi_reduction <add>, %124, %cst_27 [0] : vector<16x256xf32> to vector<256xf32>
    %126 = vector.shape_cast %125 : vector<256xf32> to vector<1x256xf32>
    %127 = vector.extract_strided_slice %2 {offsets = [5, 0], sizes = [1, 256], strides = [1, 1]} : vector<16x256xf32> to vector<1x256xf32>
    %128 = vector.shape_cast %127 : vector<1x256xf32> to vector<1x256xf32>
    %129 = vector.broadcast %128 : vector<1x256xf32> to vector<16x256xf32>
    %130 = arith.cmpf ole, %37, %129 : vector<16x256xf32>
    %131 = arith.cmpf ogt, %46, %129 : vector<16x256xf32>
    %132 = arith.andi %130, %131 : vector<16x256xi1>
    %133 = arith.subf %129, %37 : vector<16x256xf32>
    %134 = arith.mulf %133, %61 : vector<16x256xf32>
    %135 = arith.addf %43, %134 : vector<16x256xf32>
    %cst_28 = arith.constant 0.000000e+00 : f32
    %136 = vector.broadcast %cst_28 : f32 to vector<16x256xf32>
    %137 = arith.select %132, %135, %136 : vector<16x256xi1>, vector<16x256xf32>
    %cst_29 = arith.constant dense<0.000000e+00> : vector<256xf32>
    %138 = vector.multi_reduction <add>, %137, %cst_29 [0] : vector<16x256xf32> to vector<256xf32>
    %139 = vector.shape_cast %138 : vector<256xf32> to vector<1x256xf32>
    %140 = vector.extract_strided_slice %2 {offsets = [6, 0], sizes = [1, 256], strides = [1, 1]} : vector<16x256xf32> to vector<1x256xf32>
    %141 = vector.shape_cast %140 : vector<1x256xf32> to vector<1x256xf32>
    %142 = vector.broadcast %141 : vector<1x256xf32> to vector<16x256xf32>
    %143 = arith.cmpf ole, %37, %142 : vector<16x256xf32>
    %144 = arith.cmpf ogt, %46, %142 : vector<16x256xf32>
    %145 = arith.andi %143, %144 : vector<16x256xi1>
    %146 = arith.subf %142, %37 : vector<16x256xf32>
    %147 = arith.mulf %146, %61 : vector<16x256xf32>
    %148 = arith.addf %43, %147 : vector<16x256xf32>
    %cst_30 = arith.constant 0.000000e+00 : f32
    %149 = vector.broadcast %cst_30 : f32 to vector<16x256xf32>
    %150 = arith.select %145, %148, %149 : vector<16x256xi1>, vector<16x256xf32>
    %cst_31 = arith.constant dense<0.000000e+00> : vector<256xf32>
    %151 = vector.multi_reduction <add>, %150, %cst_31 [0] : vector<16x256xf32> to vector<256xf32>
    %152 = vector.shape_cast %151 : vector<256xf32> to vector<1x256xf32>
    %153 = vector.extract_strided_slice %2 {offsets = [7, 0], sizes = [1, 256], strides = [1, 1]} : vector<16x256xf32> to vector<1x256xf32>
    %154 = vector.shape_cast %153 : vector<1x256xf32> to vector<1x256xf32>
    %155 = vector.broadcast %154 : vector<1x256xf32> to vector<16x256xf32>
    %156 = arith.cmpf ole, %37, %155 : vector<16x256xf32>
    %157 = arith.cmpf ogt, %46, %155 : vector<16x256xf32>
    %158 = arith.andi %156, %157 : vector<16x256xi1>
    %159 = arith.subf %155, %37 : vector<16x256xf32>
    %160 = arith.mulf %159, %61 : vector<16x256xf32>
    %161 = arith.addf %43, %160 : vector<16x256xf32>
    %cst_32 = arith.constant 0.000000e+00 : f32
    %162 = vector.broadcast %cst_32 : f32 to vector<16x256xf32>
    %163 = arith.select %158, %161, %162 : vector<16x256xi1>, vector<16x256xf32>
    %cst_33 = arith.constant dense<0.000000e+00> : vector<256xf32>
    %164 = vector.multi_reduction <add>, %163, %cst_33 [0] : vector<16x256xf32> to vector<256xf32>
    %165 = vector.shape_cast %164 : vector<256xf32> to vector<1x256xf32>
    %166 = vector.extract_strided_slice %2 {offsets = [8, 0], sizes = [1, 256], strides = [1, 1]} : vector<16x256xf32> to vector<1x256xf32>
    %167 = vector.shape_cast %166 : vector<1x256xf32> to vector<1x256xf32>
    %168 = vector.broadcast %167 : vector<1x256xf32> to vector<16x256xf32>
    %169 = arith.cmpf ole, %37, %168 : vector<16x256xf32>
    %170 = arith.cmpf ogt, %46, %168 : vector<16x256xf32>
    %171 = arith.andi %169, %170 : vector<16x256xi1>
    %172 = arith.subf %168, %37 : vector<16x256xf32>
    %173 = arith.mulf %172, %61 : vector<16x256xf32>
    %174 = arith.addf %43, %173 : vector<16x256xf32>
    %cst_34 = arith.constant 0.000000e+00 : f32
    %175 = vector.broadcast %cst_34 : f32 to vector<16x256xf32>
    %176 = arith.select %171, %174, %175 : vector<16x256xi1>, vector<16x256xf32>
    %cst_35 = arith.constant dense<0.000000e+00> : vector<256xf32>
    %177 = vector.multi_reduction <add>, %176, %cst_35 [0] : vector<16x256xf32> to vector<256xf32>
    %178 = vector.shape_cast %177 : vector<256xf32> to vector<1x256xf32>
    %179 = vector.extract_strided_slice %2 {offsets = [9, 0], sizes = [1, 256], strides = [1, 1]} : vector<16x256xf32> to vector<1x256xf32>
    %180 = vector.shape_cast %179 : vector<1x256xf32> to vector<1x256xf32>
    %181 = vector.broadcast %180 : vector<1x256xf32> to vector<16x256xf32>
    %182 = arith.cmpf ole, %37, %181 : vector<16x256xf32>
    %183 = arith.cmpf ogt, %46, %181 : vector<16x256xf32>
    %184 = arith.andi %182, %183 : vector<16x256xi1>
    %185 = arith.subf %181, %37 : vector<16x256xf32>
    %186 = arith.mulf %185, %61 : vector<16x256xf32>
    %187 = arith.addf %43, %186 : vector<16x256xf32>
    %cst_36 = arith.constant 0.000000e+00 : f32
    %188 = vector.broadcast %cst_36 : f32 to vector<16x256xf32>
    %189 = arith.select %184, %187, %188 : vector<16x256xi1>, vector<16x256xf32>
    %cst_37 = arith.constant dense<0.000000e+00> : vector<256xf32>
    %190 = vector.multi_reduction <add>, %189, %cst_37 [0] : vector<16x256xf32> to vector<256xf32>
    %191 = vector.shape_cast %190 : vector<256xf32> to vector<1x256xf32>
    %192 = vector.extract_strided_slice %2 {offsets = [10, 0], sizes = [1, 256], strides = [1, 1]} : vector<16x256xf32> to vector<1x256xf32>
    %193 = vector.shape_cast %192 : vector<1x256xf32> to vector<1x256xf32>
    %194 = vector.broadcast %193 : vector<1x256xf32> to vector<16x256xf32>
    %195 = arith.cmpf ole, %37, %194 : vector<16x256xf32>
    %196 = arith.cmpf ogt, %46, %194 : vector<16x256xf32>
    %197 = arith.andi %195, %196 : vector<16x256xi1>
    %198 = arith.subf %194, %37 : vector<16x256xf32>
    %199 = arith.mulf %198, %61 : vector<16x256xf32>
    %200 = arith.addf %43, %199 : vector<16x256xf32>
    %cst_38 = arith.constant 0.000000e+00 : f32
    %201 = vector.broadcast %cst_38 : f32 to vector<16x256xf32>
    %202 = arith.select %197, %200, %201 : vector<16x256xi1>, vector<16x256xf32>
    %cst_39 = arith.constant dense<0.000000e+00> : vector<256xf32>
    %203 = vector.multi_reduction <add>, %202, %cst_39 [0] : vector<16x256xf32> to vector<256xf32>
    %204 = vector.shape_cast %203 : vector<256xf32> to vector<1x256xf32>
    %205 = vector.extract_strided_slice %2 {offsets = [11, 0], sizes = [1, 256], strides = [1, 1]} : vector<16x256xf32> to vector<1x256xf32>
    %206 = vector.shape_cast %205 : vector<1x256xf32> to vector<1x256xf32>
    %207 = vector.broadcast %206 : vector<1x256xf32> to vector<16x256xf32>
    %208 = arith.cmpf ole, %37, %207 : vector<16x256xf32>
    %209 = arith.cmpf ogt, %46, %207 : vector<16x256xf32>
    %210 = arith.andi %208, %209 : vector<16x256xi1>
    %211 = arith.subf %207, %37 : vector<16x256xf32>
    %212 = arith.mulf %211, %61 : vector<16x256xf32>
    %213 = arith.addf %43, %212 : vector<16x256xf32>
    %cst_40 = arith.constant 0.000000e+00 : f32
    %214 = vector.broadcast %cst_40 : f32 to vector<16x256xf32>
    %215 = arith.select %210, %213, %214 : vector<16x256xi1>, vector<16x256xf32>
    %cst_41 = arith.constant dense<0.000000e+00> : vector<256xf32>
    %216 = vector.multi_reduction <add>, %215, %cst_41 [0] : vector<16x256xf32> to vector<256xf32>
    %217 = vector.shape_cast %216 : vector<256xf32> to vector<1x256xf32>
    %218 = vector.extract_strided_slice %2 {offsets = [12, 0], sizes = [1, 256], strides = [1, 1]} : vector<16x256xf32> to vector<1x256xf32>
    %219 = vector.shape_cast %218 : vector<1x256xf32> to vector<1x256xf32>
    %220 = vector.broadcast %219 : vector<1x256xf32> to vector<16x256xf32>
    %221 = arith.cmpf ole, %37, %220 : vector<16x256xf32>
    %222 = arith.cmpf ogt, %46, %220 : vector<16x256xf32>
    %223 = arith.andi %221, %222 : vector<16x256xi1>
    %224 = arith.subf %220, %37 : vector<16x256xf32>
    %225 = arith.mulf %224, %61 : vector<16x256xf32>
    %226 = arith.addf %43, %225 : vector<16x256xf32>
    %cst_42 = arith.constant 0.000000e+00 : f32
    %227 = vector.broadcast %cst_42 : f32 to vector<16x256xf32>
    %228 = arith.select %223, %226, %227 : vector<16x256xi1>, vector<16x256xf32>
    %cst_43 = arith.constant dense<0.000000e+00> : vector<256xf32>
    %229 = vector.multi_reduction <add>, %228, %cst_43 [0] : vector<16x256xf32> to vector<256xf32>
    %230 = vector.shape_cast %229 : vector<256xf32> to vector<1x256xf32>
    %231 = vector.extract_strided_slice %2 {offsets = [13, 0], sizes = [1, 256], strides = [1, 1]} : vector<16x256xf32> to vector<1x256xf32>
    %232 = vector.shape_cast %231 : vector<1x256xf32> to vector<1x256xf32>
    %233 = vector.broadcast %232 : vector<1x256xf32> to vector<16x256xf32>
    %234 = arith.cmpf ole, %37, %233 : vector<16x256xf32>
    %235 = arith.cmpf ogt, %46, %233 : vector<16x256xf32>
    %236 = arith.andi %234, %235 : vector<16x256xi1>
    %237 = arith.subf %233, %37 : vector<16x256xf32>
    %238 = arith.mulf %237, %61 : vector<16x256xf32>
    %239 = arith.addf %43, %238 : vector<16x256xf32>
    %cst_44 = arith.constant 0.000000e+00 : f32
    %240 = vector.broadcast %cst_44 : f32 to vector<16x256xf32>
    %241 = arith.select %236, %239, %240 : vector<16x256xi1>, vector<16x256xf32>
    %cst_45 = arith.constant dense<0.000000e+00> : vector<256xf32>
    %242 = vector.multi_reduction <add>, %241, %cst_45 [0] : vector<16x256xf32> to vector<256xf32>
    %243 = vector.shape_cast %242 : vector<256xf32> to vector<1x256xf32>
    %244 = vector.extract_strided_slice %2 {offsets = [14, 0], sizes = [1, 256], strides = [1, 1]} : vector<16x256xf32> to vector<1x256xf32>
    %245 = vector.shape_cast %244 : vector<1x256xf32> to vector<1x256xf32>
    %246 = vector.broadcast %245 : vector<1x256xf32> to vector<16x256xf32>
    %247 = arith.cmpf ole, %37, %246 : vector<16x256xf32>
    %248 = arith.cmpf ogt, %46, %246 : vector<16x256xf32>
    %249 = arith.andi %247, %248 : vector<16x256xi1>
    %250 = arith.subf %246, %37 : vector<16x256xf32>
    %251 = arith.mulf %250, %61 : vector<16x256xf32>
    %252 = arith.addf %43, %251 : vector<16x256xf32>
    %cst_46 = arith.constant 0.000000e+00 : f32
    %253 = vector.broadcast %cst_46 : f32 to vector<16x256xf32>
    %254 = arith.select %249, %252, %253 : vector<16x256xi1>, vector<16x256xf32>
    %cst_47 = arith.constant dense<0.000000e+00> : vector<256xf32>
    %255 = vector.multi_reduction <add>, %254, %cst_47 [0] : vector<16x256xf32> to vector<256xf32>
    %256 = vector.shape_cast %255 : vector<256xf32> to vector<1x256xf32>
    %257 = vector.extract_strided_slice %2 {offsets = [15, 0], sizes = [1, 256], strides = [1, 1]} : vector<16x256xf32> to vector<1x256xf32>
    %258 = vector.shape_cast %257 : vector<1x256xf32> to vector<1x256xf32>
    %259 = vector.broadcast %258 : vector<1x256xf32> to vector<16x256xf32>
    %260 = arith.cmpf ole, %37, %259 : vector<16x256xf32>
    %261 = arith.cmpf ogt, %46, %259 : vector<16x256xf32>
    %262 = arith.andi %260, %261 : vector<16x256xi1>
    %263 = arith.subf %259, %37 : vector<16x256xf32>
    %264 = arith.mulf %263, %61 : vector<16x256xf32>
    %265 = arith.addf %43, %264 : vector<16x256xf32>
    %cst_48 = arith.constant 0.000000e+00 : f32
    %266 = vector.broadcast %cst_48 : f32 to vector<16x256xf32>
    %267 = arith.select %262, %265, %266 : vector<16x256xi1>, vector<16x256xf32>
    %cst_49 = arith.constant dense<0.000000e+00> : vector<256xf32>
    %268 = vector.multi_reduction <add>, %267, %cst_49 [0] : vector<16x256xf32> to vector<256xf32>
    %269 = vector.shape_cast %268 : vector<256xf32> to vector<1x256xf32>
    %270 = tpu.concatenate %74, %87, %100, %113, %126, %139, %152, %165, %178, %191, %204, %217, %230, %243, %256, %269 in 0 : vector<1x256xf32>, vector<1x256xf32>, vector<1x256xf32>, vector<1x256xf32>, vector<1x256xf32>, vector<1x256xf32>, vector<1x256xf32>, vector<1x256xf32>, vector<1x256xf32>, vector<1x256xf32>, vector<1x256xf32>, vector<1x256xf32>, vector<1x256xf32>, vector<1x256xf32>, vector<1x256xf32>, vector<1x256xf32> -> vector<16x256xf32>
    %271 = tpu.iota {dimensions = array<i32: 0>} : vector<16x256xi32>
    %c2_i32 = arith.constant 2 : i32
    %272 = vector.broadcast %c2_i32 : i32 to vector<16x256xi32>
    %273 = arith.andi %271, %272 : vector<16x256xi32>
    %c0_i32 = arith.constant 0 : i32
    %274 = vector.broadcast %c0_i32 : i32 to vector<16x256xi32>
    %275 = arith.cmpi eq, %273, %274 : vector<16x256xi32>
    %cst_50 = arith.constant dense<true> : vector<16x256xi1>
    %276 = arith.xori %275, %cst_50 : vector<16x256xi1>
    %c1_i32_51 = arith.constant 1 : i32
    %277 = vector.broadcast %c1_i32_51 : i32 to vector<16x256xi32>
    %278 = arith.andi %271, %277 : vector<16x256xi32>
    %c0_i32_52 = arith.constant 0 : i32
    %279 = vector.broadcast %c0_i32_52 : i32 to vector<16x256xi32>
    %280 = arith.cmpi eq, %278, %279 : vector<16x256xi32>
    %281 = vector.extract_strided_slice %270 {offsets = [1, 0], sizes = [15, 256], strides = [1, 1]} : vector<16x256xf32> to vector<15x256xf32>
    %282 = vector.extract_strided_slice %270 {offsets = [0, 0], sizes = [1, 256], strides = [1, 1]} : vector<16x256xf32> to vector<1x256xf32>
    %283 = tpu.concatenate %281, %282 in 0 : vector<15x256xf32>, vector<1x256xf32> -> vector<16x256xf32>
    %284 = vector.extract_strided_slice %270 {offsets = [15, 0], sizes = [1, 256], strides = [1, 1]} : vector<16x256xf32> to vector<1x256xf32>
    %285 = vector.extract_strided_slice %270 {offsets = [0, 0], sizes = [15, 256], strides = [1, 1]} : vector<16x256xf32> to vector<15x256xf32>
    %286 = tpu.concatenate %284, %285 in 0 : vector<1x256xf32>, vector<15x256xf32> -> vector<16x256xf32>
    %287 = arith.select %280, %283, %286 : vector<16x256xi1>, vector<16x256xf32>
    %288 = arith.xori %280, %276 : vector<16x256xi1>
    %cst_53 = arith.constant dense<true> : vector<16x256xi1>
    %289 = arith.xori %288, %cst_53 : vector<16x256xi1>
    %290 = arith.minimumf %270, %287 : vector<16x256xf32>
    %291 = arith.maximumf %270, %287 : vector<16x256xf32>
    %292 = arith.select %289, %290, %291 : vector<16x256xi1>, vector<16x256xf32>
    %c4_i32 = arith.constant 4 : i32
    %293 = vector.broadcast %c4_i32 : i32 to vector<16x256xi32>
    %294 = arith.andi %271, %293 : vector<16x256xi32>
    %c0_i32_54 = arith.constant 0 : i32
    %295 = vector.broadcast %c0_i32_54 : i32 to vector<16x256xi32>
    %296 = arith.cmpi eq, %294, %295 : vector<16x256xi32>
    %cst_55 = arith.constant dense<true> : vector<16x256xi1>
    %297 = arith.xori %296, %cst_55 : vector<16x256xi1>
    %c2_i32_56 = arith.constant 2 : i32
    %298 = vector.broadcast %c2_i32_56 : i32 to vector<16x256xi32>
    %299 = arith.andi %271, %298 : vector<16x256xi32>
    %c0_i32_57 = arith.constant 0 : i32
    %300 = vector.broadcast %c0_i32_57 : i32 to vector<16x256xi32>
    %301 = arith.cmpi eq, %299, %300 : vector<16x256xi32>
    %302 = vector.extract_strided_slice %292 {offsets = [2, 0], sizes = [14, 256], strides = [1, 1]} : vector<16x256xf32> to vector<14x256xf32>
    %303 = vector.extract_strided_slice %292 {offsets = [0, 0], sizes = [2, 256], strides = [1, 1]} : vector<16x256xf32> to vector<2x256xf32>
    %304 = tpu.concatenate %302, %303 in 0 : vector<14x256xf32>, vector<2x256xf32> -> vector<16x256xf32>
    %305 = vector.extract_strided_slice %292 {offsets = [14, 0], sizes = [2, 256], strides = [1, 1]} : vector<16x256xf32> to vector<2x256xf32>
    %306 = vector.extract_strided_slice %292 {offsets = [0, 0], sizes = [14, 256], strides = [1, 1]} : vector<16x256xf32> to vector<14x256xf32>
    %307 = tpu.concatenate %305, %306 in 0 : vector<2x256xf32>, vector<14x256xf32> -> vector<16x256xf32>
    %308 = arith.select %301, %304, %307 : vector<16x256xi1>, vector<16x256xf32>
    %309 = arith.xori %301, %297 : vector<16x256xi1>
    %cst_58 = arith.constant dense<true> : vector<16x256xi1>
    %310 = arith.xori %309, %cst_58 : vector<16x256xi1>
    %311 = arith.minimumf %292, %308 : vector<16x256xf32>
    %312 = arith.maximumf %292, %308 : vector<16x256xf32>
    %313 = arith.select %310, %311, %312 : vector<16x256xi1>, vector<16x256xf32>
    %c1_i32_59 = arith.constant 1 : i32
    %314 = vector.broadcast %c1_i32_59 : i32 to vector<16x256xi32>
    %315 = arith.andi %271, %314 : vector<16x256xi32>
    %c0_i32_60 = arith.constant 0 : i32
    %316 = vector.broadcast %c0_i32_60 : i32 to vector<16x256xi32>
    %317 = arith.cmpi eq, %315, %316 : vector<16x256xi32>
    %318 = vector.extract_strided_slice %313 {offsets = [1, 0], sizes = [15, 256], strides = [1, 1]} : vector<16x256xf32> to vector<15x256xf32>
    %319 = vector.extract_strided_slice %313 {offsets = [0, 0], sizes = [1, 256], strides = [1, 1]} : vector<16x256xf32> to vector<1x256xf32>
    %320 = tpu.concatenate %318, %319 in 0 : vector<15x256xf32>, vector<1x256xf32> -> vector<16x256xf32>
    %321 = vector.extract_strided_slice %313 {offsets = [15, 0], sizes = [1, 256], strides = [1, 1]} : vector<16x256xf32> to vector<1x256xf32>
    %322 = vector.extract_strided_slice %313 {offsets = [0, 0], sizes = [15, 256], strides = [1, 1]} : vector<16x256xf32> to vector<15x256xf32>
    %323 = tpu.concatenate %321, %322 in 0 : vector<1x256xf32>, vector<15x256xf32> -> vector<16x256xf32>
    %324 = arith.select %317, %320, %323 : vector<16x256xi1>, vector<16x256xf32>
    %325 = arith.xori %317, %297 : vector<16x256xi1>
    %cst_61 = arith.constant dense<true> : vector<16x256xi1>
    %326 = arith.xori %325, %cst_61 : vector<16x256xi1>
    %327 = arith.minimumf %313, %324 : vector<16x256xf32>
    %328 = arith.maximumf %313, %324 : vector<16x256xf32>
    %329 = arith.select %326, %327, %328 : vector<16x256xi1>, vector<16x256xf32>
    %c8_i32 = arith.constant 8 : i32
    %330 = vector.broadcast %c8_i32 : i32 to vector<16x256xi32>
    %331 = arith.andi %271, %330 : vector<16x256xi32>
    %c0_i32_62 = arith.constant 0 : i32
    %332 = vector.broadcast %c0_i32_62 : i32 to vector<16x256xi32>
    %333 = arith.cmpi eq, %331, %332 : vector<16x256xi32>
    %cst_63 = arith.constant dense<true> : vector<16x256xi1>
    %334 = arith.xori %333, %cst_63 : vector<16x256xi1>
    %c4_i32_64 = arith.constant 4 : i32
    %335 = vector.broadcast %c4_i32_64 : i32 to vector<16x256xi32>
    %336 = arith.andi %271, %335 : vector<16x256xi32>
    %c0_i32_65 = arith.constant 0 : i32
    %337 = vector.broadcast %c0_i32_65 : i32 to vector<16x256xi32>
    %338 = arith.cmpi eq, %336, %337 : vector<16x256xi32>
    %339 = vector.extract_strided_slice %329 {offsets = [4, 0], sizes = [12, 256], strides = [1, 1]} : vector<16x256xf32> to vector<12x256xf32>
    %340 = vector.extract_strided_slice %329 {offsets = [0, 0], sizes = [4, 256], strides = [1, 1]} : vector<16x256xf32> to vector<4x256xf32>
    %341 = tpu.concatenate %339, %340 in 0 : vector<12x256xf32>, vector<4x256xf32> -> vector<16x256xf32>
    %342 = vector.extract_strided_slice %329 {offsets = [12, 0], sizes = [4, 256], strides = [1, 1]} : vector<16x256xf32> to vector<4x256xf32>
    %343 = vector.extract_strided_slice %329 {offsets = [0, 0], sizes = [12, 256], strides = [1, 1]} : vector<16x256xf32> to vector<12x256xf32>
    %344 = tpu.concatenate %342, %343 in 0 : vector<4x256xf32>, vector<12x256xf32> -> vector<16x256xf32>
    %345 = arith.select %338, %341, %344 : vector<16x256xi1>, vector<16x256xf32>
    %346 = arith.xori %338, %334 : vector<16x256xi1>
    %cst_66 = arith.constant dense<true> : vector<16x256xi1>
    %347 = arith.xori %346, %cst_66 : vector<16x256xi1>
    %348 = arith.minimumf %329, %345 : vector<16x256xf32>
    %349 = arith.maximumf %329, %345 : vector<16x256xf32>
    %350 = arith.select %347, %348, %349 : vector<16x256xi1>, vector<16x256xf32>
    %c2_i32_67 = arith.constant 2 : i32
    %351 = vector.broadcast %c2_i32_67 : i32 to vector<16x256xi32>
    %352 = arith.andi %271, %351 : vector<16x256xi32>
    %c0_i32_68 = arith.constant 0 : i32
    %353 = vector.broadcast %c0_i32_68 : i32 to vector<16x256xi32>
    %354 = arith.cmpi eq, %352, %353 : vector<16x256xi32>
    %355 = vector.extract_strided_slice %350 {offsets = [2, 0], sizes = [14, 256], strides = [1, 1]} : vector<16x256xf32> to vector<14x256xf32>
    %356 = vector.extract_strided_slice %350 {offsets = [0, 0], sizes = [2, 256], strides = [1, 1]} : vector<16x256xf32> to vector<2x256xf32>
    %357 = tpu.concatenate %355, %356 in 0 : vector<14x256xf32>, vector<2x256xf32> -> vector<16x256xf32>
    %358 = vector.extract_strided_slice %350 {offsets = [14, 0], sizes = [2, 256], strides = [1, 1]} : vector<16x256xf32> to vector<2x256xf32>
    %359 = vector.extract_strided_slice %350 {offsets = [0, 0], sizes = [14, 256], strides = [1, 1]} : vector<16x256xf32> to vector<14x256xf32>
    %360 = tpu.concatenate %358, %359 in 0 : vector<2x256xf32>, vector<14x256xf32> -> vector<16x256xf32>
    %361 = arith.select %354, %357, %360 : vector<16x256xi1>, vector<16x256xf32>
    %362 = arith.xori %354, %334 : vector<16x256xi1>
    %cst_69 = arith.constant dense<true> : vector<16x256xi1>
    %363 = arith.xori %362, %cst_69 : vector<16x256xi1>
    %364 = arith.minimumf %350, %361 : vector<16x256xf32>
    %365 = arith.maximumf %350, %361 : vector<16x256xf32>
    %366 = arith.select %363, %364, %365 : vector<16x256xi1>, vector<16x256xf32>
    %c1_i32_70 = arith.constant 1 : i32
    %367 = vector.broadcast %c1_i32_70 : i32 to vector<16x256xi32>
    %368 = arith.andi %271, %367 : vector<16x256xi32>
    %c0_i32_71 = arith.constant 0 : i32
    %369 = vector.broadcast %c0_i32_71 : i32 to vector<16x256xi32>
    %370 = arith.cmpi eq, %368, %369 : vector<16x256xi32>
    %371 = vector.extract_strided_slice %366 {offsets = [1, 0], sizes = [15, 256], strides = [1, 1]} : vector<16x256xf32> to vector<15x256xf32>
    %372 = vector.extract_strided_slice %366 {offsets = [0, 0], sizes = [1, 256], strides = [1, 1]} : vector<16x256xf32> to vector<1x256xf32>
    %373 = tpu.concatenate %371, %372 in 0 : vector<15x256xf32>, vector<1x256xf32> -> vector<16x256xf32>
    %374 = vector.extract_strided_slice %366 {offsets = [15, 0], sizes = [1, 256], strides = [1, 1]} : vector<16x256xf32> to vector<1x256xf32>
    %375 = vector.extract_strided_slice %366 {offsets = [0, 0], sizes = [15, 256], strides = [1, 1]} : vector<16x256xf32> to vector<15x256xf32>
    %376 = tpu.concatenate %374, %375 in 0 : vector<1x256xf32>, vector<15x256xf32> -> vector<16x256xf32>
    %377 = arith.select %370, %373, %376 : vector<16x256xi1>, vector<16x256xf32>
    %378 = arith.xori %370, %334 : vector<16x256xi1>
    %cst_72 = arith.constant dense<true> : vector<16x256xi1>
    %379 = arith.xori %378, %cst_72 : vector<16x256xi1>
    %380 = arith.minimumf %366, %377 : vector<16x256xf32>
    %381 = arith.maximumf %366, %377 : vector<16x256xf32>
    %382 = arith.select %379, %380, %381 : vector<16x256xi1>, vector<16x256xf32>
    %c16_i32 = arith.constant 16 : i32
    %383 = vector.broadcast %c16_i32 : i32 to vector<16x256xi32>
    %384 = arith.andi %271, %383 : vector<16x256xi32>
    %c0_i32_73 = arith.constant 0 : i32
    %385 = vector.broadcast %c0_i32_73 : i32 to vector<16x256xi32>
    %386 = arith.cmpi eq, %384, %385 : vector<16x256xi32>
    %cst_74 = arith.constant dense<true> : vector<16x256xi1>
    %387 = arith.xori %386, %cst_74 : vector<16x256xi1>
    %c8_i32_75 = arith.constant 8 : i32
    %388 = vector.broadcast %c8_i32_75 : i32 to vector<16x256xi32>
    %389 = arith.andi %271, %388 : vector<16x256xi32>
    %c0_i32_76 = arith.constant 0 : i32
    %390 = vector.broadcast %c0_i32_76 : i32 to vector<16x256xi32>
    %391 = arith.cmpi eq, %389, %390 : vector<16x256xi32>
    %392 = vector.extract_strided_slice %382 {offsets = [8, 0], sizes = [8, 256], strides = [1, 1]} : vector<16x256xf32> to vector<8x256xf32>
    %393 = vector.extract_strided_slice %382 {offsets = [0, 0], sizes = [8, 256], strides = [1, 1]} : vector<16x256xf32> to vector<8x256xf32>
    %394 = tpu.concatenate %392, %393 in 0 : vector<8x256xf32>, vector<8x256xf32> -> vector<16x256xf32>
    %395 = vector.extract_strided_slice %382 {offsets = [8, 0], sizes = [8, 256], strides = [1, 1]} : vector<16x256xf32> to vector<8x256xf32>
    %396 = vector.extract_strided_slice %382 {offsets = [0, 0], sizes = [8, 256], strides = [1, 1]} : vector<16x256xf32> to vector<8x256xf32>
    %397 = tpu.concatenate %395, %396 in 0 : vector<8x256xf32>, vector<8x256xf32> -> vector<16x256xf32>
    %398 = arith.select %391, %394, %397 : vector<16x256xi1>, vector<16x256xf32>
    %399 = arith.xori %391, %387 : vector<16x256xi1>
    %cst_77 = arith.constant dense<true> : vector<16x256xi1>
    %400 = arith.xori %399, %cst_77 : vector<16x256xi1>
    %401 = arith.minimumf %382, %398 : vector<16x256xf32>
    %402 = arith.maximumf %382, %398 : vector<16x256xf32>
    %403 = arith.select %400, %401, %402 : vector<16x256xi1>, vector<16x256xf32>
    %c4_i32_78 = arith.constant 4 : i32
    %404 = vector.broadcast %c4_i32_78 : i32 to vector<16x256xi32>
    %405 = arith.andi %271, %404 : vector<16x256xi32>
    %c0_i32_79 = arith.constant 0 : i32
    %406 = vector.broadcast %c0_i32_79 : i32 to vector<16x256xi32>
    %407 = arith.cmpi eq, %405, %406 : vector<16x256xi32>
    %408 = vector.extract_strided_slice %403 {offsets = [4, 0], sizes = [12, 256], strides = [1, 1]} : vector<16x256xf32> to vector<12x256xf32>
    %409 = vector.extract_strided_slice %403 {offsets = [0, 0], sizes = [4, 256], strides = [1, 1]} : vector<16x256xf32> to vector<4x256xf32>
    %410 = tpu.concatenate %408, %409 in 0 : vector<12x256xf32>, vector<4x256xf32> -> vector<16x256xf32>
    %411 = vector.extract_strided_slice %403 {offsets = [12, 0], sizes = [4, 256], strides = [1, 1]} : vector<16x256xf32> to vector<4x256xf32>
    %412 = vector.extract_strided_slice %403 {offsets = [0, 0], sizes = [12, 256], strides = [1, 1]} : vector<16x256xf32> to vector<12x256xf32>
    %413 = tpu.concatenate %411, %412 in 0 : vector<4x256xf32>, vector<12x256xf32> -> vector<16x256xf32>
    %414 = arith.select %407, %410, %413 : vector<16x256xi1>, vector<16x256xf32>
    %415 = arith.xori %407, %387 : vector<16x256xi1>
    %cst_80 = arith.constant dense<true> : vector<16x256xi1>
    %416 = arith.xori %415, %cst_80 : vector<16x256xi1>
    %417 = arith.minimumf %403, %414 : vector<16x256xf32>
    %418 = arith.maximumf %403, %414 : vector<16x256xf32>
    %419 = arith.select %416, %417, %418 : vector<16x256xi1>, vector<16x256xf32>
    %c2_i32_81 = arith.constant 2 : i32
    %420 = vector.broadcast %c2_i32_81 : i32 to vector<16x256xi32>
    %421 = arith.andi %271, %420 : vector<16x256xi32>
    %c0_i32_82 = arith.constant 0 : i32
    %422 = vector.broadcast %c0_i32_82 : i32 to vector<16x256xi32>
    %423 = arith.cmpi eq, %421, %422 : vector<16x256xi32>
    %424 = vector.extract_strided_slice %419 {offsets = [2, 0], sizes = [14, 256], strides = [1, 1]} : vector<16x256xf32> to vector<14x256xf32>
    %425 = vector.extract_strided_slice %419 {offsets = [0, 0], sizes = [2, 256], strides = [1, 1]} : vector<16x256xf32> to vector<2x256xf32>
    %426 = tpu.concatenate %424, %425 in 0 : vector<14x256xf32>, vector<2x256xf32> -> vector<16x256xf32>
    %427 = vector.extract_strided_slice %419 {offsets = [14, 0], sizes = [2, 256], strides = [1, 1]} : vector<16x256xf32> to vector<2x256xf32>
    %428 = vector.extract_strided_slice %419 {offsets = [0, 0], sizes = [14, 256], strides = [1, 1]} : vector<16x256xf32> to vector<14x256xf32>
    %429 = tpu.concatenate %427, %428 in 0 : vector<2x256xf32>, vector<14x256xf32> -> vector<16x256xf32>
    %430 = arith.select %423, %426, %429 : vector<16x256xi1>, vector<16x256xf32>
    %431 = arith.xori %423, %387 : vector<16x256xi1>
    %cst_83 = arith.constant dense<true> : vector<16x256xi1>
    %432 = arith.xori %431, %cst_83 : vector<16x256xi1>
    %433 = arith.minimumf %419, %430 : vector<16x256xf32>
    %434 = arith.maximumf %419, %430 : vector<16x256xf32>
    %435 = arith.select %432, %433, %434 : vector<16x256xi1>, vector<16x256xf32>
    %c1_i32_84 = arith.constant 1 : i32
    %436 = vector.broadcast %c1_i32_84 : i32 to vector<16x256xi32>
    %437 = arith.andi %271, %436 : vector<16x256xi32>
    %c0_i32_85 = arith.constant 0 : i32
    %438 = vector.broadcast %c0_i32_85 : i32 to vector<16x256xi32>
    %439 = arith.cmpi eq, %437, %438 : vector<16x256xi32>
    %440 = vector.extract_strided_slice %435 {offsets = [1, 0], sizes = [15, 256], strides = [1, 1]} : vector<16x256xf32> to vector<15x256xf32>
    %441 = vector.extract_strided_slice %435 {offsets = [0, 0], sizes = [1, 256], strides = [1, 1]} : vector<16x256xf32> to vector<1x256xf32>
    %442 = tpu.concatenate %440, %441 in 0 : vector<15x256xf32>, vector<1x256xf32> -> vector<16x256xf32>
    %443 = vector.extract_strided_slice %435 {offsets = [15, 0], sizes = [1, 256], strides = [1, 1]} : vector<16x256xf32> to vector<1x256xf32>
    %444 = vector.extract_strided_slice %435 {offsets = [0, 0], sizes = [15, 256], strides = [1, 1]} : vector<16x256xf32> to vector<15x256xf32>
    %445 = tpu.concatenate %443, %444 in 0 : vector<1x256xf32>, vector<15x256xf32> -> vector<16x256xf32>
    %446 = arith.select %439, %442, %445 : vector<16x256xi1>, vector<16x256xf32>
    %447 = arith.xori %439, %387 : vector<16x256xi1>
    %cst_86 = arith.constant dense<true> : vector<16x256xi1>
    %448 = arith.xori %447, %cst_86 : vector<16x256xi1>
    %449 = arith.minimumf %435, %446 : vector<16x256xf32>
    %450 = arith.maximumf %435, %446 : vector<16x256xf32>
    %451 = arith.select %448, %449, %450 : vector<16x256xi1>, vector<16x256xf32>
    %452 = tpu.concatenate %0, %451 in 0 : vector<16x256xf32>, vector<16x256xf32> -> vector<32x256xf32>
    %453 = tpu.iota {dimensions = array<i32: 0>} : vector<32x256xi32>
    %c16_i32_87 = arith.constant 16 : i32
    %454 = vector.broadcast %c16_i32_87 : i32 to vector<32x256xi32>
    %455 = arith.andi %453, %454 : vector<32x256xi32>
    %c0_i32_88 = arith.constant 0 : i32
    %456 = vector.broadcast %c0_i32_88 : i32 to vector<32x256xi32>
    %457 = arith.cmpi eq, %455, %456 : vector<32x256xi32>
    %458 = vector.extract_strided_slice %452 {offsets = [16, 0], sizes = [16, 256], strides = [1, 1]} : vector<32x256xf32> to vector<16x256xf32>
    %459 = vector.extract_strided_slice %452 {offsets = [0, 0], sizes = [16, 256], strides = [1, 1]} : vector<32x256xf32> to vector<16x256xf32>
    %460 = tpu.concatenate %458, %459 in 0 : vector<16x256xf32>, vector<16x256xf32> -> vector<32x256xf32>
    %461 = vector.extract_strided_slice %452 {offsets = [16, 0], sizes = [16, 256], strides = [1, 1]} : vector<32x256xf32> to vector<16x256xf32>
    %462 = vector.extract_strided_slice %452 {offsets = [0, 0], sizes = [16, 256], strides = [1, 1]} : vector<32x256xf32> to vector<16x256xf32>
    %463 = tpu.concatenate %461, %462 in 0 : vector<16x256xf32>, vector<16x256xf32> -> vector<32x256xf32>
    %464 = arith.select %457, %460, %463 : vector<32x256xi1>, vector<32x256xf32>
    %465 = arith.minimumf %452, %464 : vector<32x256xf32>
    %466 = arith.maximumf %452, %464 : vector<32x256xf32>
    %467 = arith.select %457, %465, %466 : vector<32x256xi1>, vector<32x256xf32>
    %c8_i32_89 = arith.constant 8 : i32
    %468 = vector.broadcast %c8_i32_89 : i32 to vector<32x256xi32>
    %469 = arith.andi %453, %468 : vector<32x256xi32>
    %c0_i32_90 = arith.constant 0 : i32
    %470 = vector.broadcast %c0_i32_90 : i32 to vector<32x256xi32>
    %471 = arith.cmpi eq, %469, %470 : vector<32x256xi32>
    %472 = vector.extract_strided_slice %467 {offsets = [8, 0], sizes = [24, 256], strides = [1, 1]} : vector<32x256xf32> to vector<24x256xf32>
    %473 = vector.extract_strided_slice %467 {offsets = [0, 0], sizes = [8, 256], strides = [1, 1]} : vector<32x256xf32> to vector<8x256xf32>
    %474 = tpu.concatenate %472, %473 in 0 : vector<24x256xf32>, vector<8x256xf32> -> vector<32x256xf32>
    %475 = vector.extract_strided_slice %467 {offsets = [24, 0], sizes = [8, 256], strides = [1, 1]} : vector<32x256xf32> to vector<8x256xf32>
    %476 = vector.extract_strided_slice %467 {offsets = [0, 0], sizes = [24, 256], strides = [1, 1]} : vector<32x256xf32> to vector<24x256xf32>
    %477 = tpu.concatenate %475, %476 in 0 : vector<8x256xf32>, vector<24x256xf32> -> vector<32x256xf32>
    %478 = arith.select %471, %474, %477 : vector<32x256xi1>, vector<32x256xf32>
    %479 = arith.minimumf %467, %478 : vector<32x256xf32>
    %480 = arith.maximumf %467, %478 : vector<32x256xf32>
    %481 = arith.select %471, %479, %480 : vector<32x256xi1>, vector<32x256xf32>
    %c4_i32_91 = arith.constant 4 : i32
    %482 = vector.broadcast %c4_i32_91 : i32 to vector<32x256xi32>
    %483 = arith.andi %453, %482 : vector<32x256xi32>
    %c0_i32_92 = arith.constant 0 : i32
    %484 = vector.broadcast %c0_i32_92 : i32 to vector<32x256xi32>
    %485 = arith.cmpi eq, %483, %484 : vector<32x256xi32>
    %486 = vector.extract_strided_slice %481 {offsets = [4, 0], sizes = [28, 256], strides = [1, 1]} : vector<32x256xf32> to vector<28x256xf32>
    %487 = vector.extract_strided_slice %481 {offsets = [0, 0], sizes = [4, 256], strides = [1, 1]} : vector<32x256xf32> to vector<4x256xf32>
    %488 = tpu.concatenate %486, %487 in 0 : vector<28x256xf32>, vector<4x256xf32> -> vector<32x256xf32>
    %489 = vector.extract_strided_slice %481 {offsets = [28, 0], sizes = [4, 256], strides = [1, 1]} : vector<32x256xf32> to vector<4x256xf32>
    %490 = vector.extract_strided_slice %481 {offsets = [0, 0], sizes = [28, 256], strides = [1, 1]} : vector<32x256xf32> to vector<28x256xf32>
    %491 = tpu.concatenate %489, %490 in 0 : vector<4x256xf32>, vector<28x256xf32> -> vector<32x256xf32>
    %492 = arith.select %485, %488, %491 : vector<32x256xi1>, vector<32x256xf32>
    %493 = arith.minimumf %481, %492 : vector<32x256xf32>
    %494 = arith.maximumf %481, %492 : vector<32x256xf32>
    %495 = arith.select %485, %493, %494 : vector<32x256xi1>, vector<32x256xf32>
    %c2_i32_93 = arith.constant 2 : i32
    %496 = vector.broadcast %c2_i32_93 : i32 to vector<32x256xi32>
    %497 = arith.andi %453, %496 : vector<32x256xi32>
    %c0_i32_94 = arith.constant 0 : i32
    %498 = vector.broadcast %c0_i32_94 : i32 to vector<32x256xi32>
    %499 = arith.cmpi eq, %497, %498 : vector<32x256xi32>
    %500 = vector.extract_strided_slice %495 {offsets = [2, 0], sizes = [30, 256], strides = [1, 1]} : vector<32x256xf32> to vector<30x256xf32>
    %501 = vector.extract_strided_slice %495 {offsets = [0, 0], sizes = [2, 256], strides = [1, 1]} : vector<32x256xf32> to vector<2x256xf32>
    %502 = tpu.concatenate %500, %501 in 0 : vector<30x256xf32>, vector<2x256xf32> -> vector<32x256xf32>
    %503 = vector.extract_strided_slice %495 {offsets = [30, 0], sizes = [2, 256], strides = [1, 1]} : vector<32x256xf32> to vector<2x256xf32>
    %504 = vector.extract_strided_slice %495 {offsets = [0, 0], sizes = [30, 256], strides = [1, 1]} : vector<32x256xf32> to vector<30x256xf32>
    %505 = tpu.concatenate %503, %504 in 0 : vector<2x256xf32>, vector<30x256xf32> -> vector<32x256xf32>
    %506 = arith.select %499, %502, %505 : vector<32x256xi1>, vector<32x256xf32>
    %507 = arith.minimumf %495, %506 : vector<32x256xf32>
    %508 = arith.maximumf %495, %506 : vector<32x256xf32>
    %509 = arith.select %499, %507, %508 : vector<32x256xi1>, vector<32x256xf32>
    %c1_i32_95 = arith.constant 1 : i32
    %510 = vector.broadcast %c1_i32_95 : i32 to vector<32x256xi32>
    %511 = arith.andi %453, %510 : vector<32x256xi32>
    %c0_i32_96 = arith.constant 0 : i32
    %512 = vector.broadcast %c0_i32_96 : i32 to vector<32x256xi32>
    %513 = arith.cmpi eq, %511, %512 : vector<32x256xi32>
    %514 = vector.extract_strided_slice %509 {offsets = [1, 0], sizes = [31, 256], strides = [1, 1]} : vector<32x256xf32> to vector<31x256xf32>
    %515 = vector.extract_strided_slice %509 {offsets = [0, 0], sizes = [1, 256], strides = [1, 1]} : vector<32x256xf32> to vector<1x256xf32>
    %516 = tpu.concatenate %514, %515 in 0 : vector<31x256xf32>, vector<1x256xf32> -> vector<32x256xf32>
    %517 = vector.extract_strided_slice %509 {offsets = [31, 0], sizes = [1, 256], strides = [1, 1]} : vector<32x256xf32> to vector<1x256xf32>
    %518 = vector.extract_strided_slice %509 {offsets = [0, 0], sizes = [31, 256], strides = [1, 1]} : vector<32x256xf32> to vector<31x256xf32>
    %519 = tpu.concatenate %517, %518 in 0 : vector<1x256xf32>, vector<31x256xf32> -> vector<32x256xf32>
    %520 = arith.select %513, %516, %519 : vector<32x256xi1>, vector<32x256xf32>
    %521 = arith.minimumf %509, %520 : vector<32x256xf32>
    %522 = arith.maximumf %509, %520 : vector<32x256xf32>
    %523 = arith.select %513, %521, %522 : vector<32x256xi1>, vector<32x256xf32>
    %c0_97 = arith.constant 0 : index
    %c0_98 = arith.constant 0 : index
    %524 = vector.load %arg6[%c0_97, %c0_98] : memref<32x256xf32, #tpu.memory_space<vmem>>, vector<32x256xf32>
    tpu.vector_store %arg6[%c0_97, %c0_98], %523 {strides = array<i32>} : memref<32x256xf32, #tpu.memory_space<vmem>>, vector<32x256xf32>,
    %c3 = arith.constant 3 : index
    %c0_99 = arith.constant 0 : index
    %525 = vector.load %arg1[%c3, %c0_99] : memref<6x256xf32, #tpu.memory_space<vmem>>, vector<1x256xf32>
    %c0_100 = arith.constant 0 : index
    %c0_101 = arith.constant 0 : index
    %526 = vector.load %arg1[%c0_100, %c0_101] : memref<6x256xf32, #tpu.memory_space<vmem>>, vector<1x256xf32>
    %527 = vector.broadcast %526 : vector<1x256xf32> to vector<32x256xf32>
    %528 = arith.mulf %527, %523 : vector<32x256xf32>
    %529 = vector.broadcast %525 : vector<1x256xf32> to vector<32x256xf32>
    %530 = arith.addf %529, %528 : vector<32x256xf32>
    %c0_102 = arith.constant 0 : index
    %c0_103 = arith.constant 0 : index
    %c0_104 = arith.constant 0 : index
    %531 = vector.load %arg5[%c0_102, %c0_103, %c0_104] : memref<3x32x256xf32, #tpu.memory_space<vmem>>, vector<1x32x256xf32>
    %532 = vector.shape_cast %531 : vector<1x32x256xf32> to vector<32x256xf32>
    %533 = vector.shape_cast %530 : vector<32x256xf32> to vector<1x32x256xf32>
    tpu.vector_store %arg5[%c0_102, %c0_103, %c0_104], %533 {strides = array<i32>} : memref<3x32x256xf32, #tpu.memory_space<vmem>>, vector<1x32x256xf32>,
    %c4 = arith.constant 4 : index
    %c0_105 = arith.constant 0 : index
    %534 = vector.load %arg1[%c4, %c0_105] : memref<6x256xf32, #tpu.memory_space<vmem>>, vector<1x256xf32>
    %c1 = arith.constant 1 : index
    %c0_106 = arith.constant 0 : index
    %535 = vector.load %arg1[%c1, %c0_106] : memref<6x256xf32, #tpu.memory_space<vmem>>, vector<1x256xf32>
    %536 = vector.broadcast %535 : vector<1x256xf32> to vector<32x256xf32>
    %537 = arith.mulf %536, %523 : vector<32x256xf32>
    %538 = vector.broadcast %534 : vector<1x256xf32> to vector<32x256xf32>
    %539 = arith.addf %538, %537 : vector<32x256xf32>
    %c1_107 = arith.constant 1 : index
    %c0_108 = arith.constant 0 : index
    %c0_109 = arith.constant 0 : index
    %540 = vector.load %arg5[%c1_107, %c0_108, %c0_109] : memref<3x32x256xf32, #tpu.memory_space<vmem>>, vector<1x32x256xf32>
    %541 = vector.shape_cast %540 : vector<1x32x256xf32> to vector<32x256xf32>
    %542 = vector.shape_cast %539 : vector<32x256xf32> to vector<1x32x256xf32>
    tpu.vector_store %arg5[%c1_107, %c0_108, %c0_109], %542 {strides = array<i32>} : memref<3x32x256xf32, #tpu.memory_space<vmem>>, vector<1x32x256xf32>,
    %c5 = arith.constant 5 : index
    %c0_110 = arith.constant 0 : index
    %543 = vector.load %arg1[%c5, %c0_110] : memref<6x256xf32, #tpu.memory_space<vmem>>, vector<1x256xf32>
    %c2 = arith.constant 2 : index
    %c0_111 = arith.constant 0 : index
    %544 = vector.load %arg1[%c2, %c0_111] : memref<6x256xf32, #tpu.memory_space<vmem>>, vector<1x256xf32>
    %545 = vector.broadcast %544 : vector<1x256xf32> to vector<32x256xf32>
    %546 = arith.mulf %545, %523 : vector<32x256xf32>
    %547 = vector.broadcast %543 : vector<1x256xf32> to vector<32x256xf32>
    %548 = arith.addf %547, %546 : vector<32x256xf32>
    %c2_112 = arith.constant 2 : index
    %c0_113 = arith.constant 0 : index
    %c0_114 = arith.constant 0 : index
    %549 = vector.load %arg5[%c2_112, %c0_113, %c0_114] : memref<3x32x256xf32, #tpu.memory_space<vmem>>, vector<1x32x256xf32>
    %550 = vector.shape_cast %549 : vector<1x32x256xf32> to vector<32x256xf32>
    %551 = vector.shape_cast %548 : vector<32x256xf32> to vector<1x32x256xf32>
    tpu.vector_store %arg5[%c2_112, %c0_113, %c0_114], %551 {strides = array<i32>} : memref<3x32x256xf32, #tpu.memory_space<vmem>>, vector<1x32x256xf32>,
    return
  }
  func.func @transform_0(%arg0: i32) -> (i32, i32) {
    %c0_i32 = arith.constant 0 : i32
    %c0_i32_0 = arith.constant 0 : i32
    return %c0_i32, %arg0 : i32, i32
  }
  func.func @transform_1(%arg0: i32) -> (i32, i32) {
    %c0_i32 = arith.constant 0 : i32
    %c0_i32_0 = arith.constant 0 : i32
    return %c0_i32, %arg0 : i32, i32
  }
  func.func @transform_2(%arg0: i32) -> (i32, i32) {
    %c0_i32 = arith.constant 0 : i32
    %c0_i32_0 = arith.constant 0 : i32
    return %c0_i32, %arg0 : i32, i32
  }
  func.func @transform_3(%arg0: i32) -> (i32, i32) {
    %c0_i32 = arith.constant 0 : i32
    %c0_i32_0 = arith.constant 0 : i32
    return %c0_i32, %arg0 : i32, i32
  }
  func.func @transform_4(%arg0: i32) -> (i32, i32, i32) {
    %c0_i32 = arith.constant 0 : i32
    %c0_i32_0 = arith.constant 0 : i32
    %c0_i32_1 = arith.constant 0 : i32
    return %c0_i32, %c0_i32_0, %arg0 : i32, i32, i32
  }
  func.func @transform_5(%arg0: i32) -> (i32, i32) {
    %c0_i32 = arith.constant 0 : i32
    %c0_i32_0 = arith.constant 0 : i32
    return %c0_i32, %arg0 : i32, i32
  }
}

</mosaic_0001>

<bundles_post_ra>
// kernel: _importance_pallas.1
= control target key start
LH: loop header
LB: loop body
LE: loop exit
PB: predicated region body
PF: predicated region fallthrough
CT: control target
= control target key end

     0   :  { %11 = vsyncpa [#allocation3], 0  ;;  %s5504_s0 = inlined_call_operand.hbm [shape: f32[6,512], index: 0, kind: input, shape index: {}]   ;;  %s5505_s1 = inlined_call_operand.vmem [shape: f32[16,512], index: 1, kind: input, shape index: {}]   ;;  %s5506_s2 = inlined_call_operand.vmem [shape: f32[16,512], index: 2, kind: input, shape index: {}]   ;;  %s5507_s3 = inlined_call_operand.vmem [shape: f32[16,512], index: 3, kind: input, shape index: {}]   ;;  %s5508_s4 = inlined_call_operand.hbm [shape: f32[3,32,512], index: 4, kind: output, shape index: {0}]   ;;  %s5509_s5 = inlined_call_operand.hbm [shape: f32[32,512], index: 5, kind: output, shape index: {1}]  }
   0x1   :  { %13 = vsyncpa [#allocation3 + $0x1], 0 }
   0x2   :  { %14 = vsyncpa [#allocation4], 0 }
   0x3   :  { %16 = vsyncpa [#allocation4 + $0x1], 0 }
   0x4   :  { %17 = vsyncpa [#allocation10], 0 }
   0x5   :  { %19 = vsyncpa [#allocation10 + $0x1], 0  ;;  %s2870_s18 = smov 0   ;;  %s2872_s19 = smov 0  }
   0x6   :  { %s2874_s20 = smov 0   ;;  %s2876_s21 = smov 0  }
   0x7 LB: > { %s2891_s22 = sadd.s32 4294967295, %s2831_s21   ;;  %s2589_s23 = sadd.s32 4294967294, %s2831_s21   ;;  %s2831_s21 = sphi %s2876_s21, %s6189_s21   ;;  %s2827_s20 = sphi %s2874_s20, %s6188_s20   ;;  %s2823_s19 = sphi %s2872_s19, %s6187_s19   ;;  %s2819_s18 = sphi %s2870_s18, %s6186_s18  }
   0x8   : > { %s2895_s24 = sadd.s32 1, %s2831_s21   ;;  %s32_s25 = sadd.s32 1, %s2827_s20 }
   0x9   : > { %s29_s26 = ssub.s32 %s2831_s21, %s2895_s24  ;;  %p39_p0 = scmp.ne.s32.totalorder %s2827_s20, %s2823_s19 }
   0xa   : > { %p30_p1 = scmp.eq.s32.totalorder %s29_s26, 0  ;;  %p40_p2 = scmp.eq.s32.totalorder %s2831_s21, 0 }
   0xb   : > { %p45_p3 = scmp.ne.s32.totalorder %s2823_s19, %s2819_s18  ;;  %p46_p4 = scmp.eq.s32.totalorder %s2891_s22, 0 }
   0xc   : > { %s2907_s27 = scalar_select %p30_p1, %s2827_s20, %s32_s25  }
   0xd   : > { %p2909_p5 = por %p40_p2, %p39_p0  ;;  %p2913_p6 = por %p46_p4, %p45_p3 }
   0xe   : > { %p147_p7 = scmp.eq.s32.totalorder %s2891_s22, 1  ;;  %p153_p8 = scmp.eq.s32.totalorder %s2589_s23, 1 }
   0xf   : > { %p5510_p11 = scmp.ge.s32.totalorder %s2831_s21, 2 }
  0x10   : > { %p2918_p9 = por %p147_p7, %p39_p0  ;;  %p2922_p10 = por %p153_p8, %p45_p3 }
  0x11   : > { %195 = sbr.rel (%p5510_p11) target bundleno = 62 (0x3e), region = 16  ;;  %s2930_s7 = sand.u32 (!%p5510_p11), 1, %s2827_s20  }
  0x12   : > { %s5611_s30 = scalar_select %p2918_p9, 1, 0 }
  0x13   : > { %s5612_s6 = scalar_select %p2922_p10, 1, 0 }
  0x14   : > { %s2638_s8 = sshll.u32 (!%p5510_p11), %s2831_s21, 8  ;;  %s2592_s9 = sshll.u32 (!%p5510_p11), %s2930_s7, 4 }
  0x15   : > { %s2937_s12 = scalar_lea.hbm (!%p5510_p11), %s5504_s0, %s2638_s8  ;;  %s203_s13 = scalar_lea.vmem (!%p5510_p11), [#allocation2], %s2592_s9 }
  0x16   : > { %s211_s14 = sshll.u32 %s203_s13, 4  ;;  %s200_s15 = scalar_lea.sflag [#allocation3], %s2930_s7  ;;  %s212_s14 = int_to_ptr.vmem [resolvable:$true] %s211_s14 }
  0x17   : > { %s2711_s16 = scalar_lea.hbm %s2937_s12, 256  ;;  %s2715_s25 = scalar_lea.hbm %s5504_s0, 512 }
  0x18   : > { %p2712_p12 = scmp.ne.s32.totalorder %s2937_s12, %s2711_s16  ;;  %p2716_p1 = scmp.lt.s32.totalorder %s2937_s12, %s5504_s0 }
  0x19   : > { %p2717_p2 = scmp.lt.s32.totalorder %s2715_s25, %s2711_s16 }
  0x1a   : > { %p2713_p13 = pnand %p2712_p12, %p2909_p5 }
  0x1b   : > { %p2718_p3 = por %p2717_p2, %p2716_p1 }
  0x1c   : > { %p2714_p0 = pneg %p2713_p13 }
  0x1e   : > { %p2719_p4 = pnand %p2718_p3, %p2714_p0 }
  0x20   : > { %2722 = shalt.err (!%p2719_p4)
}
  0x21   : > { %s2723_s8 = scalar_lea.vmem %s212_s14, 256  ;;  %s2833_s9 = smov [#allocation2]  }
  0x22   : > { %p2724_p7 = scmp.ne.s32.totalorder %s212_s14, %s2723_s8  ;;  %s2727_s11 = sshll.u32 %s2833_s9, 4  ;;  %s2728_s11 = int_to_ptr.vmem [resolvable:$false] %s2727_s11 }
  0x23   : > { %s2729_s13 = scalar_lea.vmem %s2728_s11, 512  ;;  %p2730_p12 = scmp.lt.s32.totalorder %s212_s14, %s2728_s11 }
  0x24   : > { %p2725_p8 = pnand %p2724_p7, %p2909_p5  ;;  %p2731_p13 = scmp.lt.s32.totalorder %s2729_s13, %s2723_s8 }
  0x26   : > { %p2726_p11 = pneg %p2725_p8  ;;  %p2732_p10 = por %p2731_p13, %p2730_p12 }
  0x28   : > { %p2733_p9 = pnand %p2732_p10, %p2726_p11 }
  0x2a   : > { %2736 = shalt.err (!%p2733_p9)
}
  0x2b   : > { %2645 = dma.hbm_to_vmem [thread:$0]  (%p2909_p5), %s2937_s12, 256, %s212_s14, %s200_s15  }
  0x2c   : > { %217 = sbr.rel (!%p2909_p5) target bundleno = 50 (0x32), region = 24  ;;  %s2595_s16 = sshll.u32 (%p2909_p5), %s2930_s7, 5 }
  0x2d   : > { %s2639_s17 = sshll.u32 (%p2909_p5), %s2831_s21, 4  ;;  %s221_s10 = scalar_lea.vmem (%p2909_p5), [#allocation5], %s2595_s16 }
  0x2e   : > { %s224_s26 = scalar_lea.vmem (%p2909_p5), %s5505_s1, %s2639_s17 }
  0x2f   : > { %v237_v0 = vld [vmem:[%s224_s26] sm:$0xff] (%p2909_p5)  ;;  %v239_v1 = vld [vmem:[%s224_s26 + $0x8] sm:$0xff] (%p2909_p5) }
  0x30   : > { %v241_v2 = vld [vmem:[%s224_s26 + $0x20] sm:$0xff] (%p2909_p5)  ;;  %238 = vst [vmem:[%s221_s10] sm:$0xff] (%p2909_p5), %v237_v0  ;;  %240 = vst [vmem:[%s221_s10 + $0x8] sm:$0xff] (%p2909_p5), %v239_v1  ;;  %v243_v3 = vld [vmem:[%s224_s26 + $0x28] sm:$0xff] (%p2909_p5) }
  0x31   : > { %242 = vst [vmem:[%s221_s10 + $0x10] sm:$0xff] %v241_v2  ;;  %244 = vst [vmem:[%s221_s10 + $0x18] sm:$0xff] %v243_v3 }
  0x32 PF: > { %250 = sbr.rel (!%p2909_p5) target bundleno = 56 (0x38), region = 47  ;;  %s2598_s12 = sshll.u32 (%p2909_p5), %s2930_s7, 5 }
  0x33   : > { %s2640_s14 = sshll.u32 (%p2909_p5), %s2831_s21, 4  ;;  %s254_s11 = scalar_lea.vmem (%p2909_p5), [#allocation6], %s2598_s12 }
  0x34   : > { %s257_s9 = scalar_lea.vmem (%p2909_p5), %s5506_s2, %s2640_s14 }
  0x35   : > { %v270_v4 = vld [vmem:[%s257_s9] sm:$0xff] (%p2909_p5)  ;;  %v272_v5 = vld [vmem:[%s257_s9 + $0x8] sm:$0xff] (%p2909_p5) }
  0x36   : > { %v274_v6 = vld [vmem:[%s257_s9 + $0x20] sm:$0xff] (%p2909_p5)  ;;  %271 = vst [vmem:[%s254_s11] sm:$0xff] (%p2909_p5), %v270_v4  ;;  %273 = vst [vmem:[%s254_s11 + $0x8] sm:$0xff] (%p2909_p5), %v272_v5  ;;  %v276_v7 = vld [vmem:[%s257_s9 + $0x28] sm:$0xff] (%p2909_p5) }
  0x37   : > { %275 = vst [vmem:[%s254_s11 + $0x10] sm:$0xff] %v274_v6  ;;  %277 = vst [vmem:[%s254_s11 + $0x18] sm:$0xff] %v276_v7 }
  0x38 PF: > { %283 = sbr.rel (!%p2909_p5) target bundleno = 62 (0x3e), region = 70  ;;  %s2601_s13 = sshll.u32 (%p2909_p5), %s2930_s7, 5 }
  0x39   : > { %s2641_s16 = sshll.u32 (%p2909_p5), %s2831_s21, 4  ;;  %s287_s26 = scalar_lea.vmem (%p2909_p5), [#allocation7], %s2601_s13 }
  0x3a   : > { %s290_s25 = scalar_lea.vmem (%p2909_p5), %s5507_s3, %s2641_s16 }
  0x3b   : > { %v303_v8 = vld [vmem:[%s290_s25] sm:$0xff] (%p2909_p5)  ;;  %v305_v9 = vld [vmem:[%s290_s25 + $0x8] sm:$0xff] (%p2909_p5) }
  0x3c   : > { %v307_v10 = vld [vmem:[%s290_s25 + $0x20] sm:$0xff] (%p2909_p5)  ;;  %304 = vst [vmem:[%s287_s26] sm:$0xff] (%p2909_p5), %v303_v8  ;;  %306 = vst [vmem:[%s287_s26 + $0x8] sm:$0xff] (%p2909_p5), %v305_v9  ;;  %v309_v11 = vld [vmem:[%s290_s25 + $0x28] sm:$0xff] (%p2909_p5) }
  0x3d   : > { %308 = vst [vmem:[%s287_s26 + $0x10] sm:$0xff] %v307_v10  ;;  %310 = vst [vmem:[%s287_s26 + $0x18] sm:$0xff] %v309_v11 }
  0x3e PF: > { %p2604_p5 = scmp.ge.s32.totalorder %s2831_s21, 1  ;;  %p315_p9 = scmp.lt.s32.totalorder %s2831_s21, 3 }
  0x40   : > { %p316_p10 = pnand %p2604_p5, %p315_p9 }
  0x42   : > { %319 = sbr.rel (%p316_p10) target bundleno = 546 (0x222), region = 93 }
  0x47   : > { %s2980_s28 = sand.u32 1, %s2823_s19  }
  0x48   : > { %s2605_s7 = sshll.u32 %s2980_s28, 4  ;;  %s322_s10 = scalar_lea.sflag [#allocation3], %s2980_s28 }
  0x49   : > { %s2984_s12 = scalar_lea.vmem [#allocation2], %s2605_s7 }
  0x4a   : > { %2806 = dma.done.wait (%p2913_p6), %s322_s10, 256  }
  0x4b   : > { %2808 = vsyncadd (%p2913_p6), %s322_s10, 4294967040  ;;  %v408_v12 = vlaneseq  ;;  %s2991_s14 = sshll.u32 %s2980_s28, 5  ;;  %vm5515_vm2 = vcmask 1040384   ;;  %vm5514_vm3 = vcmask 1041408   ;;  %vm5512_vm4 = vcmask 1046528   ;;  %s2609_s9 = sshll.u32 %s2980_s28, 6 }
  0x4c   : > { %s340_s15 = scalar_lea.vmem [#allocation6], %s2991_s14  ;;  %s3002_s29 = scalar_lea.vmem [#allocation5], %s2991_s14  ;;  %vm5513_vm5 = vcmask 1043456  }
  0x4d   : > { %v2993_v13 = vshrl.u32 %v408_v12, 7  ;;  %v400_v15 = vld [vmem:[%s340_s15] sm:$0xff]  ;;  %v401_v16 = vld [vmem:[%s340_s15 + $0x8] sm:$0xff]  ;;  %v402_v17 = vld [vmem:[%s340_s15 + $0x10] sm:$0xff]  ;;  %s3026_s8 = scalar_lea.vmem [#allocation7], %s2991_s14  ;;  %s4966_s11 = scalar_lea.vmem [#allocation9], %s2609_s9 }
  0x4e   : > { %v403_v18 = vld [vmem:[%s340_s15 + $0x18] sm:$0xff]  ;;  %v417_v19 = vadd.f32 1e-05, %v400_v15  ;;  %v418_v20 = vadd.f32 1e-05, %v401_v16  ;;  %v396_v24 = vld [vmem:[%s3002_s29] sm:$0xff] }
  0x4f   : > { %v2996_v14 = vadd.s32 8, %v2993_v13  ;;  %vm411_vm0 = vcmp.ge.s32.totalorder %v2993_v13, 1  ;;  %v419_v21 = vadd.f32 1e-05, %v402_v17  ;;  %v420_v22 = vadd.f32 1e-05, %v403_v18 }
  0x50   : > { %v421_v23 = vsel %vm411_vm0, %v417_v19, 0.0  ;;  %v398_v25 = vld [vmem:[%s3002_s29 + $0x10] sm:$0xff]  ;;  %v422_v26 = vsel %vm411_vm0, %v418_v20, 0.0  ;;  %v523_v37 = vrot.slane %v396_v24, 1  ;;  %v3017_v3 = vsub.s32 2, %v2993_v13  ;;  %v405_v12 = vld [vmem:[%s3026_s8 + $0x8] sm:$0xff] }
  0x51   : > { %5613 = vst [vmem:[#allocation14_spill] sm:$0xff] %v2996_v14  ;;  %vm414_vm1 = vcmp.le.s32.totalorder %v2996_v14, 14  ;;  %v444_v27 = vrot.slane %v421_v23, 7  ;;  %v445_v30 = vrot.slane %v422_v26, 7  ;;  %v524_v38 = vrot.slane %v398_v25, 1  ;;  %s2644_s13 = smul.u32 192, %s2980_s28 }
  0x52   : > { %v423_v28 = vsel %vm414_vm1, %v419_v21, 0.0  ;;  %v424_v29 = vsel %vm414_vm1, %v420_v22, 0.0  ;;  %v3020_v7 = vsub.s32 3, %v2993_v13  ;;  %v3023_v11 = vsub.s32 4, %v2993_v13  ;;  %s2430_s17 = sshll.u32 %s4966_s11, 4  ;;  %s2642_s23 = sshll.u32 %s2891_s22, 8  ;;  %s5371_s17 = int_to_ptr.vmem [resolvable:$true] %s2430_s17 }
  0x53   : > { %v425_v31 = vadd.f32 %v423_v28, %v421_v23  ;;  %v432_v32 = vadd.f32 %v424_v29, %v422_v26  ;;  %v446_v33 = vrot.slane %v423_v28, 7  ;;  %v448_v34 = vrot.slane %v424_v29, 7  ;;  %s5130_s16 = scalar_lea.vmem [#allocation8], %s2644_s13  ;;  %s5391_s7 = scalar_lea.hbm %s5509_s5, %s2642_s23 }
  0x54   : > { %v454_v35 = vsel %vm5515_vm2, 0.0, %v444_v27  ;;  %v455_v36 = vsel %vm5515_vm2, 0.0, %v445_v30  ;;  %v525_v55 = vsel %vm5512_vm4, %v523_v37, %v524_v38  ;;  %v533_v63 = vsel %vm5512_vm4, %v524_v38, %v398_v25  ;;  %s2414_s10 = sshll.u32 %s5130_s16, 4  ;;  %s2737_s14 = scalar_lea.vmem %s5371_s17, 1024  ;;  %s5456_s10 = int_to_ptr.vmem [resolvable:$true] %s2414_s10 }
  0x55   : > { %v426_v39 = vrot.slane %v425_v31, 4  ;;  %v433_v40 = vrot.slane %v432_v32, 4  ;;  %v447_v41 = vsel %vm5515_vm2, %v444_v27, %v446_v33  ;;  %v449_v42 = vsel %vm5515_vm2, %v445_v30, %v448_v34  ;;  %p2738_p6 = scmp.ne.s32.totalorder %s5371_s17, %s2737_s14  ;;  %p6183_p11 = scmp.ne.s32.totalorder %s5611_s30, 0 }
  0x56   : > { %v456_v43 = vadd.f32 %v454_v35, %v421_v23  ;;  %v457_v44 = vadd.f32 %v455_v36, %v422_v26  ;;  %v458_v45 = vadd.f32 %v447_v41, %v423_v28  ;;  %v459_v46 = vadd.f32 %v449_v42, %v424_v29  ;;  %s2835_s15 = smov [#allocation9]  }
  0x57   : > { %v427_v47 = vadd.f32 %v426_v39, %v425_v31  ;;  %v434_v48 = vadd.f32 %v433_v40, %v432_v32  ;;  %v535_v9 = vadd.f32 %v525_v55, %v396_v24  ;;  %v537_v10 = vadd.f32 %v533_v63, %v398_v25  ;;  %v3051_v31 = vld [vmem:[%s3026_s8 + $0x18] sm:$0xff]  ;;  %p2739_p0 = pnand %p2738_p6, %p6183_p11 }
  0x58   : > { %v465_v49 = vrot.slane %v456_v43, 6  ;;  %v466_v50 = vrot.slane %v457_v44, 6  ;;  %v467_v51 = vrot.slane %v458_v45, 6  ;;  %v469_v52 = vrot.slane %v459_v46, 6 }
  0x59   : > { %v428_v53 = vrot.slane %v427_v47, 2  ;;  %v435_v54 = vrot.slane %v434_v48, 2  ;;  %v3031_v18 = vsub.s32 5, %v2993_v13  ;;  %v3035_v24 = vsub.s32 6, %v2993_v13  ;;  %p2740_p1 = pneg %p2739_p0 }
  0x5a   : > { %v468_v56 = vsel %vm5514_vm3, %v465_v49, %v467_v51  ;;  %v470_v57 = vsel %vm5514_vm3, %v466_v50, %v469_v52  ;;  %v475_v58 = vsel %vm5514_vm3, 0.0, %v465_v49  ;;  %v476_v59 = vsel %vm5514_vm3, 0.0, %v466_v50  ;;  %v404_v49 = vld [vmem:[%s3026_s8] sm:$0xff] }
  0x5b   : > { %v429_v60 = vadd.f32 %v428_v53, %v427_v47  ;;  %v436_v61 = vadd.f32 %v435_v54, %v434_v48  ;;  %v478_v62 = vadd.f32 %v476_v59, %v457_v44  ;;  %v477_v0 = vadd.f32 %v475_v58, %v456_v43  ;;  %v3117_v58 = vld [vmem:[%s3026_s8 + $0x10] sm:$0xff] }
  0x5c   : > { %v479_v1 = vadd.f32 %v468_v56, %v458_v45  ;;  %v480_v2 = vadd.f32 %v470_v57, %v459_v46  ;;  %v3038_v25 = vsub.s32 7, %v2993_v13  ;;  %v3040_v26 = vmul.f32 0.5, %v535_v9 }
  0x5d   : > { %v430_v4 = vrot.slane %v429_v60, 1  ;;  %v437_v5 = vrot.slane %v436_v61, 1  ;;  %v487_v6 = vrot.slane %v478_v62, 4  ;;  %v486_v19 = vrot.slane %v477_v0, 4 }
  0x5e   : > { %v490_v8 = vrot.slane %v480_v2, 4  ;;  %v488_v20 = vrot.slane %v479_v1, 4  ;;  %v3042_v27 = vmul.f32 0.5, %v537_v10  ;;  %v3045_v28 = vrot.slane %v405_v12, %v3017_v3 }
  0x5f   : > { %v431_v15 = vadd.f32 %v430_v4, %v429_v60  ;;  %v438_v16 = vadd.f32 %v437_v5, %v436_v61  ;;  %v497_v17 = vsel %vm5513_vm5, 0.0, %v487_v6  ;;  %v3048_v30 = vrot.slane %v405_v12, %v3020_v7 }
  0x60   : > { %v491_v21 = vsel %vm5513_vm5, %v487_v6, %v490_v8  ;;  %v499_v22 = vadd.f32 %v497_v17, %v478_v62  ;;  %5614 = vst [vmem:[#allocation15_spill] sm:$0xff] %v3045_v28  ;;  %v489_v32 = vsel %vm5513_vm5, %v486_v19, %v488_v20  ;;  %v496_v33 = vsel %vm5513_vm5, 0.0, %v486_v19 }
  0x61   : > { %v501_v23 = vadd.f32 %v491_v21, %v480_v2  ;;  %2695 = vrcp.f32 %v431_v15  ;;  %5615 = vst [vmem:[#allocation16_spill] sm:$0xff] %v3048_v30  ;;  %v3056_v34 = vrot.slane %v405_v12, %v3023_v11  ;;  %v3059_v35 = vrot.slane %v405_v12, %v3031_v18 }
  0x62   : > { %2697 = vrcp.f32 %v438_v16  ;;  %v3062_v36 = vrot.slane %v405_v12, %v3035_v24  ;;  %v3065_v37 = vrot.slane %v405_v12, %v3038_v25  ;;  %v563_v38 = vrot.slane %v3040_v26, 1 }
  0x63   : > { %v505_v29 = vadd.f32 %v501_v23, %v499_v22  ;;  %5616 = vst [vmem:[#allocation17_spill] sm:$0xff] %v3056_v34  ;;  %v564_v39 = vrot.slane %v3042_v27, 1  ;;  %v498_v40 = vadd.f32 %v496_v33, %v477_v0  ;;  %v500_v41 = vadd.f32 %v489_v32, %v479_v1 }
  0x64   : > { %v3071_v42 = vrot.slane %v3051_v31, %v3017_v3  ;;  %v3075_v43 = vrot.slane %v3051_v31, %v3020_v7  ;;  %v3079_v44 = vrot.slane %v3051_v31, %v3023_v11  ;;  %v3083_v45 = vrot.slane %v3051_v31, %v3031_v18 }
  0x65   : > { %v3086_v46 = vsub.s32 0, %v2993_v13  ;;  %v3090_v47 = vrot.slane %v3051_v31, %v3035_v24  ;;  %v3094_v48 = vrot.slane %v3051_v31, %v3038_v25  ;;  %v3098_v50 = vsel %vm5512_vm4, %v563_v38, %v564_v39 }
  0x66   : > { %5617 = vst [vmem:[#allocation18_spill] sm:$0xff] %v3079_v44  ;;  %5618 = vst [vmem:[#allocation19_spill] sm:$0xff] %v3083_v45  ;;  %v3101_v51 = vsub.s32 1, %v2993_v13  ;;  %v504_v52 = vadd.f32 %v500_v41, %v498_v40  ;;  %v3105_v53 = vsel %vm5512_vm4, %v564_v39, %v3042_v27  ;;  %vm513_vm6 = vcmp.eq.s32.totalorder %v2996_v14, 15 }
  0x67   : > { %5619 = vst [vmem:[#allocation20_spill] sm:$0xff] %v3086_v46  ;;  %5620 = vst [vmem:[#allocation21_spill] sm:$0xff] %v3090_v47  ;;  %v3111_v55 = vrot.slane %v404_v49, %v3086_v46  ;;  %v3114_v56 = vrot.slane %v405_v12, %v3086_v46  ;;  %v3128_v62 = vrot.slane %v404_v49, %v3017_v3 }
  0x68   : > { %5621 = vst [vmem:[#allocation22_spill] sm:$0xff] %v3094_v48  ;;  %5622 = vst [vmem:[#allocation23_spill] sm:$0xff] %v3101_v51  ;;  %v3122_v60 = vrot.slane %v404_v49, %v3101_v51  ;;  %v3125_v61 = vrot.slane %v405_v12, %v3101_v51  ;;  %v3133_v2 = vrot.slane %v404_v49, %v3020_v7 }
  0x69   : > { %5623 = vst [vmem:[#allocation24_spill] sm:$0xff] %v3114_v56  ;;  %v3136_v4 = vrot.slane %v404_v49, %v3023_v11  ;;  %v3141_v8 = vrot.slane %v404_v49, %v3031_v18  ;;  %v3144_v9 = vrot.slane %v404_v49, %v3035_v24  ;;  %v3152_v15 = vrot.slane %v404_v49, %v3038_v25 }
  0x6a   : > { %5624 = vst [vmem:[#allocation25_spill] sm:$0xff] %v3125_v61  ;;  %v3156_v16 = vrot.slane %v3117_v58, %v3086_v46  ;;  %v3173_v23 = vrot.slane %v3051_v31, %v3086_v46  ;;  %v3185_v38 = vrot.slane %v3117_v58, %v3101_v51 }
  0x6e   : > { %v2696_v57 = vpop.eup %2695 }
  0x6f   : > { %v2698_v63 = vpop.eup %2697  ;;  %v3130_v0 = vmul.f32 %v2696_v57, %v498_v40  ;;  %v510_v1 = vmul.f32 %v2696_v57, %v504_v52  ;;  %v3203_v52 = vrot.slane %v3051_v31, %v3101_v51  ;;  %v3207_v57 = vrot.slane %v3117_v58, %v3017_v3 }
  0x70   : > { %v3138_v5 = vmul.f32 %v2698_v63, %v499_v22  ;;  %v511_v6 = vmul.f32 %v2698_v63, %v505_v29  ;;  %v5625_v31 = vmov 0  ;;  %v5642_v22 = vmov 0 }
  0x71   : > { %v3148_v10 = vsel %vm513_vm6, 2.0, %v510_v1  ;;  %v547_v12 = vrot.slane %v3130_v0, 1  ;;  %vm613_vm13 = vcmp.le.f32.partialorder %v3130_v0, %v3111_v55  ;;  %v725_v33 = vsub.f32 %v3128_v62, %v3130_v0 }
  0x72   : > { %v3160_v17 = vsel %vm513_vm6, 2.0, %v511_v6  ;;  %v548_v19 = vrot.slane %v3148_v10, 1  ;;  %v550_v20 = vrot.slane %v3138_v5, 1  ;;  %vm614_vm7 = vcmp.le.f32.partialorder %v3138_v5, %v3114_v56 }
  0x73   : > { %v551_v21 = vrot.slane %v3160_v17, 1  ;;  %vm616_vm8 = vcmp.le.f32.partialorder %v3160_v17, %v3114_v56  ;;  %vm664_vm14 = vcmp.le.f32.partialorder %v3138_v5, %v3125_v61  ;;  %vm666_vm0 = vcmp.le.f32.partialorder %v3160_v17, %v3125_v61 }
  0x74   : > { %v3176_v29 = vsel %vm5512_vm4, %v547_v12, %v548_v19  ;;  %v3179_v32 = vsel %vm5512_vm4, %v548_v19, 2.0  ;;  %v5628_v12 = vmov 0  ;;  %vm716_vm5 = vcmp.le.f32.partialorder %v3160_v17, %v3045_v28 }
  0x75   : > { %v3188_v39 = vsel %vm5512_vm4, %v550_v20, %v551_v21  ;;  %v3191_v40 = vsel %vm5512_vm4, %v551_v21, 2.0  ;;  %v575_v41 = vsub.f32 %v3176_v29, %v3130_v0  ;;  %v577_v49 = vsub.f32 %v3179_v32, %v3148_v10 }
  0x76   : > { %vm618_vm9 = vcmp.gt.f32.partialorder %v3188_v39, %v3114_v56  ;;  %vm620_vm10 = vcmp.gt.f32.partialorder %v3191_v40, %v3114_v56  ;;  %vm617_vm6 = vcmp.gt.f32.partialorder %v3176_v29, %v3111_v55  ;;  %v5631_v21 = vmov 0 }
  0x77   : > { %vm579_vm11 = vcmp.lt.f32.partialorder %v575_v41, 1e-05  ;;  %vm581_vm12 = vcmp.lt.f32.partialorder %v577_v49, 1e-05  ;;  %vm3216_vm15 = vmand %vm614_vm7, %vm618_vm9  ;;  %vm668_vm7 = vcmp.gt.f32.partialorder %v3188_v39, %v3125_v61  ;;  %vm718_vm1 = vcmp.gt.f32.partialorder %v3188_v39, %v3045_v28 }
  0x78   : > { %v583_v63 = vsel %vm579_vm11, 1.0, %v575_v41  ;;  %v585_v1 = vsel %vm581_vm12, 1.0, %v577_v49  ;;  %v5626_v31 = vsel %vm3216_vm15, 4294967295, %v5625_v31  ;;  %vm3240_vm11 = vmand %vm616_vm8, %vm620_vm10  ;;  %vm670_vm12 = vcmp.gt.f32.partialorder %v3191_v40, %v3125_v61 }
  0x79   : > { %5627 = vst [vmem:[#allocation26_spill] sm:$0xff] %v5626_v31  ;;  %2699 = vrcp.f32 %v583_v63  ;;  %v5629_v12 = vsel %vm3240_vm11, 4294967295, %v5628_v12  ;;  %vm714_vm8 = vcmp.le.f32.partialorder %v3138_v5, %v3045_v28  ;;  %vm3263_vm2 = vmand %vm664_vm14, %vm668_vm7  ;;  %vm720_vm3 = vcmp.gt.f32.partialorder %v3191_v40, %v3045_v28 }
  0x7a   : > { %2701 = vrcp.f32 %v585_v1  ;;  %5630 = vst [vmem:[#allocation27_spill] sm:$0xff] %v5629_v12  ;;  %v5632_v21 = vsel %vm3263_vm2, 4294967295, %v5631_v21  ;;  %vm3285_vm14 = vmand %vm666_vm0, %vm670_vm12  ;;  %v5634_v1 = vmov 0  ;;  %vm768_vm9 = vcmp.gt.f32.partialorder %v3188_v39, %v3048_v30 }
  0x7b   : > { %5633 = vst [vmem:[#allocation28_spill] sm:$0xff] %v5632_v21  ;;  %v5635_v1 = vsel %vm3285_vm14, 4294967295, %v5634_v1  ;;  %vm3312_vm4 = vmand %vm714_vm8, %vm718_vm1  ;;  %v5637_v20 = vmov 0  ;;  %vm5645_vm10 = vcmp.gt.f32.partialorder %v3176_v29, %v3122_v60  ;;  %v775_v49 = vsub.f32 %v3133_v2, %v3130_v0 }
  0x7c   : > { %5636 = vst [vmem:[#allocation29_spill] sm:$0xff] %v5635_v1  ;;  %v5638_v20 = vsel %vm3312_vm4, 4294967295, %v5637_v20  ;;  %vm3338_vm7 = vmand %vm613_vm13, %vm617_vm6  ;;  %v777_v6 = vsub.f32 %v3133_v2, %v3148_v10  ;;  %vm5649_vm13 = vcmp.gt.f32.partialorder %v3179_v32, %v3111_v55  ;;  %vm5653_vm12 = vcmp.gt.f32.partialorder %v3179_v32, %v3122_v60 }
  0x7d   : > { %5639 = vst [vmem:[#allocation30_spill] sm:$0xff] %v5638_v20  ;;  %vm3348_vm1 = vmand %vm716_vm5, %vm720_vm3  ;;  %vm5646_vm3 = vcmp.le.f32.partialorder %v3130_v0, %v3122_v60  ;;  %vm5654_vm6 = vcmp.le.f32.partialorder %v3148_v10, %v3122_v60  ;;  %vm5657_vm0 = vcmp.le.f32.partialorder %v3138_v5, %v3048_v30  ;;  %v5658_v41 = vmov 0 }
  0x7e   : > { %v5643_v22 = vsel %vm3348_vm1, 4294967295, %v5642_v22  ;;  %vm3366_vm5 = vmand %vm5646_vm3, %vm5645_vm10  ;;  %vm5650_vm10 = vcmp.le.f32.partialorder %v3148_v10, %v3111_v55  ;;  %v825_v54 = vsub.f32 %v3136_v4, %v3130_v0  ;;  %v875_v20 = vsub.f32 %v3141_v8, %v3130_v0 }
  0x7f   : > { %5644 = vst [vmem:[#allocation31_spill] sm:$0xff] %v5643_v22  ;;  %vm3384_vm3 = vmand %vm5650_vm10, %vm5649_vm13  ;;  %v827_v22 = vsub.f32 %v3136_v4, %v3148_v10  ;;  %v5678_v1 = vmov 0  ;;  %vm5687_vm14 = vcmp.ge.s32.totalorder %v2996_v14, 14  ;;  %vm5688_vm1 = vcmp.gt.f32.partialorder %v3191_v40, %v3056_v34 }
  0x80   : > { %vm3394_vm8 = vmand %vm5654_vm6, %vm5653_vm12  ;;  %vm5661_vm6 = vcmp.gt.f32.partialorder %v3176_v29, %v3128_v62  ;;  %v877_v61 = vsub.f32 %v3141_v8, %v3148_v10  ;;  %v5710_v63 = vmov 0 }
  0x81   : > { %vm3404_vm13 = vmand %vm5657_vm0, %vm768_vm9  ;;  %vm5662_vm9 = vcmp.le.f32.partialorder %v3130_v0, %v3128_v62 }
  0x82   : > { %v5659_v41 = vsel %vm3404_vm13, 4294967295, %v5658_v41  ;;  %vm3422_vm0 = vmand %vm5662_vm9, %vm5661_vm6  ;;  %vm5665_vm6 = vcmp.gt.f32.partialorder %v3191_v40, %v3048_v30  ;;  %vm5666_vm9 = vcmp.le.f32.partialorder %v3160_v17, %v3048_v30  ;;  %v5670_v30 = vsub.f32 %v3098_v50, %v3040_v26 }
  0x83   : > { %5660 = vst [vmem:[#allocation32_spill] sm:$0xff] %v5659_v41  ;;  %vm3442_vm10 = vmand %vm5666_vm9, %vm5665_vm6  ;;  %v5667_v41 = vmov 0  ;;  %vm5671_vm6 = vcmp.gt.f32.partialorder %v3179_v32, %v3128_v62  ;;  %vm5672_vm9 = vcmp.le.f32.partialorder %v3148_v10, %v3128_v62  ;;  %vm5689_vm13 = vcmp.le.f32.partialorder %v3160_v17, %v3056_v34 }
  0x84   : > { %v5668_v41 = vsel %vm3442_vm10, 4294967295, %v5667_v41  ;;  %vm3465_vm12 = vmand %vm5672_vm9, %vm5671_vm6  ;;  %vm5676_vm10 = vcmp.gt.f32.partialorder %v3188_v39, %v3056_v34  ;;  %vm5677_vm6 = vcmp.le.f32.partialorder %v3138_v5, %v3056_v34  ;;  %v5694_v34 = vsub.f32 %v3122_v60, %v3148_v10 }
  0x85   : > { %5669 = vst [vmem:[#allocation33_spill] sm:$0xff] %v5668_v41  ;;  %vm3484_vm9 = vmand %vm5677_vm6, %vm5676_vm10  ;;  %vm5683_vm10 = vcmp.gt.f32.partialorder %v3176_v29, %v3133_v2  ;;  %vm5684_vm6 = vcmp.le.f32.partialorder %v3130_v0, %v3133_v2 }
  0x86   : > { %v2700_v46 = vpop.eup %2699  ;;  %v5679_v1 = vsel %vm3484_vm9, 4294967295, %v5678_v1  ;;  %vm3511_vm4 = vmand %vm5684_vm6, %vm5683_vm10  ;;  %vm5700_vm10 = vcmp.gt.f32.partialorder %v3188_v39, %v3059_v35  ;;  %vm5701_vm6 = vcmp.le.f32.partialorder %v3138_v5, %v3059_v35 }
  0x87   : > { %v2702_v21 = vpop.eup %2701  ;;  %v3457_v12 = vmul.f32 %v2700_v46, %v5670_v30  ;;  %v5675_v46 = vsub.f32 %v3105_v53, %v3042_v27  ;;  %5680 = vst [vmem:[#allocation34_spill] sm:$0xff] %v5679_v1  ;;  %v5681_v53 = vsub.f32 %v3111_v55, %v3130_v0  ;;  %vm3526_vm9 = vmand %vm5689_vm13, %vm5688_vm1  ;;  %vm5696_vm1 = vcmp.le.f32.partialorder %v3148_v10, %v3133_v2 }
  0x89   : > { %v597_v50 = vmul.f32 %v2702_v21, %v5675_v46  ;;  %v629_v21 = vmul.f32 %v5681_v53, %v3457_v12  ;;  %v5682_v46 = vsub.f32 %v3122_v60, %v3130_v0  ;;  %v729_v1 = vmul.f32 %v725_v33, %v3457_v12 }
  0x8a   : > { %v779_v28 = vmul.f32 %v775_v49, %v3457_v12  ;;  %v5690_v33 = vmov 0  ;;  %v879_v49 = vmul.f32 %v875_v20, %v3457_v12 }
  0x8b   : > { %v679_v30 = vmul.f32 %v5682_v46, %v3457_v12  ;;  %v3518_v53 = vsel %vm5687_vm14, 0.0, %v597_v50  ;;  %v5691_v33 = vsel %vm3526_vm9, 4294967295, %v5690_v33  ;;  %v829_v46 = vmul.f32 %v825_v54, %v3457_v12 }
  0x8c   : > { %5692 = vst [vmem:[#allocation35_spill] sm:$0xff] %v5691_v33  ;;  %v5693_v50 = vsub.f32 %v3111_v55, %v3148_v10  ;;  %v633_v14 = vadd.f32 %v629_v21, %v3040_v26  ;;  %v681_v48 = vmul.f32 %v5694_v34, %v3518_v53  ;;  %vm5695_vm14 = vcmp.gt.f32.partialorder %v3179_v32, %v3133_v2 }
  0x8d   : > { %v683_v33 = vadd.f32 %v679_v30, %v3040_v26  ;;  %vm3550_vm13 = vmand %vm5696_vm1, %vm5695_vm14  ;;  %v5699_v55 = vsub.f32 %v3128_v62, %v3148_v10  ;;  %v733_v60 = vadd.f32 %v729_v1, %v3040_v26  ;;  %v781_v34 = vmul.f32 %v777_v6, %v3518_v53 }
  0x8e   : > { %v631_v56 = vmul.f32 %v5693_v50, %v3518_v53  ;;  %v783_v30 = vadd.f32 %v779_v28, %v3040_v26  ;;  %vm3567_vm14 = vmand %vm5701_vm6, %vm5700_vm10  ;;  %v5702_v2 = vmov 0  ;;  %v637_v62 = vsel %vm3338_vm7, %v633_v14, 0.0 }
  0x8f   : > { %v731_v20 = vmul.f32 %v5699_v55, %v3518_v53  ;;  %v5703_v2 = vsel %vm3567_vm14, 4294967295, %v5702_v2  ;;  %v685_v1 = vadd.f32 %v681_v48, %v3042_v27  ;;  %v687_v28 = vsel %vm3366_vm5, %v683_v33, 0.0 }
  0x90   : > { %v635_v21 = vadd.f32 %v631_v56, %v3042_v27  ;;  %vm5704_vm1 = vcmp.gt.f32.partialorder %v3176_v29, %v3136_v4  ;;  %vm5705_vm9 = vcmp.le.f32.partialorder %v3130_v0, %v3136_v4  ;;  %v737_v14 = vsel %vm3422_vm0, %v733_v60, 0.0 }
  0x91   : > { %vm3583_vm10 = vmand %vm5705_vm9, %vm5704_vm1  ;;  %v735_v56 = vadd.f32 %v731_v20, %v3042_v27  ;;  %v785_v48 = vadd.f32 %v781_v34, %v3042_v27  ;;  %v787_v19 = vsel %vm3511_vm4, %v783_v30, 0.0  ;;  %vm5708_vm7 = vcmp.gt.f32.partialorder %v3191_v40, %v3059_v35 }
  0x92   : > { %vm5709_vm5 = vcmp.le.f32.partialorder %v3160_v17, %v3059_v35  ;;  %v639_v33 = vsel %vm3384_vm3, %v635_v21, 0.0  ;;  %v689_v51 = vsel %vm3394_vm8, %v685_v1, 0.0  ;;  %v831_v50 = vmul.f32 %v827_v22, %v3518_v53 }
  0x93   : > { %vm3599_vm9 = vmand %vm5709_vm5, %vm5708_vm7  ;;  %v833_v31 = vadd.f32 %v829_v46, %v3040_v26  ;;  %v641_v55 = vadd.f32 %v639_v33, %v637_v62  ;;  %v691_v20 = vadd.f32 %v689_v51, %v687_v28  ;;  %v739_v60 = vsel %vm3465_vm12, %v735_v56, 0.0 }
  0x94   : > { %v5711_v63 = vsel %vm3599_vm9, 4294967295, %v5710_v63  ;;  %v789_v34 = vsel %vm3550_vm13, %v785_v48, 0.0  ;;  %vm5712_vm4 = vcmp.gt.f32.partialorder %v3179_v32, %v3136_v4  ;;  %vm5713_vm3 = vcmp.le.f32.partialorder %v3148_v10, %v3136_v4 }
  0x95   : > { %vm3619_vm0 = vmand %vm5713_vm3, %vm5712_vm4  ;;  %v741_v22 = vadd.f32 %v739_v60, %v737_v14  ;;  %v791_v3 = vadd.f32 %v789_v34, %v787_v19  ;;  %v835_v46 = vadd.f32 %v831_v50, %v3042_v27  ;;  %v837_v41 = vsel %vm3583_vm10, %v833_v31, 0.0 }
  0x96   : > { %v642_v30 = vrot.slane %v641_v55, 4  ;;  %v692_v54 = vrot.slane %v691_v20, 4  ;;  %vm5716_vm8 = vcmp.gt.f32.partialorder %v3176_v29, %v3141_v8  ;;  %vm5717_vm12 = vcmp.le.f32.partialorder %v3130_v0, %v3141_v8 }
  0x97   : > { %vm3632_vm13 = vmand %vm5717_vm12, %vm5716_vm8  ;;  %v881_v21 = vmul.f32 %v877_v61, %v3518_v53  ;;  %v883_v62 = vadd.f32 %v879_v49, %v3040_v26  ;;  %v742_v1 = vrot.slane %v741_v22, 4  ;;  %v792_v28 = vrot.slane %v791_v3, 4 }
  0x98   : > { %v839_v6 = vsel %vm3619_vm0, %v835_v46, 0.0  ;;  %vm5720_vm6 = vcmp.gt.f32.partialorder %v3179_v32, %v3141_v8  ;;  %vm5721_vm1 = vcmp.le.f32.partialorder %v3148_v10, %v3141_v8  ;;  %vm918_vm7 = vcmp.gt.f32.partialorder %v3188_v39, %v3062_v36 }
  0x99   : > { %vm3646_vm10 = vmand %vm5721_vm1, %vm5720_vm6  ;;  %v643_v61 = vadd.f32 %v642_v30, %v641_v55  ;;  %v693_v49 = vadd.f32 %v692_v54, %v691_v20  ;;  %v841_v14 = vadd.f32 %v839_v6, %v837_v41  ;;  %v885_v48 = vadd.f32 %v881_v21, %v3042_v27  ;;  %v3704_v6 = vld [vmem:[%s3002_s29 + $0x8] sm:$0xff] }
  0x9a   : > { %vm5724_vm5 = vcmp.le.f32.partialorder %v3138_v5, %v3062_v36  ;;  %v5725_v19 = vmov 0  ;;  %v743_v8 = vadd.f32 %v742_v1, %v741_v22  ;;  %v793_v33 = vadd.f32 %v792_v28, %v791_v3 }
  0x9b   : > { %vm3656_vm4 = vmand %vm5724_vm5, %vm918_vm7  ;;  %v887_v51 = vsel %vm3632_vm13, %v883_v62, 0.0  ;;  %v3664_v50 = vrot.slane %v3117_v58, %v3020_v7  ;;  %v644_v31 = vrot.slane %v643_v61, 2  ;;  %v694_v55 = vrot.slane %v693_v49, 2 }
  0x9c   : > { %v5726_v19 = vsel %vm3656_vm4, 4294967295, %v5725_v19  ;;  %v842_v20 = vrot.slane %v841_v14, 4  ;;  %v889_v60 = vsel %vm3646_vm10, %v885_v48, 0.0  ;;  %v744_v34 = vrot.slane %v743_v8, 2 }
  0x9d   : > { %v794_v59 = vrot.slane %v793_v33, 2  ;;  %v891_v46 = vadd.f32 %v889_v60, %v887_v51  ;;  %vm920_vm3 = vcmp.gt.f32.partialorder %v3191_v40, %v3062_v36  ;;  %v645_v22 = vadd.f32 %v644_v31, %v643_v61 }
  0x9e   : > { %v843_v3 = vadd.f32 %v842_v20, %v841_v14  ;;  %vm5727_vm0 = vcmp.le.f32.partialorder %v3160_v17, %v3062_v36  ;;  %v5728_v7 = vmov 0  ;;  %v925_v41 = vsub.f32 %v3144_v9, %v3130_v0 }
  0x9f   : > { %vm3673_vm8 = vmand %vm5727_vm0, %vm920_vm3  ;;  %v3681_v30 = vrot.slane %v3117_v58, %v3023_v11  ;;  %v892_v54 = vrot.slane %v891_v46, 4  ;;  %vm913_vm12 = vcmp.le.f32.partialorder %v3130_v0, %v3144_v9  ;;  %v3689_v21 = vrot.slane %v3117_v58, %v3031_v18 }
  0xa0   : > { %v5729_v7 = vsel %vm3673_vm8, 4294967295, %v5728_v7  ;;  %v3691_v62 = vadd.f32 %v694_v55, %v693_v49  ;;  %vm915_vm13 = vcmp.le.f32.partialorder %v3148_v10, %v3144_v9  ;;  %vm917_vm6 = vcmp.gt.f32.partialorder %v3176_v29, %v3144_v9 }
  0xa1   : > { %v927_v11 = vsub.f32 %v3144_v9, %v3148_v10  ;;  %v745_v1 = vadd.f32 %v744_v34, %v743_v8  ;;  %v795_v28 = vadd.f32 %v794_v59, %v793_v33  ;;  %vm919_vm1 = vcmp.gt.f32.partialorder %v3179_v32, %v3144_v9  ;;  %vm3712_vm10 = vmand %vm913_vm12, %vm917_vm6 }
  0xa2   : > { %v646_v56 = vrot.slane %v645_v22, 1  ;;  %v844_v61 = vrot.slane %v843_v3, 2  ;;  %v3706_v49 = vadd.f32 %v892_v54, %v891_v46  ;;  %v929_v14 = vmul.f32 %v925_v41, %v3457_v12  ;;  %vm3730_vm7 = vmand %vm915_vm13, %vm919_vm1 }
  0xa3   : > { %v931_v8 = vmul.f32 %v927_v11, %v3518_v53  ;;  %v3719_v33 = vrot.slane %v3117_v58, %v3035_v24  ;;  %v3723_v51 = vrot.slane %v3117_v58, %v3038_v25  ;;  %v696_v55 = vrot.slane %v3691_v62, 1 }
  0xa4   : > { %v933_v60 = vadd.f32 %v929_v14, %v3040_v26  ;;  %vm964_vm5 = vcmp.le.f32.partialorder %v3138_v5, %v3065_v37  ;;  %v746_v25 = vrot.slane %v745_v1, 1  ;;  %v796_v58 = vrot.slane %v795_v28, 1 }
  0xa5   : > { %v935_v34 = vadd.f32 %v931_v8, %v3042_v27  ;;  %vm966_vm3 = vcmp.le.f32.partialorder %v3160_v17, %v3065_v37  ;;  %v3741_v59 = vadd.f32 %v646_v56, %v645_v22  ;;  %v3743_v9 = vadd.f32 %v844_v61, %v843_v3 }
  0xa6   : > { %v894_v46 = vrot.slane %v3706_v49, 2  ;;  %vm968_vm0 = vcmp.gt.f32.partialorder %v3188_v39, %v3065_v37  ;;  %v937_v41 = vsel %vm3712_vm10, %v933_v60, 0.0  ;;  %vm970_vm13 = vcmp.gt.f32.partialorder %v3191_v40, %v3065_v37 }
  0xa7   : > { %v939_v54 = vsel %vm3730_vm7, %v935_v34, 0.0  ;;  %vm967_vm6 = vcmp.gt.f32.partialorder %v3176_v29, %v3152_v15  ;;  %vm3761_vm1 = vmand %vm964_vm5, %vm968_vm0  ;;  %v5734_v22 = vmov 0  ;;  %v975_v3 = vsub.f32 %v3152_v15, %v3130_v0 }
  0xa8   : > { %v5735_v22 = vsel %vm3761_vm1, 4294967295, %v5734_v22  ;;  %v977_v56 = vsub.f32 %v3152_v15, %v3148_v10  ;;  %vm965_vm10 = vcmp.le.f32.partialorder %v3148_v10, %v3152_v15  ;;  %vm969_vm7 = vcmp.gt.f32.partialorder %v3179_v32, %v3152_v15  ;;  %vm3782_vm0 = vmand %vm966_vm3, %vm970_vm13 }
  0xa9   : > { %v941_v14 = vadd.f32 %v939_v54, %v937_v41  ;;  %v5736_v48 = vmov 0  ;;  %v979_v8 = vmul.f32 %v975_v3, %v3457_v12  ;;  %vm5738_vm1 = vcmp.le.f32.partialorder %v3130_v0, %v3152_v15  ;;  %vm3805_vm12 = vmand %vm965_vm10, %vm969_vm7 }
  0xaa   : > { %v5737_v48 = vsel %vm3782_vm0, 4294967295, %v5736_v48  ;;  %v981_v20 = vmul.f32 %v977_v56, %v3518_v53  ;;  %vm3793_vm8 = vmand %vm5738_vm1, %vm967_vm6  ;;  %vm1017_vm5 = vcmp.gt.f32.partialorder %v3176_v29, %v3156_v16  ;;  %vm1018_vm0 = vcmp.gt.f32.partialorder %v3188_v39, %v3173_v23 }
  0xab   : > { %v983_v15 = vadd.f32 %v979_v8, %v3040_v26  ;;  %vm1019_vm6 = vcmp.gt.f32.partialorder %v3179_v32, %v3156_v16  ;;  %vm1020_vm1 = vcmp.gt.f32.partialorder %v3191_v40, %v3173_v23  ;;  %vm5743_vm3 = vcmp.le.f32.partialorder %v3138_v5, %v3173_v23 }
  0xac   : > { %v985_v41 = vadd.f32 %v981_v20, %v3042_v27  ;;  %vm3818_vm13 = vmand %vm5743_vm3, %vm1018_vm0  ;;  %v5744_v54 = vmov 0  ;;  %v1025_v3 = vsub.f32 %v3156_v16, %v3130_v0  ;;  %v1027_v8 = vsub.f32 %v3156_v16, %v3148_v10 }
  0xad   : > { %v5745_v54 = vsel %vm3818_vm13, 4294967295, %v5744_v54  ;;  %v3831_v61 = vadd.f32 %v696_v55, %v3691_v62  ;;  %v3833_v11 = vadd.f32 %v746_v25, %v745_v1  ;;  %v3835_v18 = vadd.f32 %v796_v58, %v795_v28 }
  0xae   : > { %v987_v4 = vsel %vm3793_vm8, %v983_v15, 0.0  ;;  %vm5746_vm10 = vcmp.le.f32.partialorder %v3130_v0, %v3156_v16  ;;  %v989_v62 = vsel %vm3805_vm12, %v985_v41, 0.0  ;;  %vm5749_vm0 = vcmp.le.f32.partialorder %v3160_v17, %v3173_v23 }
  0xaf   : > { %vm3845_vm7 = vmand %vm5746_vm10, %vm1017_vm5  ;;  %v5750_v1 = vmov 0  ;;  %v1029_v28 = vmul.f32 %v1025_v3, %v3457_v12  ;;  %v1031_v55 = vmul.f32 %v1027_v8, %v3518_v53  ;;  %vm1064_vm8 = vcmp.le.f32.partialorder %v3138_v5, %v3203_v52 }
  0xb0   : > { %vm3854_vm3 = vmand %vm5749_vm0, %vm1020_vm1  ;;  %v846_v25 = vrot.slane %v3743_v9, 1  ;;  %v3864_v58 = vadd.f32 %v894_v46, %v3706_v49  ;;  %v942_v60 = vrot.slane %v941_v14, 4  ;;  %vm5752_vm12 = vcmp.le.f32.partialorder %v3148_v10, %v3156_v16 }
  0xb1   : > { %v5751_v1 = vsel %vm3854_vm3, 4294967295, %v5750_v1  ;;  %vm1023_vm5 = vmand %vm5752_vm12, %vm1019_vm6  ;;  %vm1066_vm1 = vcmp.le.f32.partialorder %v3160_v17, %v3203_v52  ;;  %v1033_v34 = vadd.f32 %v1029_v28, %v3040_v26  ;;  %v1035_v15 = vadd.f32 %v1031_v55, %v3042_v27 }
  0xb2   : > { %vm1068_vm0 = vcmp.gt.f32.partialorder %v3188_v39, %v3203_v52  ;;  %v991_v49 = vadd.f32 %v989_v62, %v987_v4  ;;  %vm1065_vm3 = vcmp.le.f32.partialorder %v3148_v10, %v3185_v38  ;;  %vm1070_vm6 = vcmp.gt.f32.partialorder %v3191_v40, %v3203_v52 }
  0xb3   : > { %vm3884_vm12 = vmand %vm1064_vm8, %vm1068_vm0  ;;  %v5753_v16 = vmov 0  ;;  %v1075_v46 = vsub.f32 %v3185_v38, %v3130_v0  ;;  %v1037_v41 = vsel %vm3845_vm7, %v1033_v34, 0.0  ;;  %v1039_v3 = vsel %vm1023_vm5, %v1035_v15, 0.0 }
  0xb4   : > { %v5754_v16 = vsel %vm3884_vm12, 4294967295, %v5753_v16  ;;  %vm1067_vm10 = vcmp.gt.f32.partialorder %v3176_v29, %v3185_v38  ;;  %v1041_v8 = vadd.f32 %v1039_v3, %v1037_v41  ;;  %vm1069_vm8 = vcmp.gt.f32.partialorder %v3179_v32, %v3185_v38  ;;  %vm3901_vm0 = vmand %vm1066_vm1, %vm1070_vm6 }
  0xb5   : > { %v5755_v62 = vmov 0  ;;  %v1077_v56 = vsub.f32 %v3185_v38, %v3148_v10  ;;  %v3910_v55 = vadd.f32 %v846_v25, %v3743_v9  ;;  %v3912_v34 = vadd.f32 %v942_v60, %v941_v14 }
  0xb6   : > { %v5756_v62 = vsel %vm3901_vm0, 4294967295, %v5755_v62  ;;  %v1079_v15 = vmul.f32 %v1075_v46, %v3457_v12  ;;  %v992_v41 = vrot.slane %v991_v49, 4  ;;  %v1042_v3 = vrot.slane %v1041_v8, 4  ;;  %vm3930_vm0 = vmand %vm1065_vm3, %vm1069_vm8 }
  0xb7   : > { %vm5757_vm5 = vcmp.le.f32.partialorder %v3130_v0, %v3185_v38  ;;  %v1081_v28 = vmul.f32 %v1077_v56, %v3518_v53  ;;  %vm1118_vm7 = vcmp.gt.f32.partialorder %v3188_v39, %v3071_v42  ;;  %vm1117_vm3 = vcmp.gt.f32.partialorder %v3176_v29, %v3207_v57 }
  0xb8   : > { %vm3920_vm1 = vmand %vm5757_vm5, %vm1067_vm10  ;;  %v1083_v14 = vadd.f32 %v1079_v15, %v3040_v26  ;;  %v1043_v25 = vadd.f32 %v1042_v3, %v1041_v8  ;;  %vm1120_vm8 = vcmp.gt.f32.partialorder %v3191_v40, %v3071_v42  ;;  %vm1119_vm10 = vcmp.gt.f32.partialorder %v3179_v32, %v3207_v57 }
  0xb9   : > { %v1085_v60 = vadd.f32 %v1081_v28, %v3042_v27  ;;  %vm5762_vm5 = vcmp.le.f32.partialorder %v3138_v5, %v3071_v42  ;;  %v5763_v46 = vmov 0  ;;  %v1125_v8 = vsub.f32 %v3207_v57, %v3130_v0 }
  0xba   : > { %v1087_v38 = vsel %vm3920_vm1, %v1083_v14, 0.0  ;;  %vm3953_vm6 = vmand %vm5762_vm5, %vm1118_vm7  ;;  %v1044_v28 = vrot.slane %v1043_v25, 2  ;;  %v1127_v15 = vsub.f32 %v3207_v57, %v3148_v10  ;;  %v944_v20 = vrot.slane %v3912_v34, 2 }
  0xbb   : > { %v5764_v46 = vsel %vm3953_vm6, 4294967295, %v5763_v46  ;;  %v1089_v4 = vsel %vm3930_vm0, %v1085_v60, 0.0  ;;  %vm5765_vm7 = vcmp.le.f32.partialorder %v3160_v17, %v3071_v42  ;;  %v5766_v56 = vmov 0 }
  0xbc   : > { %v1091_v31 = vadd.f32 %v1089_v4, %v1087_v38  ;;  %vm3972_vm1 = vmand %vm5765_vm7, %vm1120_vm8  ;;  %v1129_v9 = vmul.f32 %v1125_v8, %v3457_v12  ;;  %v3977_v60 = vadd.f32 %v992_v41, %v991_v49  ;;  %vm5768_vm0 = vcmp.le.f32.partialorder %v3130_v0, %v3207_v57 }
  0xbd   : > { %v5767_v56 = vsel %vm3972_vm1, 4294967295, %v5766_v56  ;;  %vm3985_vm5 = vmand %vm5768_vm0, %vm1117_vm3  ;;  %v1131_v38 = vmul.f32 %v1127_v15, %v3518_v53  ;;  %vm1164_vm7 = vcmp.le.f32.partialorder %v3138_v5, %v3075_v43  ;;  %v1045_v49 = vadd.f32 %v1044_v28, %v1043_v25 }
  0xbe   : > { %v1092_v41 = vrot.slane %v1091_v31, 4  ;;  %vm5771_vm1 = vcmp.le.f32.partialorder %v3148_v10, %v3207_v57  ;;  %v1133_v4 = vadd.f32 %v1129_v9, %v3040_v26  ;;  %vm1166_vm0 = vcmp.le.f32.partialorder %v3160_v17, %v3075_v43 }
  0xbf   : > { %vm4000_vm3 = vmand %vm5771_vm1, %vm1119_vm10  ;;  %v1135_v15 = vadd.f32 %v1131_v38, %v3042_v27  ;;  %vm1167_vm6 = vcmp.gt.f32.partialorder %v3176_v29, %v3664_v50  ;;  %vm1168_vm12 = vcmp.gt.f32.partialorder %v3188_v39, %v3075_v43  ;;  %vm1170_vm10 = vcmp.gt.f32.partialorder %v3191_v40, %v3075_v43 }
  0xc0   : > { %v1093_v57 = vadd.f32 %v1092_v41, %v1091_v31  ;;  %v1137_v25 = vsel %vm3985_vm5, %v1133_v4, 0.0  ;;  %vm4018_vm1 = vmand %vm1164_vm7, %vm1168_vm12  ;;  %v5774_v28 = vmov 0  ;;  %v1175_v9 = vsub.f32 %v3664_v50, %v3130_v0 }
  0xc1   : > { %v5775_v28 = vsel %vm4018_vm1, 4294967295, %v5774_v28  ;;  %v1139_v38 = vsel %vm4000_vm3, %v1135_v15, 0.0  ;;  %vm1169_vm8 = vcmp.gt.f32.partialorder %v3179_v32, %v3664_v50  ;;  %v1177_v3 = vsub.f32 %v3664_v50, %v3148_v10  ;;  %vm4035_vm12 = vmand %vm1166_vm0, %vm1170_vm10 }
  0xc2   : > { %5776 = vst [vmem:[#allocation36_spill] sm:$0xff] %v5775_v28  ;;  %v1094_v41 = vrot.slane %v1093_v57, 2  ;;  %v1141_v4 = vadd.f32 %v1139_v38, %v1137_v25  ;;  %v5777_v24 = vmov 0  ;;  %v1179_v15 = vmul.f32 %v1175_v9, %v3457_v12 }
  0xc3   : > { %v5778_v24 = vsel %vm4035_vm12, 4294967295, %v5777_v24  ;;  %v1046_v14 = vrot.slane %v1045_v49, 1  ;;  %vm5780_vm5 = vcmp.le.f32.partialorder %v3130_v0, %v3664_v50  ;;  %v1181_v38 = vmul.f32 %v1177_v3, %v3518_v53 }
  0xc4   : > { %5779 = vst [vmem:[#allocation37_spill] sm:$0xff] %v5778_v24  ;;  %vm4048_vm7 = vmand %vm5780_vm5, %vm1167_vm6  ;;  %vm1214_vm0 = vcmp.le.f32.partialorder %v3138_v5, %v3079_v44  ;;  %v1142_v9 = vrot.slane %v1141_v4, 4  ;;  %vm5783_vm10 = vcmp.le.f32.partialorder %v3148_v10, %v3664_v50  ;;  %v1183_v31 = vadd.f32 %v1179_v15, %v3040_v26 }
  0xc5   : > { %vm4060_vm12 = vmand %vm5783_vm10, %vm1169_vm8  ;;  %v1095_v3 = vadd.f32 %v1094_v41, %v1093_v57  ;;  %v1185_v24 = vadd.f32 %v1181_v38, %v3042_v27  ;;  %vm1217_vm3 = vcmp.gt.f32.partialorder %v3176_v29, %v3681_v30  ;;  %vm1218_vm8 = vcmp.gt.f32.partialorder %v3188_v39, %v3079_v44 }
  0xc6   : > { %v1143_v50 = vadd.f32 %v1142_v9, %v1141_v4  ;;  %v1187_v28 = vsel %vm4048_vm7, %v1183_v31, 0.0  ;;  %vm1219_vm10 = vcmp.gt.f32.partialorder %v3179_v32, %v3681_v30  ;;  %vm1220_vm6 = vcmp.gt.f32.partialorder %v3191_v40, %v3079_v44  ;;  %vm4085_vm5 = vmand %vm1214_vm0, %vm1218_vm8 }
  0xc7   : > { %v1189_v57 = vsel %vm4060_vm12, %v1185_v24, 0.0  ;;  %v5786_v41 = vmov 0  ;;  %v1225_v4 = vsub.f32 %v3681_v30, %v3130_v0  ;;  %v1227_v15 = vsub.f32 %v3681_v30, %v3148_v10 }
  0xc8   : > { %v5787_v41 = vsel %vm4085_vm5, 4294967295, %v5786_v41  ;;  %v4096_v25 = vadd.f32 %v944_v20, %v3912_v34  ;;  %v1191_v8 = vadd.f32 %v1189_v57, %v1187_v28  ;;  %vm5789_vm12 = vcmp.le.f32.partialorder %v3130_v0, %v3681_v30 }
  0xc9   : > { %5788 = vst [vmem:[#allocation38_spill] sm:$0xff] %v5787_v41  ;;  %vm4102_vm7 = vmand %vm5789_vm12, %vm1217_vm3  ;;  %v4108_v31 = vadd.f32 %v1046_v14, %v1045_v49  ;;  %vm5792_vm0 = vcmp.le.f32.partialorder %v3160_v17, %v3079_v44  ;;  %v5793_v20 = vmov 0  ;;  %v1229_v34 = vmul.f32 %v1225_v4, %v3457_v12  ;;  %v5947_v44 = vld [vmem:[#allocation32_spill] sm:$0xff] }
  0xca   : > { %vm4113_vm8 = vmand %vm5792_vm0, %vm1220_vm6  ;;  %v1231_v28 = vmul.f32 %v1227_v15, %v3518_v53  ;;  %v1096_v57 = vrot.slane %v1095_v3, 1  ;;  %v1144_v24 = vrot.slane %v1143_v50, 2  ;;  %v1192_v41 = vrot.slane %v1191_v8, 4 }
  0xcb   : > { %v5794_v20 = vsel %vm4113_vm8, 4294967295, %v5793_v20  ;;  %vm5796_vm12 = vcmp.le.f32.partialorder %v3148_v10, %v3681_v30  ;;  %v1233_v49 = vadd.f32 %v1229_v34, %v3040_v26  ;;  %vm1268_vm8 = vcmp.gt.f32.partialorder %v3188_v39, %v3083_v45 }
  0xcc   : > { %5795 = vst [vmem:[#allocation39_spill] sm:$0xff] %v5794_v20  ;;  %vm4127_vm6 = vmand %vm5796_vm12, %vm1219_vm10  ;;  %v1235_v4 = vadd.f32 %v1231_v28, %v3042_v27  ;;  %v1193_v15 = vadd.f32 %v1192_v41, %v1191_v8  ;;  %vm1267_vm12 = vcmp.gt.f32.partialorder %v3176_v29, %v3689_v21  ;;  %vm1270_vm0 = vcmp.gt.f32.partialorder %v3191_v40, %v3083_v45 }
  0xcd   : > { %v1237_v30 = vsel %vm4102_vm7, %v1233_v49, 0.0  ;;  %vm5799_vm3 = vcmp.le.f32.partialorder %v3138_v5, %v3083_v45  ;;  %v5800_v41 = vmov 0  ;;  %v1275_v8 = vsub.f32 %v3689_v21, %v3130_v0 }
  0xce   : > { %v1239_v34 = vsel %vm4127_vm6, %v1235_v4, 0.0  ;;  %vm4152_vm5 = vmand %vm5799_vm3, %vm1268_vm8  ;;  %v1194_v9 = vrot.slane %v1193_v15, 2  ;;  %vm1269_vm7 = vcmp.gt.f32.partialorder %v3179_v32, %v3689_v21  ;;  %v1277_v38 = vsub.f32 %v3689_v21, %v3148_v10 }
  0xcf   : > { %v5801_v41 = vsel %vm4152_vm5, 4294967295, %v5800_v41  ;;  %v1241_v20 = vadd.f32 %v1239_v34, %v1237_v30  ;;  %v4164_v14 = vadd.f32 %v1096_v57, %v1095_v3  ;;  %vm5803_vm8 = vcmp.le.f32.partialorder %v3160_v17, %v3083_v45 }
  0xd0   : > { %5802 = vst [vmem:[#allocation40_spill] sm:$0xff] %v5801_v41  ;;  %vm4169_vm3 = vmand %vm5803_vm8, %vm1270_vm0  ;;  %v5804_v49 = vmov 0  ;;  %v1279_v30 = vmul.f32 %v1275_v8, %v3457_v12  ;;  %v1145_v34 = vadd.f32 %v1144_v24, %v1143_v50  ;;  %vm5807_vm10 = vcmp.le.f32.partialorder %v3130_v0, %v3689_v21 }
  0xd1   : > { %v5805_v49 = vsel %vm4169_vm3, 4294967295, %v5804_v49  ;;  %v1242_v28 = vrot.slane %v1241_v20, 4  ;;  %vm4184_vm0 = vmand %vm5807_vm10, %vm1267_vm12  ;;  %v1281_v57 = vmul.f32 %v1277_v38, %v3518_v53  ;;  %v4191_v8 = vadd.f32 %v1194_v9, %v1193_v15  ;;  %v5824_v15 = vld [vmem:[#allocation22_spill] sm:$0xff] }
  0xd2   : > { %5806 = vst [vmem:[#allocation41_spill] sm:$0xff] %v5805_v49  ;;  %vm5810_vm6 = vcmp.le.f32.partialorder %v3148_v10, %v3689_v21  ;;  %v1283_v24 = vadd.f32 %v1279_v30, %v3040_v26  ;;  %vm1318_vm12 = vcmp.gt.f32.partialorder %v3188_v39, %v3090_v47  ;;  %vm5813_vm10 = vcmp.le.f32.partialorder %v3138_v5, %v3090_v47 }
  0xd3   : > { %vm4196_vm3 = vmand %vm5810_vm6, %vm1269_vm7  ;;  %v1243_v38 = vadd.f32 %v1242_v28, %v1241_v20  ;;  %v1285_v4 = vadd.f32 %v1281_v57, %v3042_v27  ;;  %vm1317_vm7 = vcmp.gt.f32.partialorder %v3176_v29, %v3719_v33  ;;  %vm1320_vm6 = vcmp.gt.f32.partialorder %v3191_v40, %v3090_v47 }
  0xd4   : > { %v1287_v21 = vsel %vm4184_vm0, %v1283_v24, 0.0  ;;  %vm4217_vm5 = vmand %vm5813_vm10, %vm1318_vm12  ;;  %v5814_v9 = vmov 0  ;;  %v1325_v20 = vsub.f32 %v3719_v33, %v3130_v0  ;;  %vm1319_vm0 = vcmp.gt.f32.partialorder %v3179_v32, %v3719_v33 }
  0xd5   : > { %v5815_v9 = vsel %vm4217_vm5, 4294967295, %v5814_v9  ;;  %v1244_v28 = vrot.slane %v1243_v38, 2  ;;  %v1289_v30 = vsel %vm4196_vm3, %v1285_v4, 0.0  ;;  %v1327_v3 = vsub.f32 %v3719_v33, %v3148_v10 }
  0xd6   : > { %5816 = vst [vmem:[#allocation42_spill] sm:$0xff] %v5815_v9  ;;  %v1146_v57 = vrot.slane %v1145_v34, 1  ;;  %v1291_v24 = vadd.f32 %v1289_v30, %v1287_v21  ;;  %vm5817_vm10 = vcmp.le.f32.partialorder %v3160_v17, %v3090_v47  ;;  %v5818_v9 = vmov 0 }
  0xd7   : > { %vm4234_vm12 = vmand %vm5817_vm10, %vm1320_vm6  ;;  %v1329_v4 = vmul.f32 %v1325_v20, %v3457_v12  ;;  %v1196_v50 = vrot.slane %v4191_v8, 1  ;;  %vm5821_vm3 = vcmp.le.f32.partialorder %v3130_v0, %v3719_v33  ;;  %v1331_v30 = vmul.f32 %v1327_v3, %v3518_v53 }
  0xd8   : > { %v5819_v9 = vsel %vm4234_vm12, 4294967295, %v5818_v9  ;;  %vm4248_vm8 = vmand %vm5821_vm3, %vm1317_vm7  ;;  %vm1364_vm10 = vcmp.le.f32.partialorder %v3138_v5, %v5824_v15  ;;  %v1245_v20 = vadd.f32 %v1244_v28, %v1243_v38  ;;  %vm5825_vm12 = vcmp.le.f32.partialorder %v3148_v10, %v3719_v33 }
  0xd9   : > { %5820 = vst [vmem:[#allocation43_spill] sm:$0xff] %v5819_v9  ;;  %v1292_v9 = vrot.slane %v1291_v24, 4  ;;  %vm4260_vm5 = vmand %vm5825_vm12, %vm1319_vm0  ;;  %v1333_v41 = vadd.f32 %v1329_v4, %v3040_v26  ;;  %vm1366_vm7 = vcmp.le.f32.partialorder %v3160_v17, %v5824_v15  ;;  %v1335_v3 = vadd.f32 %v1331_v30, %v3042_v27 }
  0xda   : > { %vm1368_vm1 = vcmp.gt.f32.partialorder %v3188_v39, %v5824_v15  ;;  %vm1370_vm0 = vcmp.gt.f32.partialorder %v3191_v40, %v5824_v15  ;;  %v5828_v28 = vmov 0  ;;  %v1375_v4 = vsub.f32 %v3723_v51, %v3130_v0 }
  0xdb   : > { %v1293_v33 = vadd.f32 %v1292_v9, %v1291_v24  ;;  %v1337_v38 = vsel %vm4248_vm8, %v1333_v41, 0.0  ;;  %vm4278_vm12 = vmand %vm1364_vm10, %vm1368_vm1  ;;  %v1339_v30 = vsel %vm4260_vm5, %v1335_v3, 0.0  ;;  %vm1369_vm6 = vcmp.gt.f32.partialorder %v3179_v32, %v3723_v51 }
  0xdc   : > { %v5829_v28 = vsel %vm4278_vm12, 4294967295, %v5828_v28  ;;  %v1377_v9 = vsub.f32 %v3723_v51, %v3148_v10  ;;  %v1341_v21 = vadd.f32 %v1339_v30, %v1337_v38  ;;  %vm4295_vm1 = vmand %vm1366_vm7, %vm1370_vm0  ;;  %v1379_v3 = vmul.f32 %v1375_v4, %v3457_v12  ;;  %v5849_v38 = vld [vmem:[#allocation14_spill] sm:$0xff] }
  0xdd   : > { %5830 = vst [vmem:[#allocation44_spill] sm:$0xff] %v5829_v28  ;;  %v1294_v24 = vrot.slane %v1293_v33, 2  ;;  %v5831_v28 = vmov 0  ;;  %v1147_v47 = vadd.f32 %v1146_v57, %v1145_v34  ;;  %vm5834_vm5 = vcmp.gt.f32.partialorder %v3176_v29, %v3723_v51 }
  0xde   : > { %v5832_v28 = vsel %vm4295_vm1, 4294967295, %v5831_v28  ;;  %vm5835_vm8 = vcmp.le.f32.partialorder %v3130_v0, %v3723_v51  ;;  %v1381_v30 = vmul.f32 %v1377_v9, %v3518_v53  ;;  %vm5838_vm7 = vcmask 1040384  }
  0xdf   : > { %5833 = vst [vmem:[#allocation45_spill] sm:$0xff] %v5832_v28  ;;  %vm4308_vm10 = vmand %vm5835_vm8, %vm5834_vm5  ;;  %v1405_v41 = vsel %vm5838_vm7, %v3741_v59, %v3831_v61  ;;  %vm5554_vm0 = vcmask 1045504   ;;  %v1295_v34 = vadd.f32 %v1294_v24, %v1293_v33  ;;  %v1342_v29 = vrot.slane %v1341_v21, 4  ;;  %v399_v61 = vld [vmem:[%s3002_s29 + $0x18] sm:$0xff] }
  0xe0   : > { %vm5839_vm3 = vmmov %vm5838_vm7  ;;  %vm5840_vm5 = vcmp.le.f32.partialorder %v3148_v10, %v3723_v51  ;;  %v1383_v53 = vadd.f32 %v1379_v3, %v3040_v26  ;;  %vm5843_vm7 = vcmask 1041408   ;;  %v1246_v57 = vrot.slane %v1245_v20, 1 }
  0xe1   : > { %v1422_v12 = vsel %vm5839_vm3, %v4108_v31, %v4164_v14  ;;  %vm4325_vm8 = vmand %vm5840_vm5, %vm1369_vm6  ;;  %v1407_v59 = vsel %vm5843_vm7, %v1405_v41, %v3833_v11  ;;  %v5844_v31 = vrot.slane %v3977_v60, 2  ;;  %v1385_v32 = vadd.f32 %v1381_v30, %v3042_v27 }
  0xe2   : > { %vm5845_vm3 = vcmask 1042432   ;;  %v946_v51 = vrot.slane %v4096_v25, 1  ;;  %v1197_v33 = vadd.f32 %v1196_v50, %v4191_v8  ;;  %v1343_v4 = vadd.f32 %v1342_v29, %v1341_v21  ;;  %vm5847_vm6 = vmmov %vm5843_vm7 }
  0xe3   : > { %v995_v14 = vadd.f32 %v5844_v31, %v3977_v60  ;;  %v1410_v10 = vsel %vm5845_vm3, %v1407_v59, %v3835_v18  ;;  %v1387_v26 = vsel %vm4308_vm10, %v1383_v53, 0.0  ;;  %v5846_v11 = vrot.slane %v3864_v58, 1  ;;  %vm5850_vm10 = vmmov %vm5845_vm3 }
  0xe4   : > { %v1389_v60 = vsel %vm4325_vm8, %v1385_v32, 0.0  ;;  %v1424_v27 = vsel %vm5847_vm6, %v1422_v12, %v1147_v47  ;;  %v527_v9 = vrot.slane %v399_v61, 1  ;;  %v1296_v24 = vrot.slane %v1295_v34, 1 }
  0xe5   : > { %v897_v41 = vadd.f32 %v5846_v11, %v3864_v58  ;;  %v1344_v18 = vrot.slane %v1343_v4, 2  ;;  %v1391_v3 = vadd.f32 %v1389_v60, %v1387_v26  ;;  %vm5848_vm5 = vcmask 1043456  }
  0xe6   : > { %v1412_v8 = vsel %vm5848_vm5, %v1410_v10, %v3910_v55  ;;  %v996_v50 = vrot.slane %v995_v14, 1  ;;  %v1247_v21 = vadd.f32 %v1246_v57, %v1245_v20  ;;  %v1437_v30 = vand.u32 2, %v5849_v38  ;;  %vm5855_vm6 = vmmov %vm5848_vm5 }
  0xe7   : > { %v947_v29 = vadd.f32 %v946_v51, %v4096_v25  ;;  %v1345_v53 = vadd.f32 %v1344_v18, %v1343_v4  ;;  %v1392_v58 = vrot.slane %v1391_v3, 4  ;;  %v1426_v0 = vsel %vm5850_vm10, %v1424_v27, %v1197_v33 }
  0xe8   : > { %vm5851_vm8 = vcmask 1044480   ;;  %v1442_v47 = vand.u32 1, %v2993_v13  ;;  %v5852_v12 = vrot.slane %v3704_v6, 1  ;;  %vm5853_vm7 = vcmask 1046528  }
  0xe9   : > { %v1415_v59 = vsel %vm5851_vm8, %v1412_v8, %v897_v41  ;;  %vm5854_vm3 = vmmov %vm5853_vm7  ;;  %v1297_v32 = vadd.f32 %v1296_v24, %v1295_v34  ;;  %v1346_v20 = vrot.slane %v1345_v53, 1  ;;  %v1393_v57 = vadd.f32 %v1392_v58, %v1391_v3 }
  0xea   : > { %v528_v31 = vsel %vm5853_vm7, %v5852_v12, %v527_v9  ;;  %v534_v55 = vsel %vm5854_vm3, %v527_v9, %v399_v61  ;;  %v1443_v10 = vand.u32 1, %v5849_v38  ;;  %v997_v25 = vadd.f32 %v996_v50, %v995_v14 }
  0xeb   : > { %v1428_v51 = vsel %vm5855_vm6, %v1426_v0, %v1247_v21  ;;  %v576_v33 = vsub.f32 %v3188_v39, %v3138_v5  ;;  %v578_v4 = vsub.f32 %v3191_v40, %v3160_v17  ;;  %v1394_v26 = vrot.slane %v1393_v57, 2 }
  0xec   : > { %v1418_v11 = vsel %vm5554_vm0, %v1415_v59, %v947_v29  ;;  %v536_v41 = vadd.f32 %v528_v31, %v3704_v6  ;;  %v538_v60 = vadd.f32 %v534_v55, %v399_v61  ;;  %v1347_v34 = vadd.f32 %v1346_v20, %v1345_v53 }
  0xed   : > { %v5856_v27 = vand.u32 2, %v2993_v13  ;;  %vm580_vm10 = vcmp.lt.f32.partialorder %v576_v33, 1e-05  ;;  %vm582_vm8 = vcmp.lt.f32.partialorder %v578_v4, 1e-05  ;;  %v1395_v14 = vadd.f32 %v1394_v26, %v1393_v57 }
  0xee   : > { %vm5859_vm7 = vcmask 1044480   ;;  %vm4375_vm3 = vcmp.eq.s32.totalorder %v1437_v30, 0  ;;  %vm5862_vm6 = vcmask 1046528   ;;  %vm4380_vm0 = vcmp.eq.s32.totalorder %v1442_v47, 0 }
  0xef   : > { %vm4370_vm5 = vcmp.eq.s32.totalorder %v5856_v27, 0  ;;  %v1430_v39 = vsel %vm5859_vm7, %v1428_v51, %v1297_v32  ;;  %v1420_v24 = vsel %vm5862_vm6, %v1418_v11, %v997_v25  ;;  %v584_v61 = vsel %vm580_vm10, 1.0, %v576_v33 }
  0xf0   : > { %v586_v18 = vsel %vm582_vm8, 1.0, %v578_v4  ;;  %v1396_v3 = vrot.slane %v1395_v14, 1  ;;  %vm5555_vm1 = vmmov 1   ;;  %v5865_v8 = vmov 0 }
  0xf1   : > { %vm4387_vm12 = vmxor %vm4370_vm5, %vm5555_vm1  ;;  %v4391_v50 = vmul.f32 0.5, %v536_v41  ;;  %v4393_v21 = vmul.f32 0.5, %v538_v60  ;;  %2703 = vrcp.f32 %v584_v61  ;;  %vm5867_vm7 = vcmask 1045504  }
  0xf2   : > { %v5866_v8 = vsel %vm4387_vm12, 4294967295, %v5865_v8  ;;  %v1432_v30 = vsel %vm5867_vm7, %v1430_v39, %v1347_v34  ;;  %vm4399_vm10 = vmxor %vm4375_vm3, %vm5555_vm1  ;;  %v5868_v29 = vmov 0  ;;  %vm4403_vm8 = vcmp.eq.s32.totalorder %v1443_v10, 0 }
  0xf3   : > { %v5869_v29 = vsel %vm4399_vm10, 4294967295, %v5868_v29  ;;  %v1498_v58 = vand.u32 4, %v2993_v13  ;;  %2705 = vrcp.f32 %v586_v18  ;;  %v1397_v0 = vadd.f32 %v1396_v3, %v1395_v14  ;;  %vm1482_vm6 = vmxor %vm4380_vm0, %vm4387_vm12 }
  0xf4   : > { %v1499_v59 = vand.u32 4, %v5849_v38  ;;  %v1450_v47 = vrot.slane %v1420_v24, 1  ;;  %v1468_v12 = vrot.slane %v1420_v24, 7  ;;  %vm5872_vm7 = vcmask 1046528   ;;  %vm1483_vm1 = vmxor %vm4403_vm8, %vm4399_vm10 }
  0xf5   : > { %v1434_v31 = vsel %vm5872_vm7, %v1432_v30, %v1397_v0  ;;  %v566_v55 = vrot.slane %v4391_v50, 1  ;;  %v567_v32 = vrot.slane %v4393_v21, 1  ;;  %vm4420_vm13 = vcmp.eq.s32.totalorder %v1498_v58, 0 }
  0xf6   : > { %v1451_v20 = vrot.slane %v1434_v31, 1  ;;  %v1464_v57 = vrot.slane %v1434_v31, 7  ;;  %v5873_v10 = vmov 0  ;;  %vm5875_vm4 = vmmov 1  }
  0xf7   : > { %v5874_v10 = vsel %vm4420_vm13, 4294967295, %v5873_v10  ;;  %vm4425_vm9 = vmxor %vm1482_vm6, %vm5875_vm4  ;;  %v5876_v25 = vmov 0  ;;  %vm4429_vm7 = vcmp.eq.s32.totalorder %v1499_v59, 0  ;;  %v5879_v51 = vmov 0 }
  0xf8   : > { %v5877_v25 = vsel %vm4425_vm9, 4294967295, %v5876_v25  ;;  %v5880_v51 = vsel %vm4429_vm7, 4294967295, %v5879_v51  ;;  %v4434_v33 = vadd.s32 16, %v2993_v13  ;;  %v4437_v4 = vadd.s32 24, %v2993_v13  ;;  %vm4444_vm2 = vmxor %vm1483_vm1, %vm5875_vm4 }
  0xf9   : > { %5878 = vst [vmem:[#allocation14_spill] sm:$0xff] %v5877_v25  ;;  %vm5881_vm14 = vcmask 1046528   ;;  %vm5883_vm10 = vcmask 1040384   ;;  %v5885_v34 = vmov 0  ;;  %v5891_v0 = vmov 0 }
  0xfa   : > { %v1452_v26 = vsel %vm5881_vm14, %v1450_v47, %v1451_v20  ;;  %vm5882_vm12 = vmmov %vm5881_vm14  ;;  %v1470_v41 = vsel %vm5883_vm10, %v1468_v12, %v1464_v57  ;;  %v5886_v34 = vsel %vm4444_vm2, 4294967295, %v5885_v34 }
  0xfb   : > { %v1462_v11 = vsel %vm5882_vm12, %v1451_v20, %v1450_v47  ;;  %vm5884_vm6 = vmmov %vm5883_vm10  ;;  %5887 = vst [vmem:[#allocation46_spill] sm:$0xff] %v5886_v34  ;;  %v568_v39 = vsel %vm5882_vm12, %v566_v55, %v567_v32 }
  0xfc   : > { %v1476_v60 = vsel %vm5884_vm6, %v1464_v57, %v1468_v12  ;;  %v1480_v13 = vsel %vm4403_vm8, %v1462_v11, %v1470_v41  ;;  %vm4455_vm14 = vmxor %vm4420_vm13, %vm5875_vm4 }
  0xfd   : > { %v1478_v27 = vsel %vm4380_vm0, %v1452_v26, %v1476_v60  ;;  %vm5890_vm1 = vmmov %vm5882_vm12  ;;  %v1488_v3 = vmin.f32 %v1434_v31, %v1480_v13  ;;  %v1492_v58 = vmax.f32 %v1434_v31, %v1480_v13 }
  0xfe   : > { %v574_v61 = vsel %vm5890_vm1, %v567_v32, %v4393_v21  ;;  %v1486_v18 = vmin.f32 %v1420_v24, %v1478_v27  ;;  %v1490_v30 = vmax.f32 %v1420_v24, %v1478_v27  ;;  %vm4465_vm10 = vmxor %vm4429_vm7, %vm5875_vm4  ;;  %v588_v24 = vsub.f32 %v568_v39, %v4391_v50  ;;  %v2704_v57 = vpop.eup %2703 }
  0xff   : > { %v5892_v0 = vsel %vm4465_vm10, 4294967295, %v5891_v0  ;;  %v1496_v47 = vsel %vm4444_vm2, %v1488_v3, %v1492_v58  ;;  %v590_v12 = vsub.f32 %v574_v61, %v4393_v21  ;;  %vm1541_vm12 = vmxor %vm4375_vm3, %vm4465_vm10  ;;  %vm5893_vm1 = vcmask 1045504  }
 0x100   : > { %v1494_v59 = vsel %vm4425_vm9, %v1486_v18, %v1490_v30  ;;  %v1509_v55 = vrot.slane %v1496_v47, 2  ;;  %v1522_v32 = vrot.slane %v1496_v47, 6  ;;  %v2706_v60 = vpop.eup %2705  ;;  %vm5894_vm6 = vmmov %vm5893_vm1  ;;  %vm5895_vm2 = vcmask 1041408  }
 0x101   : > { %v1508_v31 = vrot.slane %v1494_v59, 2  ;;  %v1526_v20 = vrot.slane %v1494_v59, 6  ;;  %vm5896_vm9 = vmmov %vm5895_vm2  ;;  %v5898_v18 = vmov 0  ;;  %v5901_v58 = vmov 0 }
 0x102   : > { %vm5897_vm7 = vmxor %vm4370_vm5, %vm4455_vm14 }
 0x103   : > { %v1510_v27 = vsel %vm5893_vm1, %v1508_v31, %v1509_v55  ;;  %v1520_v13 = vsel %vm5894_vm6, %v1509_v55, %v1508_v31  ;;  %v1528_v39 = vsel %vm5895_vm2, %v1526_v20, %v1522_v32  ;;  %v1534_v61 = vsel %vm5896_vm9, %v1522_v32, %v1526_v20  ;;  %vm4496_vm13 = vmxor %vm5897_vm7, %vm5875_vm4 }
 0x104   : > { %v5899_v18 = vsel %vm4496_vm13, 4294967295, %v5898_v18  ;;  %v1536_v3 = vsel %vm4370_vm5, %v1510_v27, %v1534_v61  ;;  %v1538_v30 = vsel %vm4375_vm3, %v1520_v13, %v1528_v39  ;;  %vm4505_vm2 = vmxor %vm1541_vm12, %vm5875_vm4  ;;  %v4509_v31 = vmul.f32 %v2704_v57, %v588_v24  ;;  %v5905_v27 = vld [vmem:[#allocation24_spill] sm:$0xff]  ;;  %v5907_v61 = vld [vmem:[#allocation25_spill] sm:$0xff] }
 0x105   : > { %5900 = vst [vmem:[#allocation47_spill] sm:$0xff] %v5899_v18  ;;  %v5902_v58 = vsel %vm4505_vm2, 4294967295, %v5901_v58  ;;  %v598_v55 = vmul.f32 %v2706_v60, %v590_v12  ;;  %v1544_v32 = vmin.f32 %v1494_v59, %v1536_v3  ;;  %v1546_v20 = vmin.f32 %v1496_v47, %v1538_v30  ;;  %v5909_v12 = vld [vmem:[#allocation15_spill] sm:$0xff]  ;;  %vm1593_vm6 = vmxor %vm4403_vm8, %vm4465_vm10 }
 0x106   : > { %5903 = vst [vmem:[#allocation48_spill] sm:$0xff] %v5902_v58  ;;  %v1548_v49 = vmax.f32 %v1494_v59, %v1536_v3  ;;  %v1550_v41 = vmax.f32 %v1496_v47, %v1538_v30  ;;  %vm5904_vm9 = vcmp.ge.s32.totalorder %v5849_v38, 14  ;;  %v5906_v13 = vsub.f32 %v5905_v27, %v3138_v5 }
 0x107   : > { %v4513_v11 = vsel %vm5904_vm9, 0.0, %v598_v55  ;;  %v5908_v26 = vsub.f32 %v5907_v61, %v3138_v5  ;;  %v5910_v57 = vsub.f32 %v5909_v12, %v3138_v5  ;;  %v5912_v3 = vsub.f32 %v5907_v61, %v3160_v17 }
 0x108   : > { %v630_v39 = vmul.f32 %v5906_v13, %v4509_v31  ;;  %v1552_v38 = vsel %vm4496_vm13, %v1544_v32, %v1548_v49  ;;  %v1554_v47 = vsel %vm4505_vm2, %v1546_v20, %v1550_v41  ;;  %vm5913_vm12 = vcmask 1046528   ;;  %vm5917_vm2 = vmxor %vm4380_vm0, %vm4455_vm14 }
 0x109   : > { %v680_v24 = vmul.f32 %v5908_v26, %v4509_v31  ;;  %v730_v59 = vmul.f32 %v5910_v57, %v4509_v31  ;;  %v5911_v26 = vsub.f32 %v5905_v27, %v3160_v17  ;;  %v682_v30 = vmul.f32 %v5912_v3, %v4513_v11  ;;  %vm5914_vm1 = vmmov %vm5913_vm12 }
 0x10a   : > { %v1560_v55 = vrot.slane %v1552_v38, 1  ;;  %v1561_v49 = vrot.slane %v1554_v47, 1  ;;  %v1574_v32 = vrot.slane %v1554_v47, 7  ;;  %v1578_v13 = vrot.slane %v1552_v38, 7  ;;  %vm4561_vm13 = vmxor %vm5917_vm2, %vm5875_vm4 }
 0x10b   : > { %v632_v60 = vmul.f32 %v5911_v26, %v4513_v11  ;;  %v634_v41 = vadd.f32 %v630_v39, %v4391_v50  ;;  %v684_v27 = vadd.f32 %v680_v24, %v4391_v50  ;;  %v686_v57 = vadd.f32 %v682_v30, %v4393_v21 }
 0x10c   : > { %v1562_v61 = vsel %vm5913_vm12, %v1560_v55, %v1561_v49  ;;  %v1572_v26 = vsel %vm5914_vm1, %v1561_v49, %v1560_v55  ;;  %vm5915_vm9 = vcmask 1040384   ;;  %v5918_v39 = vmov 0  ;;  %vm4570_vm12 = vmxor %vm1593_vm6, %vm5875_vm4 }
 0x10d   : > { %v636_v20 = vadd.f32 %v632_v60, %v4393_v21  ;;  %v1580_v3 = vsel %vm5915_vm9, %v1578_v13, %v1574_v32  ;;  %vm5916_vm7 = vmmov %vm5915_vm9  ;;  %v5919_v39 = vsel %vm4561_vm13, 4294967295, %v5918_v39  ;;  %v5921_v30 = vmov 0 }
 0x10e   : > { %v1586_v58 = vsel %vm5916_vm7, %v1574_v32, %v1578_v13  ;;  %5920 = vst [vmem:[#allocation24_spill] sm:$0xff] %v5919_v39  ;;  %v1590_v60 = vsel %vm4403_vm8, %v1572_v26, %v1580_v3  ;;  %v5922_v30 = vsel %vm4570_vm12, 4294967295, %v5921_v30  ;;  %v638_v49 = vsel %vm3216_vm15, %v634_v41, 0.0  ;;  %v5928_v26 = vld [vmem:[#allocation29_spill] sm:$0xff]  ;;  %v5931_v32 = vld [vmem:[#allocation30_spill] sm:$0xff] }
 0x10f   : > { %v1588_v24 = vsel %vm4380_vm0, %v1562_v61, %v1586_v58  ;;  %5923 = vst [vmem:[#allocation25_spill] sm:$0xff] %v5922_v30  ;;  %v640_v13 = vsel %vm3240_vm11, %v636_v20, 0.0  ;;  %v1598_v34 = vmin.f32 %v1554_v47, %v1590_v60  ;;  %v1602_v28 = vmax.f32 %v1554_v47, %v1590_v60  ;;  %v5926_v58 = vld [vmem:[#allocation28_spill] sm:$0xff] }
 0x110   : > { %v1596_v18 = vmin.f32 %v1552_v38, %v1588_v24  ;;  %v1600_v25 = vmax.f32 %v1552_v38, %v1588_v24  ;;  %v648_v15 = vadd.f32 %v640_v13, %v638_v49  ;;  %vm5927_vm2 = vnez %v5926_v58 }
 0x111   : > { %v688_v61 = vsel %vm5927_vm2, %v684_v27, 0.0  ;;  %vm5929_vm7 = vnez %v5928_v26  ;;  %v5930_v45 = vsub.f32 %v5909_v12, %v3160_v17  ;;  %v1606_v20 = vsel %vm4570_vm12, %v1598_v34, %v1602_v28 }
 0x112   : > { %v690_v3 = vsel %vm5929_vm7, %v686_v57, 0.0  ;;  %v1604_v41 = vsel %vm4561_vm13, %v1596_v18, %v1600_v25  ;;  %v734_v47 = vadd.f32 %v730_v59, %v4391_v50  ;;  %v1619_v60 = vrot.slane %v1606_v20, 4  ;;  %vm4613_vm7 = vmxor %vm4465_vm10, %vm5875_vm4 }
 0x113   : > { %v732_v55 = vmul.f32 %v5930_v45, %v4513_v11  ;;  %v698_v38 = vadd.f32 %v690_v3, %v688_v61  ;;  %v1618_v24 = vrot.slane %v1604_v41, 4  ;;  %v649_v27 = vrot.slane %v648_v15, 4  ;;  %v5933_v45 = vld [vmem:[#allocation16_spill] sm:$0xff]  ;;  %v5938_v61 = vld [vmem:[#allocation31_spill] sm:$0xff] }
 0x114   : > { %vm5932_vm15 = vnez %v5931_v32  ;;  %v5934_v12 = vsub.f32 %v5933_v45, %v3138_v5  ;;  %v5935_v28 = vsub.f32 %v5933_v45, %v3160_v17  ;;  %vm5936_vm11 = vcmask 1043456  }
 0x115   : > { %v736_v49 = vadd.f32 %v732_v55, %v4393_v21  ;;  %v699_v57 = vrot.slane %v698_v38, 4  ;;  %v738_v13 = vsel %vm5932_vm15, %v734_v47, 0.0  ;;  %v1620_v18 = vsel %vm5936_vm11, %v1618_v24, %v1619_v60  ;;  %vm5937_vm6 = vmmov %vm5936_vm11 }
 0x116   : > { %v780_v25 = vmul.f32 %v5934_v12, %v4509_v31  ;;  %v782_v34 = vmul.f32 %v5935_v28, %v4513_v11  ;;  %v1630_v59 = vsel %vm5937_vm6, %v1619_v60, %v1618_v24  ;;  %v650_v58 = vadd.f32 %v649_v27, %v648_v15 }
 0x117   : > { %vm5939_vm1 = vnez %v5938_v61  ;;  %vm5940_vm9 = vnez %v5874_v10  ;;  %vm5941_vm2 = vnez %v5880_v51  ;;  %v5942_v47 = vmov 0 }
 0x118   : > { %v740_v26 = vsel %vm5939_vm1, %v736_v49, 0.0  ;;  %v1632_v3 = vsel %vm5940_vm9, %v1620_v18, %v1630_v59  ;;  %v1634_v55 = vsel %vm5941_vm2, %v1630_v59, %v1620_v18  ;;  %v5943_v47 = vsel %vm4613_vm7, 4294967295, %v5942_v47 }
 0x119   : > { %5944 = vst [vmem:[#allocation15_spill] sm:$0xff] %v5943_v47  ;;  %v700_v32 = vadd.f32 %v699_v57, %v698_v38  ;;  %v748_v45 = vadd.f32 %v740_v26, %v738_v13  ;;  %v1640_v24 = vmin.f32 %v1604_v41, %v1632_v3  ;;  %v1642_v15 = vmin.f32 %v1606_v20, %v1634_v55  ;;  %v5945_v38 = vld [vmem:[#allocation17_spill] sm:$0xff] }
 0x11a   : > { %v1644_v60 = vmax.f32 %v1604_v41, %v1632_v3  ;;  %v1646_v27 = vmax.f32 %v1606_v20, %v1634_v55  ;;  %v651_v49 = vrot.slane %v650_v58, 2  ;;  %v784_v61 = vadd.f32 %v780_v25, %v4391_v50 }
 0x11b   : > { %v701_v12 = vrot.slane %v700_v32, 2  ;;  %v749_v28 = vrot.slane %v748_v45, 4  ;;  %v786_v30 = vadd.f32 %v782_v34, %v4393_v21  ;;  %v5946_v57 = vsub.f32 %v5945_v38, %v3138_v5 }
 0x11c   : > { %v1648_v18 = vsel %vm4455_vm14, %v1640_v24, %v1644_v60  ;;  %v1650_v59 = vsel %vm4613_vm7, %v1642_v15, %v1646_v27  ;;  %v652_v55 = vadd.f32 %v651_v49, %v650_v58  ;;  %vm5948_vm15 = vnez %v5947_v44 }
 0x11d   : > { %v830_v13 = vmul.f32 %v5946_v57, %v4509_v31  ;;  %v1656_v41 = vrot.slane %v1648_v18, 2  ;;  %v1657_v20 = vrot.slane %v1650_v59, 2  ;;  %v1670_v26 = vrot.slane %v1650_v59, 6 }
 0x11e   : > { %v1674_v3 = vrot.slane %v1648_v18, 6  ;;  %v702_v39 = vadd.f32 %v701_v12, %v700_v32  ;;  %v750_v25 = vadd.f32 %v749_v28, %v748_v45  ;;  %v788_v24 = vsel %vm5948_vm15, %v784_v61, 0.0 }
 0x11f   : > { %vm5949_vm11 = vcmask 1045504   ;;  %vm5951_vm1 = vcmask 1041408   ;;  %vm5953_vm12 = vnez %v5869_v29  ;;  %v5954_v44 = vmov 0 }
 0x120   : > { %v1658_v60 = vsel %vm5949_vm11, %v1656_v41, %v1657_v20  ;;  %vm5950_vm6 = vmmov %vm5949_vm11  ;;  %v1676_v34 = vsel %vm5951_vm1, %v1674_v3, %v1670_v26  ;;  %v653_v58 = vrot.slane %v652_v55, 1  ;;  %v703_v32 = vrot.slane %v702_v39, 1 }
 0x121   : > { %v1668_v15 = vsel %vm5950_vm6, %v1657_v20, %v1656_v41  ;;  %vm5952_vm7 = vmmov %vm5951_vm1  ;;  %v751_v20 = vrot.slane %v750_v25, 2  ;;  %vm5960_vm15 = vnez %v5866_v8  ;;  %vm5964_vm6 = vcmask 1046528  }
 0x122   : > { %v1682_v27 = vsel %vm5952_vm7, %v1670_v26, %v1674_v3  ;;  %v1686_v47 = vsel %vm4375_vm3, %v1668_v15, %v1676_v34  ;;  %vm4640_vm13 = vmxor %vm5953_vm12, %vm5875_vm4  ;;  %v4644_v61 = vadd.f32 %v653_v58, %v652_v55  ;;  %v4646_v41 = vadd.f32 %v703_v32, %v702_v39  ;;  %v5958_v26 = vld [vmem:[#allocation33_spill] sm:$0xff] }
 0x123   : > { %v1684_v57 = vsel %vm4370_vm5, %v1658_v60, %v1682_v27  ;;  %v5955_v44 = vsel %vm4640_vm13, 4294967295, %v5954_v44  ;;  %v1694_v49 = vmin.f32 %v1650_v59, %v1686_v47  ;;  %v1698_v28 = vmax.f32 %v1650_v59, %v1686_v47  ;;  %vm4661_vm11 = vmxor %vm4403_vm8, %vm5875_vm4 }
 0x124   : > { %5956 = vst [vmem:[#allocation26_spill] sm:$0xff] %v5955_v44  ;;  %v1692_v45 = vmin.f32 %v1648_v18, %v1684_v57  ;;  %v1696_v12 = vmax.f32 %v1648_v18, %v1684_v57  ;;  %5957 = vst [vmem:[#allocation27_spill] sm:$0xff] %v4644_v61  ;;  %vm5959_vm7 = vnez %v5958_v26  ;;  %v5961_v18 = vsub.f32 %v5945_v38, %v3160_v17 }
 0x125   : > { %v790_v3 = vsel %vm5959_vm7, %v786_v30, 0.0  ;;  %v1702_v15 = vsel %vm4640_vm13, %v1694_v49, %v1698_v28  ;;  %v5962_v30 = vmov 0  ;;  %v752_v57 = vadd.f32 %v751_v20, %v750_v25  ;;  %vm5965_vm1 = vmmov %vm5964_vm6 }
 0x126   : > { %v1700_v60 = vsel %vm5960_vm15, %v1692_v45, %v1696_v12  ;;  %v798_v34 = vadd.f32 %v790_v3, %v788_v24  ;;  %v832_v47 = vmul.f32 %v5961_v18, %v4513_v11  ;;  %v1709_v55 = vrot.slane %v1702_v15, 1  ;;  %vm4674_vm12 = vmxor %vm4380_vm0, %vm5875_vm4 }
 0x127   : > { %v1708_v59 = vrot.slane %v1700_v60, 1  ;;  %v1722_v39 = vrot.slane %v1702_v15, 7  ;;  %v1726_v27 = vrot.slane %v1700_v60, 7  ;;  %v5963_v30 = vsel %vm4661_vm11, 4294967295, %v5962_v30 }
 0x128   : > { %v799_v58 = vrot.slane %v798_v34, 4  ;;  %v834_v24 = vadd.f32 %v830_v13, %v4391_v50  ;;  %v836_v32 = vadd.f32 %v832_v47, %v4393_v21  ;;  %vm5966_vm7 = vcmask 1040384  }
 0x129   : > { %v1710_v38 = vsel %vm5964_vm6, %v1708_v59, %v1709_v55  ;;  %v1720_v45 = vsel %vm5965_vm1, %v1709_v55, %v1708_v59  ;;  %v1728_v49 = vsel %vm5966_vm7, %v1726_v27, %v1722_v39  ;;  %vm5967_vm13 = vmmov %vm5966_vm7  ;;  %v5968_v28 = vmov 0 }
 0x12a   : > { %v1734_v12 = vsel %vm5967_vm13, %v1722_v39, %v1726_v27  ;;  %v5969_v28 = vsel %vm4674_vm12, 4294967295, %v5968_v28  ;;  %v1738_v25 = vsel %vm4403_vm8, %v1720_v45, %v1728_v49  ;;  %vm4685_vm6 = vmxor %vm4661_vm11, %vm5875_vm4  ;;  %v5970_v20 = vmov 0  ;;  %v5974_v45 = vld [vmem:[#allocation35_spill] sm:$0xff] }
 0x12b   : > { %v1736_v13 = vsel %vm4380_vm0, %v1710_v38, %v1734_v12  ;;  %v5971_v20 = vsel %vm4685_vm6, 4294967295, %v5970_v20  ;;  %v753_v26 = vrot.slane %v752_v57, 1  ;;  %v800_v3 = vadd.f32 %v799_v58, %v798_v34  ;;  %v5972_v38 = vld [vmem:[#allocation34_spill] sm:$0xff] }
 0x12c   : > { %v1744_v18 = vmin.f32 %v1700_v60, %v1736_v13  ;;  %v1746_v47 = vmin.f32 %v1702_v15, %v1738_v25  ;;  %v1748_v59 = vmax.f32 %v1700_v60, %v1736_v13  ;;  %v1750_v55 = vmax.f32 %v1702_v15, %v1738_v25 }
 0x12d   : > { %v4689_v39 = vadd.f32 %v753_v26, %v752_v57  ;;  %v801_v27 = vrot.slane %v800_v3, 2  ;;  %vm5973_vm13 = vnez %v5972_v38  ;;  %vm5975_vm1 = vnez %v5974_v45 }
 0x12e   : > { %v838_v12 = vsel %vm5973_vm13, %v834_v24, 0.0  ;;  %v840_v49 = vsel %vm5975_vm1, %v836_v32, 0.0  ;;  %v1752_v44 = vsel %vm4674_vm12, %v1744_v18, %v1748_v59  ;;  %v1754_v61 = vsel %vm4685_vm6, %v1746_v47, %v1750_v55 }
 0x12f   : > { %v848_v34 = vadd.f32 %v840_v49, %v838_v12  ;;  %v5976_v60 = vsub.f32 %v3059_v35, %v3138_v5  ;;  %v1766_v57 = vmin.f32 %v1752_v44, %v1754_v61  ;;  %v1768_v58 = vmax.f32 %v1752_v44, %v1754_v61 }
 0x130   : > { %v802_v13 = vadd.f32 %v801_v27, %v800_v3  ;;  %v5977_v24 = vsub.f32 %v3059_v35, %v3160_v17  ;;  %v5978_v18 = vsub.f32 %v3062_v36, %v3138_v5  ;;  %v5979_v59 = vsub.f32 %v3062_v36, %v3160_v17 }
 0x131   : > { %v880_v15 = vmul.f32 %v5976_v60, %v4509_v31  ;;  %v849_v25 = vrot.slane %v848_v34, 4  ;;  %v1778_v44 = vrot.slane %v1768_v58, 4  ;;  %v1779_v61 = vrot.slane %v1766_v57, 4 }
 0x132   : > { %v882_v32 = vmul.f32 %v5977_v24, %v4513_v11  ;;  %v930_v47 = vmul.f32 %v5978_v18, %v4509_v31  ;;  %v932_v55 = vmul.f32 %v5979_v59, %v4513_v11  ;;  %v803_v3 = vrot.slane %v802_v13, 1 }
 0x133   : > { %v884_v26 = vadd.f32 %v880_v15, %v4391_v50  ;;  %v850_v35 = vadd.f32 %v849_v25, %v848_v34  ;;  %vm5980_vm4 = vnez %v5703_v2  ;;  %vm5981_vm7 = vcmask 1043456  }
 0x134   : > { %v886_v27 = vadd.f32 %v882_v32, %v4393_v21  ;;  %v934_v12 = vadd.f32 %v930_v47, %v4391_v50  ;;  %v936_v45 = vadd.f32 %v932_v55, %v4393_v21  ;;  %v1780_v49 = vsel %vm5981_vm7, %v1778_v44, %v1779_v61  ;;  %vm5982_vm13 = vmmov %vm5981_vm7 }
 0x135   : > { %v888_v38 = vsel %vm5980_vm4, %v884_v26, 0.0  ;;  %v1790_v60 = vsel %vm5982_vm13, %v1779_v61, %v1778_v44  ;;  %v4723_v15 = vadd.f32 %v803_v3, %v802_v13  ;;  %vm5983_vm1 = vnez %v5711_v63 }
 0x136   : > { %v890_v36 = vsel %vm5983_vm1, %v886_v27, 0.0  ;;  %v1792_v24 = vsel %vm5940_vm9, %v1780_v49, %v1790_v60  ;;  %v1794_v2 = vsel %vm5941_vm2, %v1790_v60, %v1780_v49  ;;  %v851_v34 = vrot.slane %v850_v35, 2 }
 0x137   : > { %v898_v32 = vadd.f32 %v890_v36, %v888_v38  ;;  %v1800_v25 = vmin.f32 %v1768_v58, %v1792_v24  ;;  %v1802_v26 = vmin.f32 %v1766_v57, %v1794_v2  ;;  %v1804_v18 = vmax.f32 %v1768_v58, %v1792_v24 }
 0x138   : > { %v1806_v47 = vmax.f32 %v1766_v57, %v1794_v2  ;;  %v852_v59 = vadd.f32 %v851_v34, %v850_v35  ;;  %vm5984_vm4 = vnez %v5726_v19  ;;  %vm5985_vm7 = vnez %v5729_v7 }
 0x139   : > { %v899_v55 = vrot.slane %v898_v32, 4  ;;  %v938_v13 = vsel %vm5984_vm4, %v934_v12, 0.0  ;;  %v940_v63 = vsel %vm5985_vm7, %v936_v45, 0.0  ;;  %v1808_v44 = vsel %vm4455_vm14, %v1800_v25, %v1804_v18 }
 0x13a   : > { %v1810_v61 = vsel %vm4465_vm10, %v1802_v26, %v1806_v47  ;;  %v948_v3 = vadd.f32 %v940_v63, %v938_v13  ;;  %v5986_v58 = vsub.f32 %v3065_v37, %v3138_v5  ;;  %v1816_v27 = vrot.slane %v1808_v44, 2 }
 0x13b   : > { %v1817_v35 = vrot.slane %v1810_v61, 2  ;;  %v1830_v38 = vrot.slane %v1810_v61, 6  ;;  %v1834_v19 = vrot.slane %v1808_v44, 6  ;;  %v853_v12 = vrot.slane %v852_v59, 1 }
 0x13c   : > { %v980_v57 = vmul.f32 %v5986_v58, %v4509_v31  ;;  %v900_v49 = vadd.f32 %v899_v55, %v898_v32  ;;  %v949_v7 = vrot.slane %v948_v3, 4  ;;  %v5987_v45 = vsub.f32 %v3065_v37, %v3160_v17 }
 0x13d   : > { %vm5988_vm13 = vcmask 1045504   ;;  %vm5990_vm4 = vcmask 1041408   ;;  %v4755_v26 = vadd.f32 %v853_v12, %v852_v59  ;;  %v5993_v59 = vsub.f32 %v3173_v23, %v3138_v5 }
 0x13e   : > { %v982_v60 = vmul.f32 %v5987_v45, %v4513_v11  ;;  %v1818_v36 = vsel %vm5988_vm13, %v1816_v27, %v1817_v35  ;;  %vm5989_vm1 = vmmov %vm5988_vm13  ;;  %v1836_v2 = vsel %vm5990_vm4, %v1834_v19, %v1830_v38  ;;  %v901_v18 = vrot.slane %v900_v49, 2 }
 0x13f   : > { %v1828_v24 = vsel %vm5989_vm1, %v1817_v35, %v1816_v27  ;;  %vm5991_vm7 = vmmov %vm5990_vm4  ;;  %v950_v58 = vadd.f32 %v949_v7, %v948_v3  ;;  %v984_v27 = vadd.f32 %v980_v57, %v4391_v50  ;;  %vm5992_vm13 = vnez %v5869_v29 }
 0x140   : > { %v1842_v34 = vsel %vm5991_vm7, %v1830_v38, %v1834_v19  ;;  %v1846_v32 = vsel %vm4375_vm3, %v1828_v24, %v1836_v2  ;;  %v902_v63 = vadd.f32 %v901_v18, %v900_v49  ;;  %v986_v35 = vadd.f32 %v982_v60, %v4393_v21 }
 0x141   : > { %v1844_v25 = vsel %vm4370_vm5, %v1818_v36, %v1842_v34  ;;  %v1854_v37 = vmin.f32 %v1810_v61, %v1846_v32  ;;  %v1858_v13 = vmax.f32 %v1810_v61, %v1846_v32  ;;  %v1030_v12 = vmul.f32 %v5993_v59, %v4509_v31 }
 0x142   : > { %v1852_v47 = vmin.f32 %v1808_v44, %v1844_v25  ;;  %v1856_v55 = vmax.f32 %v1808_v44, %v1844_v25  ;;  %v5994_v44 = vsub.f32 %v3173_v23, %v3160_v17  ;;  %v903_v45 = vrot.slane %v902_v63, 1 }
 0x143   : > { %v1862_v19 = vsel %vm5992_vm13, %v1854_v37, %v1858_v13  ;;  %v951_v60 = vrot.slane %v950_v58, 2  ;;  %vm5995_vm1 = vnez %v5735_v22  ;;  %vm5996_vm4 = vnez %v5737_v48 }
 0x144   : > { %v1860_v38 = vsel %vm5960_vm15, %v1852_v47, %v1856_v55  ;;  %v1032_v61 = vmul.f32 %v5994_v44, %v4513_v11  ;;  %v1869_v57 = vrot.slane %v1862_v19, 1  ;;  %v1882_v49 = vrot.slane %v1862_v19, 7 }
 0x145   : > { %v1868_v3 = vrot.slane %v1860_v38, 1  ;;  %v1886_v7 = vrot.slane %v1860_v38, 7  ;;  %v988_v36 = vsel %vm5995_vm1, %v984_v27, 0.0  ;;  %v990_v24 = vsel %vm5996_vm4, %v986_v35, 0.0 }
 0x146   : > { %vm5997_vm7 = vcmask 1046528   ;;  %vm5999_vm10 = vcmask 1040384   ;;  %v6001_v22 = vand.u32 4, %v4434_v33  ;;  %v6004_v48 = vand.u32 4, %v4437_v4 }
 0x147   : > { %v1870_v2 = vsel %vm5997_vm7, %v1868_v3, %v1869_v57  ;;  %vm5998_vm13 = vmmov %vm5997_vm7  ;;  %v1888_v25 = vsel %vm5999_vm10, %v1886_v7, %v1882_v49  ;;  %v6005_v37 = vmov 0  ;;  %v4795_v55 = vadd.f32 %v903_v45, %v902_v63  ;;  %v2707_v45 = vld [vmem:[%s3002_s29] sm:$0xff] }
 0x148   : > { %v1880_v34 = vsel %vm5998_vm13, %v1869_v57, %v1868_v3  ;;  %vm6000_vm6 = vmmov %vm5999_vm10  ;;  %vm4785_vm1 = vcmp.eq.s32.totalorder %v6001_v22, 0  ;;  %vm4791_vm13 = vcmp.eq.s32.totalorder %v6004_v48, 0  ;;  %v952_v13 = vadd.f32 %v951_v60, %v950_v58  ;;  %v2708_v60 = vld [vmem:[%s3002_s29 + $0x10] sm:$0xff] }
 0x149   : > { %v1894_v23 = vsel %vm6000_vm6, %v1882_v49, %v1886_v7  ;;  %v1898_v18 = vsel %vm4403_vm8, %v1880_v34, %v1888_v25  ;;  %v6006_v37 = vsel %vm4791_vm13, 4294967295, %v6005_v37  ;;  %v998_v57 = vadd.f32 %v990_v24, %v988_v36 }
 0x14a   : > { %v1896_v32 = vsel %vm4380_vm0, %v1870_v2, %v1894_v23  ;;  %v1906_v35 = vmin.f32 %v1862_v19, %v1898_v18  ;;  %v1910_v44 = vmax.f32 %v1862_v19, %v1898_v18  ;;  %v953_v3 = vrot.slane %v952_v13, 1 }
 0x14b   : > { %v1904_v27 = vmin.f32 %v1860_v38, %v1896_v32  ;;  %v1908_v59 = vmax.f32 %v1860_v38, %v1896_v32  ;;  %v1034_v49 = vadd.f32 %v1030_v12, %v4391_v50  ;;  %v1036_v7 = vadd.f32 %v1032_v61, %v4393_v21 }
 0x14c   : > { %v1914_v34 = vsel %vm4661_vm11, %v1906_v35, %v1910_v44  ;;  %v6007_v63 = vsub.f32 %v3203_v52, %v3138_v5  ;;  %v6008_v38 = vsub.f32 %v3203_v52, %v3160_v17  ;;  %v4813_v25 = vadd.f32 %v953_v3, %v952_v13 }
 0x14d   : > { %v1912_v2 = vsel %vm4674_vm12, %v1904_v27, %v1908_v59  ;;  %v1924_v61 = vmin.f32 %v2708_v60, %v1914_v34  ;;  %v1928_v24 = vmax.f32 %v2708_v60, %v1914_v34  ;;  %v999_v23 = vrot.slane %v998_v57, 4 }
 0x14e   : > { %v1080_v58 = vmul.f32 %v6007_v63, %v4509_v31  ;;  %v1082_v19 = vmul.f32 %v6008_v38, %v4513_v11  ;;  %v1922_v12 = vmin.f32 %v2707_v45, %v1912_v2  ;;  %v1926_v36 = vmax.f32 %v2707_v45, %v1912_v2 }
 0x14f   : > { %vm6009_vm10 = vnez %v5745_v54  ;;  %vm6010_vm6 = vnez %v5751_v1  ;;  %v1000_v35 = vadd.f32 %v999_v23, %v998_v57  ;;  %v6011_v54 = vand.u32 2, %v4437_v4 }
 0x150   : > { %v1038_v32 = vsel %vm6009_vm10, %v1034_v49, 0.0  ;;  %v1040_v18 = vsel %vm6010_vm6, %v1036_v7, 0.0  ;;  %v1950_v22 = vmin.f32 %v1922_v12, %v1924_v61  ;;  %v1954_v48 = vmin.f32 %v1926_v36, %v1928_v24 }
 0x151   : > { %v1960_v27 = vmax.f32 %v1924_v61, %v1922_v12  ;;  %v1964_v52 = vmax.f32 %v1928_v24, %v1926_v36  ;;  %v1048_v59 = vadd.f32 %v1040_v18, %v1038_v32  ;;  %v1084_v44 = vadd.f32 %v1080_v58, %v4391_v50 }
 0x152   : > { %v1086_v2 = vadd.f32 %v1082_v19, %v4393_v21  ;;  %v1986_v34 = vrot.slane %v1950_v22, 4  ;;  %v1992_v3 = vrot.slane %v1954_v48, 4  ;;  %vm4823_vm4 = vcmp.eq.s32.totalorder %v6011_v54, 0 }
 0x153   : > { %v1987_v13 = vrot.slane %v1960_v27, 4  ;;  %v1996_v63 = vrot.slane %v1964_v52, 4  ;;  %v6012_v49 = vmov 0  ;;  %v1001_v1 = vrot.slane %v1000_v35, 2 }
 0x154   : > { %v6013_v49 = vsel %vm4823_vm4, 4294967295, %v6012_v49  ;;  %v1049_v7 = vrot.slane %v1048_v59, 4  ;;  %vm6014_vm7 = vnez %v5754_v16  ;;  %vm6015_vm10 = vnez %v5756_v62 }
 0x155   : > { %v1088_v57 = vsel %vm6014_vm7, %v1084_v44, 0.0  ;;  %v1090_v58 = vsel %vm6015_vm10, %v1086_v2, 0.0  ;;  %vm6016_vm6 = vcmask 1043456   ;;  %v6020_v54 = vsub.f32 %v3071_v42, %v3138_v5 }
 0x156   : > { %v1988_v38 = vsel %vm6016_vm6, %v1986_v34, %v1987_v13  ;;  %vm6017_vm11 = vmmov %vm6016_vm6  ;;  %vm6024_vm7 = vcmask 1041408  }
 0x157   : > { %v1993_v19 = vsel %vm6017_vm11, %v1987_v13, %v1992_v3  ;;  %vm6018_vm12 = vmmov %vm6016_vm6  ;;  %v1002_v13 = vadd.f32 %v1001_v1, %v1000_v35 }
 0x158   : > { %v1997_v45 = vsel %vm6018_vm12, %v1992_v3, %v1996_v63  ;;  %vm6019_vm15 = vmmov %vm6016_vm6  ;;  %v2014_v61 = vsel %vm5941_vm2, %v1993_v19, %v1988_v38  ;;  %v1050_v3 = vadd.f32 %v1049_v7, %v1048_v59  ;;  %vm6021_vm12 = vcmask 1045504  }
 0x159   : > { %v2010_v12 = vsel %vm6019_vm15, %v1996_v63, %v1986_v34  ;;  %v2016_v16 = vsel %vm4785_vm1, %v1997_v45, %v1993_v19  ;;  %v2022_v24 = vmin.f32 %v1960_v27, %v2014_v61  ;;  %v2030_v44 = vmax.f32 %v1960_v27, %v2014_v61  ;;  %vm6022_vm15 = vmmov %vm6021_vm12 }
 0x15a   : > { %v2012_v60 = vsel %vm5940_vm9, %v1988_v38, %v2010_v12  ;;  %v2018_v62 = vsel %vm4791_vm13, %v2010_v12, %v1997_v45  ;;  %v2024_v23 = vmin.f32 %v1954_v48, %v2016_v16  ;;  %v2032_v2 = vmax.f32 %v1954_v48, %v2016_v16  ;;  %vm6023_vm11 = vmmov %vm6021_vm12 }
 0x15b   : > { %v2020_v36 = vmin.f32 %v1950_v22, %v2012_v60  ;;  %v2026_v32 = vmin.f32 %v1964_v52, %v2018_v62  ;;  %v2028_v18 = vmax.f32 %v1950_v22, %v2012_v60  ;;  %v2034_v34 = vmax.f32 %v1964_v52, %v2018_v62  ;;  %vm6025_vm10 = vmmov %vm6024_vm7 }
 0x15c   : > { %v1098_v63 = vadd.f32 %v1090_v58, %v1088_v57  ;;  %v1130_v38 = vmul.f32 %v6020_v54, %v4509_v31  ;;  %v4851_v45 = vsel %vm5941_vm2, %v2022_v24, %v2030_v44  ;;  %v4855_v22 = vsel %vm4785_vm1, %v2024_v23, %v2032_v2  ;;  %vm6026_vm6 = vmmov %vm6024_vm7 }
 0x15d   : > { %v2036_v19 = vsel %vm5940_vm9, %v2020_v36, %v2028_v18  ;;  %v4859_v48 = vsel %vm4791_vm13, %v2026_v32, %v2034_v34  ;;  %v2057_v52 = vrot.slane %v4851_v45, 2  ;;  %v5599_v35 = vrot.slane %v4855_v22, 2 }
 0x15e   : > { %v2056_v27 = vrot.slane %v2036_v19, 2  ;;  %v5600_v59 = vrot.slane %v4859_v48, 2  ;;  %v2082_v1 = vrot.slane %v4859_v48, 6  ;;  %v2086_v7 = vrot.slane %v2036_v19, 6 }
 0x15f   : > { %v5597_v57 = vrot.slane %v4851_v45, 6  ;;  %v5598_v58 = vrot.slane %v4855_v22, 6  ;;  %v2063_v60 = vsel %vm6022_vm15, %v2057_v52, %v5599_v35  ;;  %v1003_v16 = vrot.slane %v1002_v13, 1 }
 0x160   : > { %v2058_v12 = vsel %vm6021_vm12, %v2056_v27, %v2057_v52  ;;  %v2080_v61 = vsel %vm6023_vm11, %v5600_v59, %v2056_v27  ;;  %v2106_v24 = vsel %vm6026_vm6, %v2082_v1, %v2086_v7  ;;  %v1051_v23 = vrot.slane %v1050_v3, 2  ;;  %v6060_v59 = vld [vmem:[#allocation43_spill] sm:$0xff] }
 0x161   : > { %v2089_v62 = vsel %vm6024_vm7, %v2086_v7, %v5597_v57  ;;  %v2096_v36 = vsel %vm6025_vm10, %v5598_v58, %v2082_v1  ;;  %v2108_v32 = vsel %vm4370_vm5, %v2058_v12, %v2106_v24  ;;  %v4887_v2 = vadd.f32 %v1003_v16, %v1002_v13  ;;  %v6048_v57 = vld [vmem:[#allocation39_spill] sm:$0xff] }
 0x162   : > { %v2110_v18 = vsel %vm4375_vm3, %v2063_v60, %v2089_v62  ;;  %v2114_v44 = vsel %vm4823_vm4, %v2080_v61, %v2096_v36  ;;  %v2116_v34 = vmin.f32 %v2036_v19, %v2108_v32  ;;  %v2124_v52 = vmax.f32 %v2036_v19, %v2108_v32 }
 0x163   : > { %v2118_v54 = vmin.f32 %v4851_v45, %v2110_v18  ;;  %v2122_v27 = vmin.f32 %v4859_v48, %v2114_v44  ;;  %v2126_v1 = vmax.f32 %v4851_v45, %v2110_v18  ;;  %v2130_v7 = vmax.f32 %v4859_v48, %v2114_v44 }
 0x164   : > { %v1052_v12 = vadd.f32 %v1051_v23, %v1050_v3  ;;  %v1099_v24 = vrot.slane %v1098_v63, 4  ;;  %v4895_v60 = vsel %vm4370_vm5, %v2116_v34, %v2124_v52  ;;  %v6027_v13 = vsub.f32 %v3071_v42, %v3160_v17 }
 0x165   : > { %v1134_v16 = vadd.f32 %v1130_v38, %v4391_v50  ;;  %v6028_v19 = vsub.f32 %v3075_v43, %v3138_v5  ;;  %v4908_v3 = vsel %vm4375_vm3, %v2118_v54, %v2126_v1  ;;  %v4912_v36 = vsel %vm4823_vm4, %v2122_v27, %v2130_v7 }
 0x166   : > { %v1132_v61 = vmul.f32 %v6027_v13, %v4513_v11  ;;  %v5595_v23 = vrot.slane %v4895_v60, 1  ;;  %v5596_v42 = vrot.slane %v4895_v60, 7  ;;  %v5593_v32 = vrot.slane %v4908_v3, 1 }
 0x167   : > { %v1180_v62 = vmul.f32 %v6028_v19, %v4509_v31  ;;  %v5594_v38 = vrot.slane %v4912_v36, 7  ;;  %v1053_v18 = vrot.slane %v1052_v12, 1  ;;  %v1100_v44 = vadd.f32 %v1099_v24, %v1098_v63 }
 0x168   : > { %v1136_v34 = vadd.f32 %v1132_v61, %v4393_v21  ;;  %vm6029_vm12 = vnez %v5764_v46  ;;  %v6030_v27 = vsub.f32 %v3075_v43, %v3160_v17  ;;  %vm6031_vm15 = vcmask 1046528  }
 0x169   : > { %v1138_v54 = vsel %vm6029_vm12, %v1134_v16, 0.0  ;;  %v1184_v1 = vadd.f32 %v1180_v62, %v4391_v50  ;;  %v2154_v7 = vsel %vm6031_vm15, %v5595_v23, %v5593_v32  ;;  %vm6032_vm11 = vcmask 1040384   ;;  %v6034_v16 = vld [vmem:[#allocation36_spill] sm:$0xff]  ;;  %v6038_v23 = vld [vmem:[#allocation18_spill] sm:$0xff] }
 0x16a   : > { %v1182_v52 = vmul.f32 %v6030_v27, %v4513_v11  ;;  %v2202_v46 = vsel %vm6032_vm11, %v5594_v38, %v5596_v42  ;;  %v4937_v63 = vadd.f32 %v1053_v18, %v1052_v12  ;;  %v1101_v24 = vrot.slane %v1100_v44, 2  ;;  %v6036_v12 = vld [vmem:[#allocation37_spill] sm:$0xff]  ;;  %v6046_v42 = vld [vmem:[#allocation38_spill] sm:$0xff] }
 0x16b   : > { %v2204_v43 = vsel %vm4380_vm0, %v2154_v7, %v2202_v46  ;;  %vm6033_vm7 = vnez %v5767_v56  ;;  %vm6035_vm10 = vnez %v6034_v16  ;;  %vm6037_vm6 = vnez %v6036_v12 }
 0x16c   : > { %v1140_v13 = vsel %vm6033_vm7, %v1136_v34, 0.0  ;;  %v1186_v61 = vadd.f32 %v1182_v52, %v4393_v21  ;;  %v1188_v19 = vsel %vm6035_vm10, %v1184_v1, 0.0  ;;  %v2212_v62 = vmin.f32 %v4895_v60, %v2204_v43  ;;  %v6041_v1 = vld [vmem:[#allocation19_spill] sm:$0xff] }
 0x16d   : > { %v2220_v27 = vmax.f32 %v4895_v60, %v2204_v43  ;;  %v1102_v32 = vadd.f32 %v1101_v24, %v1100_v44  ;;  %v1148_v38 = vadd.f32 %v1140_v13, %v1138_v54  ;;  %v6039_v7 = vsub.f32 %v6038_v23, %v3138_v5 }
 0x16e   : > { %v1190_v18 = vsel %vm6037_vm6, %v1186_v61, 0.0  ;;  %v6040_v34 = vsub.f32 %v6038_v23, %v3160_v17  ;;  %v6042_v46 = vsub.f32 %v6041_v1, %v3138_v5  ;;  %v6043_v16 = vsub.f32 %v6041_v1, %v3160_v17  ;;  %v6050_v1 = vld [vmem:[#allocation40_spill] sm:$0xff] }
 0x16f   : > { %v1230_v56 = vmul.f32 %v6039_v7, %v4509_v31  ;;  %v4964_v44 = vsel %vm4380_vm0, %v2212_v62, %v2220_v27  ;;  %v1103_v54 = vrot.slane %v1102_v32, 1  ;;  %v1149_v24 = vrot.slane %v1148_v38, 4 }
 0x170   : > { %v1232_v52 = vmul.f32 %v6040_v34, %v4513_v11  ;;  %v1280_v43 = vmul.f32 %v6042_v46, %v4509_v31  ;;  %v1198_v13 = vadd.f32 %v1190_v18, %v1188_v19  ;;  %2236 = vst [vmem:[%s4966_s11] sm:$0xff] %v4964_v44  ;;  %v1282_v12 = vmul.f32 %v6043_v16, %v4513_v11  ;;  %v6044_v19 = vld [vmem:[#allocation21_spill] sm:$0xff] }
 0x171   : > { %v1234_v23 = vadd.f32 %v1230_v56, %v4391_v50  ;;  %v1104_v27 = vadd.f32 %v1103_v54, %v1102_v32  ;;  %v1150_v7 = vadd.f32 %v1149_v24, %v1148_v38  ;;  %v6045_v18 = vsub.f32 %v6044_v19, %v3138_v5 }
 0x172   : > { %v1236_v61 = vadd.f32 %v1232_v52, %v4393_v21  ;;  %v1284_v62 = vadd.f32 %v1280_v43, %v4391_v50  ;;  %v1199_v34 = vrot.slane %v1198_v13, 4  ;;  %vm6047_vm12 = vnez %v6046_v42 }
 0x173   : > { %v1330_v46 = vmul.f32 %v6045_v18, %v4509_v31  ;;  %v1238_v56 = vsel %vm6047_vm12, %v1234_v23, 0.0  ;;  %vm6049_vm15 = vnez %v6048_v57  ;;  %v1286_v58 = vadd.f32 %v1282_v12, %v4393_v21  ;;  %v6053_v18 = vld [vmem:[#allocation41_spill] sm:$0xff]  ;;  %v6055_v57 = vld [vmem:[#allocation22_spill] sm:$0xff] }
 0x174   : > { %v1240_v52 = vsel %vm6049_vm15, %v1236_v61, 0.0  ;;  %vm6051_vm11 = vnez %v6050_v1  ;;  %v1151_v43 = vrot.slane %v1150_v7, 2  ;;  %v1200_v32 = vadd.f32 %v1199_v34, %v1198_v13 }
 0x175   : > { %v1288_v16 = vsel %vm6051_vm11, %v1284_v62, 0.0  ;;  %v1248_v38 = vadd.f32 %v1240_v52, %v1238_v56  ;;  %v6052_v54 = vsub.f32 %v6044_v19, %v3160_v17  ;;  %vm6054_vm7 = vnez %v6053_v18 }
 0x176   : > { %v1290_v42 = vsel %vm6054_vm7, %v1286_v58, 0.0  ;;  %v1334_v23 = vadd.f32 %v1330_v46, %v4391_v50  ;;  %v6056_v61 = vsub.f32 %v6055_v57, %v3138_v5  ;;  %v6057_v13 = vsub.f32 %v6055_v57, %v3160_v17 }
 0x177   : > { %v1332_v24 = vmul.f32 %v6052_v54, %v4513_v11  ;;  %v1152_v34 = vadd.f32 %v1151_v43, %v1150_v7  ;;  %v1201_v56 = vrot.slane %v1200_v32, 2  ;;  %v1249_v52 = vrot.slane %v1248_v38, 4  ;;  %v6058_v54 = vld [vmem:[#allocation42_spill] sm:$0xff] }
 0x178   : > { %v1380_v12 = vmul.f32 %v6056_v61, %v4509_v31  ;;  %v1382_v62 = vmul.f32 %v6057_v13, %v4513_v11  ;;  %v1298_v19 = vadd.f32 %v1290_v42, %v1288_v16  ;;  %vm6059_vm10 = vnez %v6058_v54  ;;  %v6062_v11 = vld [vmem:[#allocation44_spill] sm:$0xff]  ;;  %v6064_v16 = vld [vmem:[#allocation45_spill] sm:$0xff] }
 0x179   : > { %v1336_v1 = vadd.f32 %v1332_v24, %v4393_v21  ;;  %v1338_v58 = vsel %vm6059_vm10, %v1334_v23, 0.0  ;;  %v1153_v5 = vrot.slane %v1152_v34, 1  ;;  %v1202_v31 = vadd.f32 %v1201_v56, %v1200_v32  ;;  %v6066_v24 = vld [vmem:[#allocation27_spill] sm:$0xff] }
 0x17a   : > { %v1384_v46 = vadd.f32 %v1380_v12, %v4391_v50  ;;  %v1386_v18 = vadd.f32 %v1382_v62, %v4393_v21  ;;  %v1250_v61 = vadd.f32 %v1249_v52, %v1248_v38  ;;  %v1299_v35 = vrot.slane %v1298_v19, 4 }
 0x17b   : > { %vm6061_vm6 = vnez %v6060_v59  ;;  %vm6063_vm12 = vnez %v6062_v11  ;;  %vm6065_vm15 = vnez %v6064_v16  ;;  %vm6067_vm11 = vcmask 1040384  }
 0x17c   : > { %v1340_v17 = vsel %vm6061_vm6, %v1336_v1, 0.0  ;;  %v1388_v7 = vsel %vm6063_vm12, %v1384_v46, 0.0  ;;  %v1390_v43 = vsel %vm6065_vm15, %v1386_v18, 0.0  ;;  %v1406_v42 = vsel %vm6067_vm11, %v6066_v24, %v4646_v41  ;;  %vm6069_vm10 = vmmov %vm6067_vm11 }
 0x17d   : > { %v1154_v50 = vadd.f32 %v1153_v5, %v1152_v34  ;;  %v1203_v23 = vrot.slane %v1202_v31, 1  ;;  %v1251_v21 = vrot.slane %v1250_v61, 2  ;;  %v1300_v57 = vadd.f32 %v1299_v35, %v1298_v19 }
 0x17e   : > { %v1348_v32 = vadd.f32 %v1340_v17, %v1338_v58  ;;  %v1398_v38 = vadd.f32 %v1390_v43, %v1388_v7  ;;  %vm6068_vm7 = vcmask 1041408   ;;  %v1423_v12 = vsel %vm6069_vm10, %v4937_v63, %v1104_v27 }
 0x17f   : > { %v1408_v59 = vsel %vm6068_vm7, %v1406_v42, %v4689_v39  ;;  %v1204_v13 = vadd.f32 %v1203_v23, %v1202_v31  ;;  %v1252_v62 = vadd.f32 %v1251_v21, %v1250_v61  ;;  %v1301_v56 = vrot.slane %v1300_v57, 2  ;;  %vm6072_vm15 = vmmov %vm6068_vm7 }
 0x180   : > { %vm6070_vm6 = vcmask 1042432   ;;  %v1349_v1 = vrot.slane %v1348_v32, 4  ;;  %v1399_v41 = vrot.slane %v1398_v38, 4  ;;  %vm6071_vm12 = vcmask 1043456  }
 0x181   : > { %v1411_v52 = vsel %vm6070_vm6, %v1408_v59, %v4723_v15  ;;  %v1425_v35 = vsel %vm6072_vm15, %v1423_v12, %v1154_v50  ;;  %v1253_v19 = vrot.slane %v1252_v62, 1  ;;  %v1302_v54 = vadd.f32 %v1301_v56, %v1300_v57  ;;  %vm6074_vm7 = vmmov %vm6070_vm6 }
 0x182   : > { %v1413_v34 = vsel %vm6071_vm12, %v1411_v52, %v4755_v26  ;;  %vm6073_vm11 = vcmask 1044480   ;;  %v1427_v63 = vsel %vm6074_vm7, %v1425_v35, %v1204_v13  ;;  %v1350_v27 = vadd.f32 %v1349_v1, %v1348_v32  ;;  %v5057_v32 = vld [vmem:[%s2984_s12] ss:$8 sm:$0x3] }
 0x183   : > { %v1416_v39 = vsel %vm6073_vm11, %v1413_v34, %v4795_v55  ;;  %v1400_v58 = vadd.f32 %v1399_v41, %v1398_v38  ;;  %vm6075_vm10 = vcmask 1045504   ;;  %v2044_v15 = vand.u32 2, %v4434_v33  ;;  %v5068_v41 = vld [vmem:[%s2984_s12 + $0x3] ss:$8 sm:$0x3] }
 0x184   : > { %v1419_v46 = vsel %vm6075_vm10, %v1416_v39, %v4813_v25  ;;  %v1254_v18 = vadd.f32 %v1253_v19, %v1252_v62  ;;  %v1303_v5 = vrot.slane %v1302_v54, 1  ;;  %vm6076_vm6 = vcmask 1046528   ;;  %vm6079_vm12 = vmmov %vm6075_vm10 }
 0x185   : > { %v5034_v26 = vsel %vm6076_vm6, %v1419_v46, %v4887_v2  ;;  %v6077_v31 = vrot.slane %v4859_v48, 2  ;;  %v6078_v55 = vrot.slane %v4855_v22, 2  ;;  %v1351_v17 = vrot.slane %v1350_v27, 2 }
 0x186   : > { %v1401_v11 = vrot.slane %v1400_v58, 2  ;;  %v1453_v7 = vrot.slane %v5034_v26, 1  ;;  %v1469_v25 = vrot.slane %v5034_v26, 7  ;;  %v1304_v16 = vadd.f32 %v1303_v5, %v1302_v54 }
 0x187   : > { %v2067_v61 = vsel %vm6079_vm12, %v6078_v55, %v6077_v31  ;;  %vm6080_vm15 = vcmask 1043456   ;;  %vm5044_vm11 = vcmp.eq.s32.totalorder %v2044_v15, 0  ;;  %v6081_v24 = vmov 0 }
 0x188   : > { %v1429_v43 = vsel %vm6080_vm15, %v1427_v63, %v1254_v18  ;;  %v6082_v24 = vsel %vm5044_vm11, 4294967295, %v6081_v24  ;;  %v6083_v48 = vrot.slane %v4855_v22, 6  ;;  %v6084_v2 = vrot.slane %v4851_v45, 6 }
 0x189   : > { %vm6085_vm7 = vcmask 1041408   ;;  %v1352_v50 = vadd.f32 %v1351_v17, %v1350_v27  ;;  %v1402_v23 = vadd.f32 %v1401_v11, %v1400_v58  ;;  %v2184_v57 = vrot.slane %v4908_v3, 7 }
 0x18a   : > { %v2093_v42 = vsel %vm6085_vm7, %v6084_v2, %v6083_v48  ;;  %vm6086_vm10 = vcmask 1044480   ;;  %v2140_v45 = vand.u32 1, %v4434_v33  ;;  %v6087_v56 = vrot.slane %v4895_v60, 7  ;;  %v6091_v33 = vld [vmem:[#allocation20_spill] sm:$0xff] }
 0x18b   : > { %v2112_v21 = vsel %vm5044_vm11, %v2067_v61, %v2093_v42  ;;  %v1431_v38 = vsel %vm6086_vm10, %v1429_v43, %v1304_v16  ;;  %v1353_v13 = vrot.slane %v1352_v50, 1  ;;  %v1403_v62 = vrot.slane %v1402_v23, 1 }
 0x18c   : > { %v2120_v59 = vmin.f32 %v4855_v22, %v2112_v21  ;;  %v2128_v12 = vmax.f32 %v4855_v22, %v2112_v21  ;;  %vm6088_vm6 = vcmask 1040384   ;;  %v2162_v1 = vrot.slane %v4912_v36, 1 }
 0x18d   : > { %v2185_v52 = vsel %vm6088_vm6, %v6087_v56, %v2184_v57  ;;  %vm5072_vm12 = vcmp.eq.s32.totalorder %v2140_v45, 0  ;;  %v2141_v22 = vand.u32 1, %v4437_v4  ;;  %v5079_v19 = vrot.slane %v5057_v32, %v6091_v33 }
 0x18e   : > { %v2136_v34 = vsel %vm5044_vm11, %v2120_v59, %v2128_v12  ;;  %v1354_v54 = vadd.f32 %v1353_v13, %v1352_v50  ;;  %v1404_v39 = vadd.f32 %v1403_v62, %v1402_v23  ;;  %v6092_v58 = vmov 0 }
 0x18f   : > { %v2158_v63 = vrot.slane %v2136_v34, 1  ;;  %v2188_v27 = vrot.slane %v2136_v34, 7  ;;  %vm5082_vm15 = vcmp.eq.s32.totalorder %v2141_v22, 0  ;;  %v6094_v46 = vrot.slane %v4895_v60, 1 }
 0x190   : > { %v6093_v58 = vsel %vm5082_vm15, 4294967295, %v6092_v58  ;;  %vm6095_vm7 = vcmask 1046528   ;;  %v2258_v4 = vmul.f32 %v5079_v19, %v4964_v44  ;;  %v5093_v18 = vrot.slane %v5068_v41, %v6091_v33 }
 0x191   : > { %v2176_v15 = vsel %vm6095_vm7, %v2162_v1, %v6094_v46  ;;  %vm6096_vm10 = vcmask 1045504   ;;  %v6097_v31 = vrot.slane %v4908_v3, 1  ;;  %vm6098_vm6 = vmmov %vm6095_vm7  ;;  %vm6100_vm4 = vcmask 1040384  }
 0x192   : > { %v1433_v5 = vsel %vm6096_vm10, %v1431_v38, %v1354_v54  ;;  %vm6099_vm11 = vmmov %vm6098_vm6  ;;  %v2189_v17 = vsel %vm6100_vm4, %v2184_v57, %v2188_v27  ;;  %v6102_v43 = vrot.slane %v4912_v36, 7  ;;  %v2277_v59 = vadd.f32 %v5093_v18, %v2258_v4 }
 0x193   : > { %v2159_v55 = vsel %vm6098_vm6, %v6097_v31, %v2158_v63  ;;  %v2163_v61 = vsel %vm6099_vm11, %v2158_v63, %v2162_v1  ;;  %vm6101_vm13 = vmmov %vm6098_vm6  ;;  %v5142_v63 = vld [vmem:[%s2984_s12 + $0x1] ss:$8 sm:$0x3] }
 0x194   : > { %v1435_v60 = vsel %vm6101_vm13, %v1433_v5, %v1404_v39  ;;  %v2206_v11 = vsel %vm4403_vm8, %v2159_v55, %v2185_v52  ;;  %v2208_v16 = vsel %vm5072_vm12, %v2163_v61, %v2189_v17  ;;  %vm6103_vm7 = vmmov %vm6100_vm4  ;;  %2285 = vst [vmem:[%s5130_s16] sm:$0xff] %v2277_v59 }
 0x195   : > { %v2192_v48 = vsel %vm6103_vm7, %v2188_v27, %v6102_v43  ;;  %v1454_v2 = vrot.slane %v1435_v60, 1  ;;  %v1465_v42 = vrot.slane %v1435_v60, 7  ;;  %v2214_v50 = vmin.f32 %v4908_v3, %v2206_v11  ;;  %vm6104_vm13 = vmmov %vm6098_vm6  ;;  %v6108_v27 = vld [vmem:[#allocation14_spill] sm:$0xff] }
 0x196   : > { %v2222_v23 = vmax.f32 %v4908_v3, %v2206_v11  ;;  %v2216_v21 = vmin.f32 %v2136_v34, %v2208_v16  ;;  %v2224_v57 = vmax.f32 %v2136_v34, %v2208_v16  ;;  %v2210_v38 = vsel %vm5082_vm15, %v2176_v15, %v2192_v48  ;;  %vm6105_vm4 = vmmov %vm6098_vm6  ;;  %v6110_v15 = vld [vmem:[#allocation46_spill] sm:$0xff] }
 0x197   : > { %v1455_v12 = vsel %vm6104_vm13, %v1453_v7, %v1454_v2  ;;  %v1463_v45 = vsel %vm6105_vm4, %v1454_v2, %v1453_v7  ;;  %vm6106_vm11 = vmmov %vm6103_vm7  ;;  %v2218_v54 = vmin.f32 %v4912_v36, %v2210_v38  ;;  %v2226_v39 = vmax.f32 %v4912_v36, %v2210_v38 }
 0x198   : > { %v1471_v13 = vsel %vm6106_vm11, %v1469_v25, %v1465_v42  ;;  %vm6107_vm10 = vmmov %vm6103_vm7  ;;  %v5124_v52 = vsel %vm4403_vm8, %v2214_v50, %v2222_v23  ;;  %v5128_v1 = vsel %vm5072_vm12, %v2216_v21, %v2224_v57  ;;  %vm6109_vm6 = vnez %v6108_v27  ;;  %v5164_v50 = vld [vmem:[%s2984_s12 + $0x4] ss:$8 sm:$0x3] }
 0x199   : > { %v1477_v62 = vsel %vm6107_vm10, %v1465_v42, %v1469_v25  ;;  %v1481_v56 = vsel %vm4403_vm8, %v1463_v45, %v1471_v13  ;;  %2238 = vst [vmem:[%s4966_s11 + $0x10] sm:$0xff] %v5124_v52  ;;  %2240 = vst [vmem:[%s4966_s11 + $0x20] sm:$0xff] %v5128_v1  ;;  %vm6111_vm7 = vnez %v6110_v15  ;;  %v2262_v5 = vmul.f32 %v5079_v19, %v5128_v1 }
 0x19a   : > { %v1479_v3 = vsel %vm4380_vm0, %v1455_v12, %v1477_v62  ;;  %v1489_v25 = vmin.f32 %v1435_v60, %v1481_v56  ;;  %v1493_v22 = vmax.f32 %v1435_v60, %v1481_v56  ;;  %v2234_v17 = vsel %vm5082_vm15, %v2218_v54, %v2226_v39  ;;  %v6116_v56 = vld [vmem:[#allocation47_spill] sm:$0xff] }
 0x19b   : > { %v1487_v7 = vmin.f32 %v5034_v26, %v1479_v3  ;;  %v1491_v34 = vmax.f32 %v5034_v26, %v1479_v3  ;;  %v2260_v26 = vmul.f32 %v5079_v19, %v5124_v52  ;;  %v2281_v11 = vadd.f32 %v5093_v18, %v2262_v5  ;;  %2242 = vst [vmem:[%s4966_s11 + $0x30] sm:$0xff] %v2234_v17  ;;  %v5184_v54 = vld [vmem:[%s2984_s12 + $0x2] ss:$8 sm:$0x3] }
 0x19c   : > { %v1497_v4 = vsel %vm6111_vm7, %v1489_v25, %v1493_v22  ;;  %v2301_v16 = vrot.slane %v5142_v63, %v6091_v33  ;;  %vm6112_vm13 = vcmask 1045504   ;;  %vm6114_vm11 = vcmask 1041408   ;;  %v6118_v25 = vld [vmem:[#allocation48_spill] sm:$0xff] }
 0x19d   : > { %v1495_v46 = vsel %vm6109_vm6, %v1487_v7, %v1491_v34  ;;  %v1512_v55 = vrot.slane %v1497_v4, 2  ;;  %v1523_v36 = vrot.slane %v1497_v4, 6  ;;  %v2279_v60 = vadd.f32 %v5093_v18, %v2260_v26  ;;  %vm6113_vm4 = vmmov %vm6112_vm13  ;;  %2289 = vst [vmem:[%s5130_s16 + $0x20] sm:$0xff] %v2281_v11 }
 0x19e   : > { %v1511_v31 = vrot.slane %v1495_v46, 2  ;;  %v1527_v61 = vrot.slane %v1495_v46, 6  ;;  %vm6115_vm10 = vmmov %vm6114_vm11  ;;  %v2264_v57 = vmul.f32 %v5079_v19, %v2234_v17  ;;  %v2308_v38 = vmul.f32 %v2301_v16, %v4964_v44 }
 0x19f   : > { %2287 = vst [vmem:[%s5130_s16 + $0x10] sm:$0xff] %v2279_v60  ;;  %v2320_v3 = vrot.slane %v5164_v50, %v6091_v33  ;;  %vm6117_vm6 = vnez %v6116_v56  ;;  %vm6119_vm7 = vnez %v6118_v25  ;;  %v2310_v19 = vmul.f32 %v2301_v16, %v5124_v52  ;;  %v5192_v60 = vld [vmem:[%s2984_s12 + $0x5] ss:$8 sm:$0x3]  ;;  %s2401_s12 = scalar_lea.sflag [#allocation10], %s2980_s28 }
 0x1a0   : > { %v1513_v43 = vsel %vm6112_vm13, %v1511_v31, %v1512_v55  ;;  %v1521_v48 = vsel %vm6113_vm4, %v1512_v55, %v1511_v31  ;;  %v1529_v2 = vsel %vm6114_vm11, %v1527_v61, %v1523_v36  ;;  %v1535_v42 = vsel %vm6115_vm10, %v1523_v36, %v1527_v61 }
 0x1a1   : > { %v1537_v23 = vsel %vm4370_vm5, %v1513_v43, %v1535_v42  ;;  %v1539_v21 = vsel %vm4375_vm3, %v1521_v48, %v1529_v2  ;;  %v2283_v62 = vadd.f32 %v5093_v18, %v2264_v57  ;;  %v2312_v22 = vmul.f32 %v2301_v16, %v5128_v1 }
 0x1a2   : > { %v1545_v59 = vmin.f32 %v1495_v46, %v1537_v23  ;;  %v1547_v12 = vmin.f32 %v1497_v4, %v1539_v21  ;;  %v1549_v45 = vmax.f32 %v1495_v46, %v1537_v23  ;;  %v1551_v13 = vmax.f32 %v1497_v4, %v1539_v21 }
 0x1a3   : > { %2291 = vst [vmem:[%s5130_s16 + $0x30] sm:$0xff] %v2283_v62  ;;  %v2327_v15 = vadd.f32 %v2320_v3, %v2308_v38  ;;  %v2329_v4 = vadd.f32 %v2320_v3, %v2310_v19  ;;  %v2331_v26 = vadd.f32 %v2320_v3, %v2312_v22  ;;  %v2314_v5 = vmul.f32 %v2301_v16, %v2234_v17 }
 0x1a4   : > { %v1553_v7 = vsel %vm6117_vm6, %v1545_v59, %v1549_v45  ;;  %v1555_v34 = vsel %vm6119_vm7, %v1547_v12, %v1551_v13  ;;  %vm6120_vm13 = vcmask 1046528   ;;  %vm6122_vm11 = vcmask 1040384   ;;  %v6124_v59 = vld [vmem:[#allocation24_spill] sm:$0xff]  ;;  %v6126_v45 = vld [vmem:[#allocation25_spill] sm:$0xff] }
 0x1a5   : > { %v1563_v39 = vrot.slane %v1553_v7, 1  ;;  %v1564_v27 = vrot.slane %v1555_v34, 1  ;;  %v1575_v18 = vrot.slane %v1555_v34, 7  ;;  %v1579_v46 = vrot.slane %v1553_v7, 7  ;;  %vm6121_vm4 = vmmov %vm6120_vm13  ;;  %2613 = vst [vmem:[%s5130_s16 + $0x40] sm:$0xff] %v2327_v15 }
 0x1a6   : > { %vm6123_vm10 = vmmov %vm6122_vm11  ;;  %2615 = vst [vmem:[%s5130_s16 + $0x50] sm:$0xff] %v2329_v4  ;;  %v2333_v16 = vadd.f32 %v2320_v3, %v2314_v5  ;;  %v2352_v48 = vrot.slane %v5184_v54, %v6091_v33  ;;  %v2371_v38 = vrot.slane %v5192_v60, %v6091_v33  ;;  %vm6125_vm6 = vnez %v6124_v59  ;;  %v6130_v4 = vld [vmem:[#allocation15_spill] sm:$0xff]  ;;  %v6137_v59 = vld [vmem:[#allocation26_spill] sm:$0xff] }
 0x1a7   : > { %v1565_v31 = vsel %vm6120_vm13, %v1563_v39, %v1564_v27  ;;  %v1573_v55 = vsel %vm6121_vm4, %v1564_v27, %v1563_v39  ;;  %v1581_v36 = vsel %vm6122_vm11, %v1579_v46, %v1575_v18  ;;  %v1587_v61 = vsel %vm6123_vm10, %v1575_v18, %v1579_v46  ;;  %2617 = vst [vmem:[%s5130_s16 + $0x60] sm:$0xff] %v2331_v26 }
 0x1a8   : > { %v1589_v11 = vsel %vm4380_vm0, %v1565_v31, %v1587_v61  ;;  %v1591_v43 = vsel %vm4403_vm8, %v1573_v55, %v1581_v36  ;;  %2619 = vst [vmem:[%s5130_s16 + $0x70] sm:$0xff] %v2333_v16  ;;  %v2359_v57 = vmul.f32 %v2352_v48, %v4964_v44  ;;  %vm6127_vm7 = vnez %v6126_v45 }
 0x1a9   : > { %v1597_v2 = vmin.f32 %v1553_v7, %v1589_v11  ;;  %v1599_v42 = vmin.f32 %v1555_v34, %v1591_v43  ;;  %v1601_v23 = vmax.f32 %v1553_v7, %v1589_v11  ;;  %v1603_v21 = vmax.f32 %v1555_v34, %v1591_v43 }
 0x1aa   : > { %v2361_v62 = vmul.f32 %v2352_v48, %v5124_v52  ;;  %v2363_v3 = vmul.f32 %v2352_v48, %v5128_v1  ;;  %v2378_v25 = vadd.f32 %v2371_v38, %v2359_v57  ;;  %v2365_v44 = vmul.f32 %v2352_v48, %v2234_v17 }
 0x1ab   : > { %v1605_v12 = vsel %vm6125_vm6, %v1597_v2, %v1601_v23  ;;  %v1607_v13 = vsel %vm6127_vm7, %v1599_v42, %v1603_v21  ;;  %vm6128_vm13 = vcmask 1043456   ;;  %vm6131_vm11 = vnez %v6130_v4 }
 0x1ac   : > { %v1621_v56 = vrot.slane %v1605_v12, 4  ;;  %v1622_v7 = vrot.slane %v1607_v13, 4  ;;  %v2380_v34 = vadd.f32 %v2371_v38, %v2361_v62  ;;  %v2382_v19 = vadd.f32 %v2371_v38, %v2363_v3  ;;  %vm6129_vm4 = vmmov %vm6128_vm13  ;;  %2623 = vst [vmem:[%s5130_s16 + $0x80] sm:$0xff] %v2378_v25 }
 0x1ad   : > { %v2384_v39 = vadd.f32 %v2371_v38, %v2365_v44  ;;  %vm6132_vm10 = vcmask 1045504   ;;  %vm6134_vm7 = vcmask 1041408  }
 0x1ae   : > { %v1623_v33 = vsel %vm6128_vm13, %v1621_v56, %v1622_v7  ;;  %v1631_v22 = vsel %vm6129_vm4, %v1622_v7, %v1621_v56  ;;  %2625 = vst [vmem:[%s5130_s16 + $0x90] sm:$0xff] %v2380_v34  ;;  %2627 = vst [vmem:[%s5130_s16 + $0xa0] sm:$0xff] %v2382_v19  ;;  %vm6136_vm4 = vnez %v5866_v8 }
 0x1af   : > { %v1633_v27 = vsel %vm5940_vm9, %v1623_v33, %v1631_v22  ;;  %v1635_v52 = vsel %vm5941_vm2, %v1631_v22, %v1623_v33  ;;  %2629 = vst [vmem:[%s5130_s16 + $0xb0] sm:$0xff] %v2384_v39  ;;  %vm6133_vm6 = vmmov %vm6132_vm10 }
 0x1b0   : > { %v1641_v1 = vmin.f32 %v1605_v12, %v1633_v27  ;;  %v1643_v18 = vmin.f32 %v1607_v13, %v1635_v52  ;;  %v1645_v46 = vmax.f32 %v1605_v12, %v1633_v27  ;;  %v1647_v17 = vmax.f32 %v1607_v13, %v1635_v52  ;;  %vm6135_vm13 = vmmov %vm6134_vm7 }
 0x1b2   : > { %v1649_v15 = vsel %vm4455_vm14, %v1641_v1, %v1645_v46  ;;  %v1651_v26 = vsel %vm6131_vm11, %v1643_v18, %v1647_v17  ;;  %vm6138_vm11 = vnez %v6137_v59 }
 0x1b3   : > { %v1659_v5 = vrot.slane %v1649_v15, 2  ;;  %v1660_v31 = vrot.slane %v1651_v26, 2  ;;  %v1671_v55 = vrot.slane %v1651_v26, 6  ;;  %v1675_v36 = vrot.slane %v1649_v15, 6 }
 0x1b5   : > { %v1661_v61 = vsel %vm6132_vm10, %v1659_v5, %v1660_v31  ;;  %v1669_v11 = vsel %vm6133_vm6, %v1660_v31, %v1659_v5  ;;  %v1677_v43 = vsel %vm6134_vm7, %v1675_v36, %v1671_v55  ;;  %v1683_v16 = vsel %vm6135_vm13, %v1671_v55, %v1675_v36 }
 0x1b6   : > { %v1685_v48 = vsel %vm4370_vm5, %v1661_v61, %v1683_v16  ;;  %v1687_v2 = vsel %vm4375_vm3, %v1669_v11, %v1677_v43  ;;  %vm6139_vm10 = vcmask 1046528   ;;  %vm6141_vm7 = vcmask 1040384  }
 0x1b7   : > { %v1693_v42 = vmin.f32 %v1649_v15, %v1685_v48  ;;  %v1695_v23 = vmin.f32 %v1651_v26, %v1687_v2  ;;  %v1697_v21 = vmax.f32 %v1649_v15, %v1685_v48  ;;  %v1699_v57 = vmax.f32 %v1651_v26, %v1687_v2  ;;  %vm6140_vm6 = vmmov %vm6139_vm10 }
 0x1b8   : > { %vm6142_vm13 = vmmov %vm6141_vm7 }
 0x1b9   : > { %v1701_v38 = vsel %vm6136_vm4, %v1693_v42, %v1697_v21  ;;  %v1703_v12 = vsel %vm6138_vm11, %v1695_v23, %v1699_v57  ;;  %vm6143_vm11 = vnez %v5969_v28 }
 0x1ba   : > { %v1711_v45 = vrot.slane %v1701_v38, 1  ;;  %v1712_v13 = vrot.slane %v1703_v12, 1  ;;  %v1723_v62 = vrot.slane %v1703_v12, 7  ;;  %v1727_v3 = vrot.slane %v1701_v38, 7 }
 0x1bc   : > { %v1713_v56 = vsel %vm6139_vm10, %v1711_v45, %v1712_v13  ;;  %v1721_v7 = vsel %vm6140_vm6, %v1712_v13, %v1711_v45  ;;  %v1729_v25 = vsel %vm6141_vm7, %v1727_v3, %v1723_v62  ;;  %v1735_v44 = vsel %vm6142_vm13, %v1723_v62, %v1727_v3 }
 0x1bd   : > { %v1737_v34 = vsel %vm4380_vm0, %v1713_v56, %v1735_v44  ;;  %v1739_v19 = vsel %vm4403_vm8, %v1721_v7, %v1729_v25  ;;  %vm6144_vm10 = vnez %v5971_v20  ;;  %vm6145_vm6 = vcmask 1043456  }
 0x1be   : > { %v1745_v33 = vmin.f32 %v1701_v38, %v1737_v34  ;;  %v1747_v22 = vmin.f32 %v1703_v12, %v1739_v19  ;;  %v1749_v39 = vmax.f32 %v1701_v38, %v1737_v34  ;;  %v1751_v27 = vmax.f32 %v1703_v12, %v1739_v19  ;;  %vm6146_vm7 = vmmov %vm6145_vm6 }
 0x1bf   : > { %vm6147_vm13 = vnez %v5892_v0 }
 0x1c0   : > { %v1753_v52 = vsel %vm6143_vm11, %v1745_v33, %v1749_v39  ;;  %v1755_v1 = vsel %vm6144_vm10, %v1747_v22, %v1751_v27  ;;  %vm6148_vm10 = vcmask 1045504  }
 0x1c1   : > { %v1767_v18 = vmin.f32 %v1753_v52, %v1755_v1  ;;  %v1769_v46 = vmax.f32 %v1753_v52, %v1755_v1 }
 0x1c3   : > { %v1781_v17 = vrot.slane %v1769_v46, 4  ;;  %v1782_v15 = vrot.slane %v1767_v18, 4 }
 0x1c5   : > { %v1783_v4 = vsel %vm6145_vm6, %v1781_v17, %v1782_v15  ;;  %v1791_v26 = vsel %vm6146_vm7, %v1782_v15, %v1781_v17  ;;  %vm6149_vm6 = vmmov %vm6148_vm10  ;;  %vm6150_vm7 = vcmask 1041408   ;;  %v2709_v17 = vld [vmem:[%s3002_s29 + $0x8] sm:$0xff] }
 0x1c6   : > { %v1793_v5 = vsel %vm5940_vm9, %v1783_v4, %v1791_v26  ;;  %v1795_v31 = vsel %vm5941_vm2, %v1791_v26, %v1783_v4  ;;  %vm6151_vm15 = vmmov %vm6150_vm7  ;;  %v2710_v4 = vld [vmem:[%s3002_s29 + $0x18] sm:$0xff]  ;;  %s2741_s29 = sshll.u32 %s2835_s15, 4  ;;  %s2742_s29 = int_to_ptr.vmem [resolvable:$false] %s2741_s29 }
 0x1c7   : > { %v1801_v55 = vmin.f32 %v1769_v46, %v1793_v5  ;;  %v1803_v36 = vmin.f32 %v1767_v18, %v1795_v31  ;;  %v1805_v61 = vmax.f32 %v1769_v46, %v1793_v5  ;;  %v1807_v11 = vmax.f32 %v1767_v18, %v1795_v31  ;;  %s2743_s8 = scalar_lea.vmem %s2742_s29, 2048  ;;  %p2744_p2 = scmp.lt.s32.totalorder %s5371_s17, %s2742_s29 }
 0x1c8   : > { %p2745_p3 = scmp.lt.s32.totalorder %s2743_s8, %s2737_s14 }
 0x1c9   : > { %v1809_v20 = vsel %vm4455_vm14, %v1801_v55, %v1805_v61  ;;  %v1811_v43 = vsel %vm6147_vm13, %v1803_v36, %v1807_v11  ;;  %vm6152_vm14 = vnez %v5869_v29 }
 0x1ca   : > { %v1819_v16 = vrot.slane %v1809_v20, 2  ;;  %v1820_v48 = vrot.slane %v1811_v43, 2  ;;  %v1831_v2 = vrot.slane %v1811_v43, 6  ;;  %v1835_v42 = vrot.slane %v1809_v20, 6  ;;  %p2746_p4 = por %p2745_p3, %p2744_p2 }
 0x1cc   : > { %v1821_v23 = vsel %vm6148_vm10, %v1819_v16, %v1820_v48  ;;  %v1829_v21 = vsel %vm6149_vm6, %v1820_v48, %v1819_v16  ;;  %v1837_v57 = vsel %vm6150_vm7, %v1835_v42, %v1831_v2  ;;  %v1843_v38 = vsel %vm6151_vm15, %v1831_v2, %v1835_v42  ;;  %p2747_p7 = pnand %p2746_p4, %p2740_p1 }
 0x1cd   : > { %v1845_v59 = vsel %vm4370_vm5, %v1821_v23, %v1843_v38  ;;  %v1847_v14 = vsel %vm4375_vm3, %v1829_v21, %v1837_v57  ;;  %vm6153_vm15 = vcmask 1046528   ;;  %vm6155_vm10 = vcmask 1040384  }
 0x1ce   : > { %v1853_v0 = vmin.f32 %v1809_v20, %v1845_v59  ;;  %v1855_v12 = vmin.f32 %v1811_v43, %v1847_v14  ;;  %v1857_v45 = vmax.f32 %v1809_v20, %v1845_v59  ;;  %v1859_v13 = vmax.f32 %v1811_v43, %v1847_v14  ;;  %vm6154_vm13 = vmmov %vm6153_vm15 }
 0x1cf   : > { %vm6156_vm6 = vmmov %vm6155_vm10  ;;  %vm6158_vm7 = vcmask 1043456  }
 0x1d0   : > { %v1861_v62 = vsel %vm6136_vm4, %v1853_v0, %v1857_v45  ;;  %v1863_v3 = vsel %vm6152_vm14, %v1855_v12, %v1859_v13  ;;  %vm6157_vm4 = vnez %v5963_v30  ;;  %vm6160_vm14 = vmmov %vm6158_vm7 }
 0x1d1   : > { %v1871_v56 = vrot.slane %v1861_v62, 1  ;;  %v1872_v7 = vrot.slane %v1863_v3, 1  ;;  %v1883_v25 = vrot.slane %v1863_v3, 7  ;;  %v1887_v44 = vrot.slane %v1861_v62, 7 }
 0x1d3   : > { %v1873_v34 = vsel %vm6153_vm15, %v1871_v56, %v1872_v7  ;;  %v1881_v19 = vsel %vm6154_vm13, %v1872_v7, %v1871_v56  ;;  %v1889_v33 = vsel %vm6155_vm10, %v1887_v44, %v1883_v25  ;;  %v1895_v22 = vsel %vm6156_vm6, %v1883_v25, %v1887_v44  ;;  %vm6161_vm15 = vmmov %vm6158_vm7 }
 0x1d4   : > { %v1897_v8 = vsel %vm4380_vm0, %v1873_v34, %v1895_v22  ;;  %v1899_v29 = vsel %vm4403_vm8, %v1881_v19, %v1889_v33  ;;  %vm6162_vm13 = vnez %v6006_v37  ;;  %vm6163_vm10 = vcmask 1045504  }
 0x1d5   : > { %v1905_v39 = vmin.f32 %v1861_v62, %v1897_v8  ;;  %v1907_v27 = vmin.f32 %v1863_v3, %v1899_v29  ;;  %v1909_v52 = vmax.f32 %v1861_v62, %v1897_v8  ;;  %v1911_v1 = vmax.f32 %v1863_v3, %v1899_v29 }
 0x1d7   : > { %v1913_v18 = vsel %vm6143_vm11, %v1905_v39, %v1909_v52  ;;  %v1915_v46 = vsel %vm6157_vm4, %v1907_v27, %v1911_v1  ;;  %vm6159_vm11 = vmmov %vm6158_vm7 }
 0x1d8   : > { %v1923_v15 = vmin.f32 %v2709_v17, %v1913_v18  ;;  %v1925_v26 = vmin.f32 %v2710_v4, %v1915_v46  ;;  %v1927_v5 = vmax.f32 %v2709_v17, %v1913_v18  ;;  %v1929_v31 = vmax.f32 %v2710_v4, %v1915_v46 }
 0x1da   : > { %v1951_v55 = vmin.f32 %v1923_v15, %v1925_v26  ;;  %v1955_v36 = vmin.f32 %v1927_v5, %v1929_v31  ;;  %v1961_v61 = vmax.f32 %v1925_v26, %v1923_v15  ;;  %v1965_v11 = vmax.f32 %v1929_v31, %v1927_v5 }
 0x1dc   : > { %v1989_v20 = vrot.slane %v1951_v55, 4  ;;  %v1990_v43 = vrot.slane %v1961_v61, 4  ;;  %v1994_v16 = vrot.slane %v1955_v36, 4  ;;  %v1998_v48 = vrot.slane %v1965_v11, 4 }
 0x1de   : > { %v1991_v28 = vsel %vm6158_vm7, %v1989_v20, %v1990_v43  ;;  %v1995_v2 = vsel %vm6159_vm11, %v1990_v43, %v1994_v16  ;;  %v1999_v30 = vsel %vm6160_vm14, %v1994_v16, %v1998_v48  ;;  %v2011_v42 = vsel %vm6161_vm15, %v1998_v48, %v1989_v20  ;;  %v6173_v48 = vld [vmem:[#allocation23_spill] sm:$0xff] }
 0x1df   : > { %v2013_v23 = vsel %vm5940_vm9, %v1991_v28, %v2011_v42  ;;  %v2015_v21 = vsel %vm5941_vm2, %v1995_v2, %v1991_v28  ;;  %v2017_v57 = vsel %vm4785_vm1, %v1999_v30, %v1995_v2  ;;  %v2019_v38 = vsel %vm6162_vm13, %v2011_v42, %v1999_v30 }
 0x1e0   : > { %v2021_v59 = vmin.f32 %v1951_v55, %v2013_v23  ;;  %v2023_v14 = vmin.f32 %v1961_v61, %v2015_v21  ;;  %v2025_v0 = vmin.f32 %v1955_v36, %v2017_v57  ;;  %v2027_v12 = vmin.f32 %v1965_v11, %v2019_v38 }
 0x1e1   : > { %v2029_v45 = vmax.f32 %v1951_v55, %v2013_v23  ;;  %v2031_v13 = vmax.f32 %v1961_v61, %v2015_v21  ;;  %v2033_v62 = vmax.f32 %v1955_v36, %v2017_v57  ;;  %v2035_v3 = vmax.f32 %v1965_v11, %v2019_v38 }
 0x1e2   : > { %vm6171_vm14 = vnez %v6013_v49  ;;  %vm6172_vm15 = vnez %v6082_v24  ;;  %v2255_v28 = vrot.slane %v5057_v32, %v6173_v48  ;;  %v5329_v2 = vrot.slane %v5068_v41, %v6173_v48 }
 0x1e3   : > { %v2037_v56 = vsel %vm5940_vm9, %v2021_v59, %v2029_v45  ;;  %v2039_v7 = vsel %vm5941_vm2, %v2023_v14, %v2031_v13  ;;  %v2041_v25 = vsel %vm4785_vm1, %v2025_v0, %v2033_v62  ;;  %v2043_v44 = vsel %vm6162_vm13, %v2027_v12, %v2035_v3  ;;  %vm6164_vm9 = vmmov %vm6163_vm10 }
 0x1e4   : > { %v2059_v34 = vrot.slane %v2037_v56, 2  ;;  %v2060_v19 = vrot.slane %v2039_v7, 2  ;;  %v2064_v33 = vrot.slane %v2041_v25, 2  ;;  %v2068_v22 = vrot.slane %v2043_v44, 2  ;;  %vm6165_vm6 = vmmov %vm6164_vm9 }
 0x1e5   : > { %v2083_v8 = vrot.slane %v2043_v44, 6  ;;  %v2087_v29 = vrot.slane %v2037_v56, 6  ;;  %v2090_v39 = vrot.slane %v2039_v7, 6  ;;  %v2094_v27 = vrot.slane %v2041_v25, 6  ;;  %vm6166_vm2 = vmmov %vm6165_vm6 }
 0x1e6   : > { %v2061_v10 = vsel %vm6163_vm10, %v2059_v34, %v2060_v19  ;;  %v2065_v52 = vsel %vm6164_vm9, %v2060_v19, %v2064_v33  ;;  %v2081_v51 = vsel %vm6165_vm6, %v2068_v22, %v2059_v34  ;;  %v2069_v47 = vsel %vm6166_vm2, %v2064_v33, %v2068_v22 }
 0x1e7   : > { %vm6167_vm1 = vcmask 1041408   ;;  %v5333_v30 = vrot.slane %v5142_v63, %v6173_v48  ;;  %v5343_v63 = vrot.slane %v5164_v50, %v6173_v48  ;;  %v5350_v45 = vrot.slane %v5184_v54, %v6173_v48 }
 0x1e8   : > { %v2091_v1 = vsel %vm6167_vm1, %v2087_v29, %v2090_v39  ;;  %vm6168_vm4 = vmmov %vm6167_vm1 }
 0x1e9   : > { %v2097_v37 = vsel %vm6168_vm4, %v2094_v27, %v2083_v8  ;;  %vm6169_vm7 = vmmov %vm6167_vm1  ;;  %v2111_v15 = vsel %vm4375_vm3, %v2065_v52, %v2091_v1 }
 0x1ea   : > { %v2107_v18 = vsel %vm6169_vm7, %v2083_v8, %v2087_v29  ;;  %vm6170_vm11 = vmmov %vm6167_vm1  ;;  %v2115_v4 = vsel %vm6171_vm14, %v2081_v51, %v2097_v37  ;;  %v2119_v31 = vmin.f32 %v2039_v7, %v2111_v15  ;;  %v2127_v61 = vmax.f32 %v2039_v7, %v2111_v15 }
 0x1eb   : > { %v2095_v46 = vsel %vm6170_vm11, %v2090_v39, %v2094_v27  ;;  %v2109_v17 = vsel %vm4370_vm5, %v2061_v10, %v2107_v18  ;;  %v2123_v55 = vmin.f32 %v2043_v44, %v2115_v4  ;;  %v2131_v11 = vmax.f32 %v2043_v44, %v2115_v4 }
 0x1ec   : > { %v2113_v26 = vsel %vm6172_vm15, %v2069_v47, %v2095_v46  ;;  %v2117_v5 = vmin.f32 %v2037_v56, %v2109_v17  ;;  %v2125_v36 = vmax.f32 %v2037_v56, %v2109_v17  ;;  %v2135_v42 = vsel %vm4375_vm3, %v2119_v31, %v2127_v61 }
 0x1ed   : > { %v2121_v20 = vmin.f32 %v2041_v25, %v2113_v26  ;;  %v2129_v43 = vmax.f32 %v2041_v25, %v2113_v26  ;;  %v2139_v23 = vsel %vm6171_vm14, %v2123_v55, %v2131_v11  ;;  %v2156_v57 = vrot.slane %v2135_v42, 1 }
 0x1ee   : > { %v2133_v16 = vsel %vm4370_vm5, %v2117_v5, %v2125_v36  ;;  %v2179_v38 = vrot.slane %v2139_v23, 7  ;;  %v2186_v41 = vrot.slane %v2135_v42, 7  ;;  %v2164_v14 = vrot.slane %v2139_v23, 1 }
 0x1ef   : > { %v2155_v21 = vrot.slane %v2133_v16, 1  ;;  %v2183_v9 = vrot.slane %v2133_v16, 7  ;;  %v2137_v32 = vsel %vm6172_vm15, %v2121_v20, %v2129_v43  ;;  %vm6174_vm5 = vcmask 1046528  }
 0x1f0   : > { %v2160_v59 = vrot.slane %v2137_v32, 1  ;;  %v2190_v0 = vrot.slane %v2137_v32, 7  ;;  %vm6175_vm3 = vcmask 1040384   ;;  %vm6177_vm10 = vmmov %vm6174_vm5  ;;  %v5368_v29 = vrot.slane %v5192_v60, %v6173_v48 }
 0x1f1   : > { %v2157_v40 = vsel %vm6174_vm5, %v2155_v21, %v2156_v57  ;;  %v2203_v49 = vsel %vm6175_vm3, %v2179_v38, %v2183_v9  ;;  %vm6176_vm13 = vmmov %vm6175_vm3 }
 0x1f2   : > { %v2187_v12 = vsel %vm6176_vm13, %v2183_v9, %v2186_v41  ;;  %v2205_v24 = vsel %vm4380_vm0, %v2157_v40, %v2203_v49  ;;  %v2161_v13 = vsel %vm6177_vm10, %v2156_v57, %v2160_v59  ;;  %vm6178_vm9 = vmmov %vm6174_vm5 }
 0x1f3   : > { %v2165_v62 = vsel %vm6178_vm9, %v2160_v59, %v2164_v14  ;;  %vm6179_vm6 = vmmov %vm6175_vm3  ;;  %v2213_v3 = vmin.f32 %v2133_v16, %v2205_v24  ;;  %v2221_v56 = vmax.f32 %v2133_v16, %v2205_v24  ;;  %v2207_v7 = vsel %vm4403_vm8, %v2161_v13, %v2187_v12 }
 0x1f4   : > { %v2191_v50 = vsel %vm6179_vm6, %v2186_v41, %v2190_v0  ;;  %v2215_v25 = vmin.f32 %v2135_v42, %v2207_v7  ;;  %v2223_v44 = vmax.f32 %v2135_v42, %v2207_v7  ;;  %vm6180_vm2 = vmmov %vm6174_vm5 }
 0x1f5   : > { %v2209_v54 = vsel %vm5072_vm12, %v2165_v62, %v2191_v50  ;;  %v2229_v33 = vsel %vm4380_vm0, %v2213_v3, %v2221_v56  ;;  %v2177_v22 = vsel %vm6180_vm2, %v2164_v14, %v2155_v21  ;;  %vm6181_vm1 = vmmov %vm6175_vm3  ;;  %vm6182_vm0 = vnez %v6093_v58 }
 0x1f6   : > { %v2217_v34 = vmin.f32 %v2137_v32, %v2209_v54  ;;  %v2225_v19 = vmax.f32 %v2137_v32, %v2209_v54  ;;  %v2193_v8 = vsel %vm6181_vm1, %v2190_v0, %v2179_v38  ;;  %2237 = vst [vmem:[%s4966_s11 + $0x8] sm:$0xff] %v2229_v33  ;;  %v2231_v39 = vsel %vm4403_vm8, %v2215_v25, %v2223_v44 }
 0x1f7   : > { %v2211_v27 = vsel %vm6182_vm0, %v2177_v22, %v2193_v8  ;;  %v2259_v10 = vmul.f32 %v2255_v28, %v2229_v33  ;;  %2239 = vst [vmem:[%s4966_s11 + $0x18] sm:$0xff] %v2231_v39  ;;  %v2261_v51 = vmul.f32 %v2255_v28, %v2231_v39  ;;  %v2309_v53 = vmul.f32 %v5333_v30, %v2229_v33 }
 0x1f8   : > { %v2233_v6 = vsel %vm5072_vm12, %v2217_v34, %v2225_v19  ;;  %v2219_v60 = vmin.f32 %v2139_v23, %v2211_v27  ;;  %v2227_v52 = vmax.f32 %v2139_v23, %v2211_v27  ;;  %v2311_v35 = vmul.f32 %v5333_v30, %v2231_v39 }
 0x1f9   : > { %2241 = vst [vmem:[%s4966_s11 + $0x28] sm:$0xff] %v2233_v6  ;;  %v2263_v47 = vmul.f32 %v2255_v28, %v2233_v6  ;;  %v2278_v1 = vadd.f32 %v5329_v2, %v2259_v10  ;;  %v2313_v37 = vmul.f32 %v5333_v30, %v2233_v6  ;;  %v2280_v46 = vadd.f32 %v5329_v2, %v2261_v51 }
 0x1fa   : > { %v2235_v18 = vsel %vm6182_vm0, %v2219_v60, %v2227_v52  ;;  %v2360_v15 = vmul.f32 %v5350_v45, %v2229_v33  ;;  %v2328_v26 = vadd.f32 %v5343_v63, %v2309_v53  ;;  %v2330_v5 = vadd.f32 %v5343_v63, %v2311_v35 }
 0x1fb   : > { %v2282_v17 = vadd.f32 %v5329_v2, %v2263_v47  ;;  %2243 = vst [vmem:[%s4966_s11 + $0x38] sm:$0xff] %v2235_v18  ;;  %2286 = vst [vmem:[%s5130_s16 + $0x8] sm:$0xff] %v2278_v1  ;;  %v2265_v4 = vmul.f32 %v2255_v28, %v2235_v18  ;;  %v2332_v58 = vadd.f32 %v5343_v63, %v2313_v37 }
 0x1fc   : > { %2288 = vst [vmem:[%s5130_s16 + $0x18] sm:$0xff] %v2280_v46  ;;  %v2315_v31 = vmul.f32 %v5333_v30, %v2235_v18  ;;  %v2379_v55 = vadd.f32 %v5368_v29, %v2360_v15  ;;  %v2362_v36 = vmul.f32 %v5350_v45, %v2231_v39  ;;  %v2364_v61 = vmul.f32 %v5350_v45, %v2233_v6 }
 0x1fd   : > { %2290 = vst [vmem:[%s5130_s16 + $0x28] sm:$0xff] %v2282_v17 }
 0x1fe   : > { %2750 = shalt.err (!%p2747_p7)
}
 0x1ff   : > { %s2751_s9 = scalar_lea.hbm %s5391_s7, 1024  ;;  %s2755_s25 = scalar_lea.hbm %s5509_s5, 2048 }
 0x200   : > { %p2752_p8 = scmp.ne.s32.totalorder %s5391_s7, %s2751_s9  ;;  %p2756_p5 = scmp.lt.s32.totalorder %s5391_s7, %s5509_s5 }
 0x201   : > { %p2757_p9 = scmp.lt.s32.totalorder %s2755_s25, %s2751_s9 }
 0x202   : > { %p2753_p12 = pnand %p2752_p8, %p6183_p11 }
 0x203   : > { %p2758_p10 = por %p2757_p9, %p2756_p5 }
 0x204   : > { %p2754_p13 = pneg %p2753_p12 }
 0x206   : > { %p2759_p6 = pnand %p2758_p10, %p2754_p13 }
 0x208   : > { %2762 = shalt.err (!%p2759_p6)
}
 0x209   : > { %s2836_s14 = smov 256   ;;  %s2837_s29 = smov 512   ;;  %v2284_v11 = vadd.f32 %v5329_v2, %v2265_v4  ;;  %2614 = vst [vmem:[%s5130_s16 + $0x48] sm:$0xff] %v2328_v26  ;;  %2616 = vst [vmem:[%s5130_s16 + $0x58] sm:$0xff] %v2330_v5  ;;  %v2366_v20 = vmul.f32 %v5350_v45, %v2235_v18  ;;  %v2334_v43 = vadd.f32 %v5343_v63, %v2315_v31 }
 0x20a   : > { %s2838_s8 = smov 16   ;;  %2618 = vst [vmem:[%s5130_s16 + $0x68] sm:$0xff] %v2332_v58  ;;  %2624 = vst [vmem:[%s5130_s16 + $0x88] sm:$0xff] %v2379_v55  ;;  %v2381_v16 = vadd.f32 %v5368_v29, %v2362_v36  ;;  %v2383_v48 = vadd.f32 %v5368_v29, %v2364_v61  ;;  %s2396_s9 = scalar_lea.sflag [#allocation4], %s2980_s28 }
 0x20b   : > { %2648 = dma.vmem_to_hbm [thread:$0]  (%p6183_p11), %s5371_s17, 1024, %s5391_s7, %s2401_s12, %s2836_s14, %s2837_s29, %s2838_s8   ;;  %v2385_v28 = vadd.f32 %v5368_v29, %v2366_v20 }
 0x20c   : > { %2292 = vst [vmem:[%s5130_s16 + $0x38] sm:$0xff] %v2284_v11  ;;  %s5452_s12 = scalar_lea.hbm %s5508_s4, %s2642_s23  ;;  %2620 = vst [vmem:[%s5130_s16 + $0x78] sm:$0xff] %v2334_v43  ;;  %s2763_s11 = scalar_lea.vmem %s5456_s10, 3072 }
 0x20d   : > { %2626 = vst [vmem:[%s5130_s16 + $0x98] sm:$0xff] %v2381_v16  ;;  %2628 = vst [vmem:[%s5130_s16 + $0xa8] sm:$0xff] %v2383_v48  ;;  %p2764_p0 = scmp.ne.s32.totalorder %s5456_s10, %s2763_s11  ;;  %s2839_s22 = smov [#allocation8]  }
 0x20e   : > { %2630 = vst [vmem:[%s5130_s16 + $0xb8] sm:$0xff] %v2385_v28  ;;  %s2767_s13 = sshll.u32 %s2839_s22, 4  ;;  %s2768_s13 = int_to_ptr.vmem [resolvable:$false] %s2767_s13 }
 0x20f   : > { %p2765_p1 = pnand %p2764_p0, %p6183_p11  ;;  %s2769_s23 = scalar_lea.vmem %s2768_s13, 6144 }
 0x210   : > { %p2770_p3 = scmp.lt.s32.totalorder %s5456_s10, %s2768_s13  ;;  %p2771_p4 = scmp.lt.s32.totalorder %s2769_s23, %s2763_s11 }
 0x211   : > { %p2766_p2 = pneg %p2765_p1 }
 0x212   : > { %p2772_p7 = por %p2771_p4, %p2770_p3 }
 0x214   : > { %p2773_p8 = pnand %p2772_p7, %p2766_p2 }
 0x216   : > { %2776 = shalt.err (!%p2773_p8)
}
 0x217   : > { %s2777_s16 = scalar_lea.hbm %s5452_s12, 3072  ;;  %s2781_s26 = scalar_lea.hbm %s5508_s4, 6144 }
 0x218   : > { %p2778_p12 = scmp.ne.s32.totalorder %s5452_s12, %s2777_s16  ;;  %p2782_p9 = scmp.lt.s32.totalorder %s5452_s12, %s5508_s4 }
 0x219   : > { %p2783_p10 = scmp.lt.s32.totalorder %s2781_s26, %s2777_s16 }
 0x21a   : > { %p2779_p13 = pnand %p2778_p12, %p6183_p11 }
 0x21b   : > { %p2784_p6 = por %p2783_p10, %p2782_p9 }
 0x21c   : > { %p2780_p5 = pneg %p2779_p13 }
 0x21e   : > { %p2785_p0 = pnand %p2784_p6, %p2780_p5 }
 0x220   : > { %2788 = shalt.err (!%p2785_p0)
}
 0x221   : > { %2647 = dma.vmem_to_hbm [thread:$0]  (%p6183_p11), %s5456_s10, 3072, %s5452_s12, %s2396_s9, %s2836_s14, %s2837_s29, %s2838_s8  }
 0x222 PF: > { %s2445_s7 = sand.u32 1, %s2819_s18   ;;  %p6184_p1 = scmp.ne.s32.totalorder %s5612_s6, 0 }
 0x223   : > { %p6185_p2 = scmp.ge.s32.totalorder %s2831_s21, 2  ;;  %s2446_s11 = scalar_lea.sflag [#allocation4], %s2445_s7 }
 0x225   : > { %p2652_p3 = pnand %p6185_p2, %p6184_p1 }
 0x227   : > { %p2653_p4 = pneg %p2652_p3 }
 0x229   : > { %2810 = dma.done.wait (%p2653_p4), %s2446_s11, 3072  }
 0x22a   : > { %2812 = vsyncadd (%p2653_p4), %s2446_s11, 4294964224  ;;  %s2455_s22 = scalar_lea.sflag [#allocation10], %s2445_s7 }
 0x22b   : > { %2814 = dma.done.wait (%p2653_p4), %s2455_s22, 1024  }
 0x22c   : > { %2816 = vsyncadd (%p2653_p4), %s2455_s22, 4294966272  ;;  %p22_p11 = scmp.ge.s32.totalorder %s2895_s24, 4   ;;  %s6186_s18 = smov %s2823_s19 }
 0x22d   : > { %s6187_s19 = smov %s2827_s20  ;;  %s6188_s20 = smov %s2907_s27 }
 0x22e   : > { %s6189_s21 = smov %s2895_s24  ;;  %24 = sbr.rel (!%p22_p11) target bundleno = 7 (0x7), region = 198 }
 0x233   :  { %2460 = vsyncpa [#allocation3], 1 }
 0x234   :  { %2462 = vsyncpa [#allocation3 + $0x1], 1 }
 0x235   :  { %2463 = vsyncpa [#allocation4], 1 }
 0x236   :  { %2465 = vsyncpa [#allocation4 + $0x1], 1 }
 0x237   :  { %2466 = vsyncpa [#allocation10], 1 }
 0x238   :  { %2468 = vsyncpa [#allocation10 + $0x1], 1 }

</bundles_post_ra>
